<compile_context>
chip_gen: v7x
topology: tpu7x:2x2x1
jax: 0.10.0
libtpu: 0.0.40
codegen_flags: <defaults>
</compile_context>

<pallas_src>
import jax
import jax.numpy as jnp
from jax.experimental import pallas as pl
from jax.experimental.pallas import tpu as pltpu


def _round_up(a, m):
    return ((a + m - 1) // m) * m


def _cdiv(a, b):
    return (a + b - 1) // b


def _num_tensorcores():
    """TensorCores visible to one Pallas device (megacore 'parallel' sharding width)."""
    try:
        dev = jax.devices()[0]
        nc = getattr(dev, "num_cores", None)
        if isinstance(nc, int) and nc > 0:
            return nc
        kind = str(getattr(dev, "device_kind", "")).lower()
    except Exception:
        return 1
    # v5e / v6e expose a single TensorCore per device.
    if "lite" in kind or "v5e" in kind or "v6e" in kind:
        return 1
    # v7x (2 TC/chip) and megacore parts (v4 / v5p) expose two.
    if "7x" in kind or "v7" in kind or "tpu7" in kind or "v4" in kind or "v5p" in kind:
        return 2
    return 1


def _select_tiling(B, n_cores, max_tile_b=1024):
    """Equally-sized blocks; 1 block on single-TC parts (no padding at all)."""
    n_blocks = n_cores if B >= 8 * n_cores else 1
    # Bound per-block VMEM footprint; keep the block count a multiple of n_cores.
    while _cdiv(B, n_blocks) > max_tile_b:
        n_blocks += n_cores
    if n_blocks == 1:
        # Single block == full array: the (8,128) divisibility rule does not apply,
        # so no batch padding and no wrapper-side jnp.pad.
        return B, 1
    tb = _round_up(_cdiv(B, n_blocks), 8)
    return tb, n_blocks


def _elu(x):
    # ELU(alpha=1): x for x > 0, exp(x) - 1 for x <= 0 (matches torch.nn.functional.elu).
    # Single EUP transcendental per element; exp on min(x, 0) avoids overflow in the
    # not-selected branch.
    return jnp.where(x > 0, x, jnp.exp(jnp.minimum(x, 0.0)) - 1.0)


def mlp_kernel(x_ref, w1t_ref, b1_ref, w2t_ref, b2_ref, w3t_ref, b3p_ref, o_ref):
    x = x_ref[...]          # (tb, in_dim) f32
    w1t = w1t_ref[...]      # (in_dim, hidden) f32 (tiny, pre-transposed in the wrapper)
    in_dim = x.shape[1]

    # ---- layer 1 ----
    if in_dim <= 8:
        # K is tiny (in_dim=2 here): broadcast multiply-adds on the VPU instead of a
        # near-empty MXU pass on a 64x lane-padded x tile.
        h = b1_ref[...] + x[:, 0:1] * w1t[0:1, :]
        for k in range(1, in_dim):
            h = h + x[:, k:k + 1] * w1t[k:k + 1, :]
    else:
        h = jnp.dot(x, w1t, preferred_element_type=jnp.float32) + b1_ref[...]
    h1 = _elu(h)

    # ---- layer 2 (MXU); w2 pre-transposed in the wrapper -> plain A @ B ----
    h2 = _elu(
        jnp.dot(h1, w2t_ref[...], preferred_element_type=jnp.float32) + b2_ref[...]
    )

    # ---- layer 3 (MXU); output padded to a 128-lane-dense block ----
    out = jnp.dot(h2, w3t_ref[...], preferred_element_type=jnp.float32) + b3p_ref[...]
    o_ref[...] = out.astype(o_ref.dtype)


def mlp_forward(x, params, *, max_tile_b=1024):
    """x: (B, input_size) float32. params: dict w1,b1,w2,b2,w3,b3 in PyTorch (out,in) layout."""
    B, in_dim = x.shape
    hidden = params["w1"].shape[0]
    out_dim = params["w3"].shape[0]
    out_pad = _round_up(out_dim, 128)

    # One-time weight prep (all weights are small and stay resident across the grid):
    w1t = jnp.transpose(params["w1"])                                   # (in_dim, hidden)
    b1 = params["b1"].reshape(1, hidden)
    w2t = jnp.transpose(params["w2"])                                   # (hidden, hidden)
    b2 = params["b2"].reshape(1, hidden)
    w3t = jnp.pad(jnp.transpose(params["w3"]),
                  ((0, 0), (0, out_pad - out_dim)))                     # (hidden, out_pad)
    b3p = jnp.pad(params["b3"], (0, out_pad - out_dim)).reshape(1, out_pad)

    # Generation-aware, balanced batch tiling.
    n_cores = max(1, _num_tensorcores())
    tb, n_blocks = _select_tiling(B, n_cores, max_tile_b=max_tile_b)
    B_pad = tb * n_blocks
    x_pad = jnp.pad(x, ((0, B_pad - B), (0, 0))) if B_pad != B else x
    grid = (n_blocks,)

    full = lambda i: (0, 0)  # weights/biases: constant block index -> resident, not re-DMA'd

    flops = 2 * B_pad * (in_dim * hidden + hidden * hidden + hidden * out_pad)
    bytes_accessed = 4 * (
        B_pad * in_dim + in_dim * hidden + hidden * hidden + hidden * out_pad
        + 2 * hidden + out_pad + B_pad * out_pad
    )
    cost = pl.CostEstimate(
        flops=flops,
        transcendentals=2 * B_pad * hidden,   # one exp per element for each of the two ELUs
        bytes_accessed=bytes_accessed,
    )

    # NOTE: for large `hidden` the resident f32 (hidden, hidden) weight is hidden^2 * 4 B
    # (64 MiB at hidden=4096, i.e. all of v7x's VMEM) and would have to be K/N-tiled on an
    # "arbitrary" grid axis with a VMEM f32 accumulator (and/or stored bf16).  At
    # hidden=128 the fully-resident layout (~1.5 MiB total) is optimal on all generations.
    out_padded = pl.pallas_call(
        mlp_kernel,
        out_shape=jax.ShapeDtypeStruct((B_pad, out_pad), x.dtype),
        grid_spec=pltpu.PrefetchScalarGridSpec(
            num_scalar_prefetch=0,
            grid=grid,
            in_specs=[
                pl.BlockSpec((tb, in_dim), lambda i: (i, 0)),
                pl.BlockSpec((in_dim, hidden), full),
                pl.BlockSpec((1, hidden), full),
                pl.BlockSpec((hidden, hidden), full),
                pl.BlockSpec((1, hidden), full),
                pl.BlockSpec((hidden, out_pad), full),
                pl.BlockSpec((1, out_pad), full),
            ],
            out_specs=pl.BlockSpec((tb, out_pad), lambda i: (i, 0)),
        ),
        compiler_params=pltpu.CompilerParams(
            dimension_semantics=("parallel",),
        ),
        cost_estimate=cost,
    )(x_pad, w1t, b1, w2t, b2, w3t, b3p)

    return out_padded[:B, :out_dim]


def init_params(key, input_size=2, hidden_size=128, output_size=1):
    """xavier_normal_ weights / zero biases, matching the PyTorch __init__ (PyTorch layout)."""
    k1, k2, k3 = jax.random.split(key, 3)

    def xavier_normal(k, out_f, in_f):
        std = (2.0 / (in_f + out_f)) ** 0.5
        return std * jax.random.normal(k, (out_f, in_f), dtype=jnp.float32)

    return {
        "w1": xavier_normal(k1, hidden_size, input_size),
        "b1": jnp.zeros((hidden_size,), jnp.float32),
        "w2": xavier_normal(k2, hidden_size, hidden_size),
        "b2": jnp.zeros((hidden_size,), jnp.float32),
        "w3": xavier_normal(k3, output_size, hidden_size),
        "b3": jnp.zeros((output_size,), jnp.float32),
    }


def mlp_reference(x, p):
    h1 = jax.nn.elu(x @ p["w1"].T + p["b1"])
    h2 = jax.nn.elu(h1 @ p["w2"].T + p["b2"])
    return h2 @ p["w3"].T + p["b3"]


if __name__ == "__main__":
    key = jax.random.PRNGKey(0)
    kx, kp = jax.random.split(key)

    # Module's native sizes: in=2, hidden=128, out=1.  B=600 exercises the tiling
    # heuristic: 1 block of 600 (no padding) on v5e/v6e, 2 balanced blocks of 304 on v7x.
    B, input_size, hidden_size, output_size = 600, 2, 128, 1
    x = jax.random.normal(kx, (B, input_size), dtype=jnp.float32)
    params = init_params(kp, input_size, hidden_size, output_size)

    out = mlp_forward(x, params)
    out = jax.block_until_ready(out)

    ref = mlp_reference(x, params)
    assert out.shape == (B, output_size)
    max_err = float(jnp.max(jnp.abs(out - ref)))
    assert jnp.allclose(out, ref, atol=1e-5, rtol=1e-5), f"mismatch vs reference (max abs err {max_err})"

    print("KERNEL_OK")
</pallas_src>

<mosaic_0001>
module attributes {stable_mosaic.version = 11 : i64} {
  func.func @mlp_kernel(%arg0: i32, %arg1: memref<600x2xf32, #tpu.memory_space<vmem>>, %arg2: memref<2x128xf32, #tpu.memory_space<vmem>>, %arg3: memref<1x128xf32, #tpu.memory_space<vmem>>, %arg4: memref<128x128xf32, #tpu.memory_space<vmem>>, %arg5: memref<1x128xf32, #tpu.memory_space<vmem>>, %arg6: memref<128x128xf32, #tpu.memory_space<vmem>>, %arg7: memref<1x128xf32, #tpu.memory_space<vmem>>, %arg8: memref<600x128xf32, #tpu.memory_space<vmem>>) attributes {dimension_semantics = [#tpu.dimension_semantics<parallel>], iteration_bounds = array<i64: 1>, scalar_prefetch = 0 : i64, scratch_operands = 0 : i64, tpu.core_type = #tpu.core_type<tc>, window_params = [{transform_indices = @transform_0, window_bounds = array<i64: 600, 2>}, {pipeline_mode = #tpu.pipeline_mode<synchronous>, transform_indices = @transform_1, window_bounds = array<i64: 2, 128>}, {pipeline_mode = #tpu.pipeline_mode<synchronous>, transform_indices = @transform_2, window_bounds = array<i64: 1, 128>}, {pipeline_mode = #tpu.pipeline_mode<synchronous>, transform_indices = @transform_3, window_bounds = array<i64: 128, 128>}, {pipeline_mode = #tpu.pipeline_mode<synchronous>, transform_indices = @transform_4, window_bounds = array<i64: 1, 128>}, {pipeline_mode = #tpu.pipeline_mode<synchronous>, transform_indices = @transform_5, window_bounds = array<i64: 128, 128>}, {pipeline_mode = #tpu.pipeline_mode<synchronous>, transform_indices = @transform_6, window_bounds = array<i64: 1, 128>}, {transform_indices = @transform_7, window_bounds = array<i64: 600, 128>}]} {
    %c0 = arith.constant 0 : index
    %c0_0 = arith.constant 0 : index
    %0 = vector.load %arg1[%c0, %c0_0] : memref<600x2xf32, #tpu.memory_space<vmem>>, vector<600x2xf32>
    %c0_1 = arith.constant 0 : index
    %c0_2 = arith.constant 0 : index
    %1 = vector.load %arg2[%c0_1, %c0_2] : memref<2x128xf32, #tpu.memory_space<vmem>>, vector<2x128xf32>
    %c0_3 = arith.constant 0 : index
    %c0_4 = arith.constant 0 : index
    %2 = vector.load %arg3[%c0_3, %c0_4] : memref<1x128xf32, #tpu.memory_space<vmem>>, vector<1x128xf32>
    %3 = vector.extract_strided_slice %0 {offsets = [0, 0], sizes = [600, 1], strides = [1, 1]} : vector<600x2xf32> to vector<600x1xf32>
    %4 = vector.extract_strided_slice %1 {offsets = [0, 0], sizes = [1, 128], strides = [1, 1]} : vector<2x128xf32> to vector<1x128xf32>
    %5 = vector.broadcast %3 : vector<600x1xf32> to vector<600x128xf32>
    %6 = vector.broadcast %4 : vector<1x128xf32> to vector<600x128xf32>
    %7 = arith.mulf %5, %6 : vector<600x128xf32>
    %8 = vector.broadcast %2 : vector<1x128xf32> to vector<600x128xf32>
    %9 = arith.addf %8, %7 : vector<600x128xf32>
    %10 = vector.extract_strided_slice %0 {offsets = [0, 1], sizes = [600, 1], strides = [1, 1]} : vector<600x2xf32> to vector<600x1xf32>
    %11 = vector.extract_strided_slice %1 {offsets = [1, 0], sizes = [1, 128], strides = [1, 1]} : vector<2x128xf32> to vector<1x128xf32>
    %12 = vector.broadcast %10 : vector<600x1xf32> to vector<600x128xf32>
    %13 = vector.broadcast %11 : vector<1x128xf32> to vector<600x128xf32>
    %14 = arith.mulf %12, %13 : vector<600x128xf32>
    %15 = arith.addf %9, %14 : vector<600x128xf32>
    %cst = arith.constant 0.000000e+00 : f32
    %16 = vector.broadcast %cst : f32 to vector<600x128xf32>
    %17 = arith.cmpf ogt, %15, %16 : vector<600x128xf32>
    %cst_5 = arith.constant 0.000000e+00 : f32
    %18 = vector.broadcast %cst_5 : f32 to vector<600x128xf32>
    %19 = arith.minimumf %15, %18 : vector<600x128xf32>
    %20 = math.exp %19 : vector<600x128xf32>
    %cst_6 = arith.constant 1.000000e+00 : f32
    %21 = vector.broadcast %cst_6 : f32 to vector<600x128xf32>
    %22 = arith.subf %20, %21 : vector<600x128xf32>
    %23 = arith.select %17, %15, %22 : vector<600x128xi1>, vector<600x128xf32>
    %c0_7 = arith.constant 0 : index
    %c0_8 = arith.constant 0 : index
    %24 = vector.load %arg4[%c0_7, %c0_8] : memref<128x128xf32, #tpu.memory_space<vmem>>, vector<128x128xf32>
    %cst_9 = arith.constant dense<0.000000e+00> : vector<600x128xf32>
    %25 = tpu.matmul %23, %24, %cst_9 {dimension_numbers = #tpu.dot_dimension_numbers<[1], [0], [0], [1], [0, 0, 1, 1], [], []>} : vector<600x128xf32>, vector<128x128xf32>, vector<600x128xf32> -> vector<600x128xf32>
    %c0_10 = arith.constant 0 : index
    %c0_11 = arith.constant 0 : index
    %26 = vector.load %arg5[%c0_10, %c0_11] : memref<1x128xf32, #tpu.memory_space<vmem>>, vector<1x128xf32>
    %27 = vector.broadcast %26 : vector<1x128xf32> to vector<600x128xf32>
    %28 = arith.addf %25, %27 : vector<600x128xf32>
    %cst_12 = arith.constant 0.000000e+00 : f32
    %29 = vector.broadcast %cst_12 : f32 to vector<600x128xf32>
    %30 = arith.cmpf ogt, %28, %29 : vector<600x128xf32>
    %cst_13 = arith.constant 0.000000e+00 : f32
    %31 = vector.broadcast %cst_13 : f32 to vector<600x128xf32>
    %32 = arith.minimumf %28, %31 : vector<600x128xf32>
    %33 = math.exp %32 : vector<600x128xf32>
    %cst_14 = arith.constant 1.000000e+00 : f32
    %34 = vector.broadcast %cst_14 : f32 to vector<600x128xf32>
    %35 = arith.subf %33, %34 : vector<600x128xf32>
    %36 = arith.select %30, %28, %35 : vector<600x128xi1>, vector<600x128xf32>
    %c0_15 = arith.constant 0 : index
    %c0_16 = arith.constant 0 : index
    %37 = vector.load %arg6[%c0_15, %c0_16] : memref<128x128xf32, #tpu.memory_space<vmem>>, vector<128x128xf32>
    %cst_17 = arith.constant dense<0.000000e+00> : vector<600x128xf32>
    %38 = tpu.matmul %36, %37, %cst_17 {dimension_numbers = #tpu.dot_dimension_numbers<[1], [0], [0], [1], [0, 0, 1, 1], [], []>} : vector<600x128xf32>, vector<128x128xf32>, vector<600x128xf32> -> vector<600x128xf32>
    %c0_18 = arith.constant 0 : index
    %c0_19 = arith.constant 0 : index
    %39 = vector.load %arg7[%c0_18, %c0_19] : memref<1x128xf32, #tpu.memory_space<vmem>>, vector<1x128xf32>
    %40 = vector.broadcast %39 : vector<1x128xf32> to vector<600x128xf32>
    %41 = arith.addf %38, %40 : vector<600x128xf32>
    %c0_20 = arith.constant 0 : index
    %c0_21 = arith.constant 0 : index
    %42 = vector.load %arg8[%c0_20, %c0_21] : memref<600x128xf32, #tpu.memory_space<vmem>>, vector<600x128xf32>
    tpu.vector_store %arg8[%c0_20, %c0_21], %41 {strides = array<i32>} : memref<600x128xf32, #tpu.memory_space<vmem>>, vector<600x128xf32>,
    return
  }
  func.func @transform_0(%arg0: i32) -> (i32, i32) {
    %c0_i32 = arith.constant 0 : i32
    %c0_i32_0 = arith.constant 0 : i32
    return %arg0, %c0_i32 : i32, i32
  }
  func.func @transform_1(%arg0: i32) -> (i32, i32) {
    %c0_i32 = arith.constant 0 : i32
    %c0_i32_0 = arith.constant 0 : i32
    %c0_i32_1 = arith.constant 0 : i32
    return %c0_i32, %c0_i32_0 : i32, i32
  }
  func.func @transform_2(%arg0: i32) -> (i32, i32) {
    %c0_i32 = arith.constant 0 : i32
    %c0_i32_0 = arith.constant 0 : i32
    %c0_i32_1 = arith.constant 0 : i32
    return %c0_i32, %c0_i32_0 : i32, i32
  }
  func.func @transform_3(%arg0: i32) -> (i32, i32) {
    %c0_i32 = arith.constant 0 : i32
    %c0_i32_0 = arith.constant 0 : i32
    %c0_i32_1 = arith.constant 0 : i32
    return %c0_i32, %c0_i32_0 : i32, i32
  }
  func.func @transform_4(%arg0: i32) -> (i32, i32) {
    %c0_i32 = arith.constant 0 : i32
    %c0_i32_0 = arith.constant 0 : i32
    %c0_i32_1 = arith.constant 0 : i32
    return %c0_i32, %c0_i32_0 : i32, i32
  }
  func.func @transform_5(%arg0: i32) -> (i32, i32) {
    %c0_i32 = arith.constant 0 : i32
    %c0_i32_0 = arith.constant 0 : i32
    %c0_i32_1 = arith.constant 0 : i32
    return %c0_i32, %c0_i32_0 : i32, i32
  }
  func.func @transform_6(%arg0: i32) -> (i32, i32) {
    %c0_i32 = arith.constant 0 : i32
    %c0_i32_0 = arith.constant 0 : i32
    %c0_i32_1 = arith.constant 0 : i32
    return %c0_i32, %c0_i32_0 : i32, i32
  }
  func.func @transform_7(%arg0: i32) -> (i32, i32) {
    %c0_i32 = arith.constant 0 : i32
    %c0_i32_0 = arith.constant 0 : i32
    return %arg0, %c0_i32 : i32, i32
  }
}

</mosaic_0001>

<bundles_post_ra>
// kernel: tpu_custom_call.1
= control target key start
LH: loop header
LB: loop body
LE: loop exit
PB: predicated region body
PF: predicated region fallthrough
CT: control target
= control target key end

     0   :  { %v4249_v2 = vmov 0   ;;  %v4250_v3 = vmov 0.0|0.0   ;;  %v4251_v4 = vmov 1   ;;  %s5965_s0 = inlined_call_operand.vmem [shape: f32[600,2], index: 0, kind: input, shape index: {}]   ;;  %s5966_s1 = inlined_call_operand.vmem [shape: f32[2,128], index: 1, kind: input, shape index: {}]   ;;  %s5967_s2 = inlined_call_operand.vmem [shape: f32[1,128], index: 2, kind: input, shape index: {}]   ;;  %s5968_s3 = inlined_call_operand.vmem [shape: f32[128,128], index: 3, kind: input, shape index: {}]   ;;  %s5969_s4 = inlined_call_operand.vmem [shape: f32[1,128], index: 4, kind: input, shape index: {}]   ;;  %s5970_s5 = inlined_call_operand.vmem [shape: f32[128,128], index: 5, kind: input, shape index: {}]   ;;  %s5971_s6 = inlined_call_operand.vmem [shape: f32[1,128], index: 6, kind: input, shape index: {}]   ;;  %s5972_s7 = inlined_call_operand.hbm [shape: f32[600,128], index: 7, kind: output, shape index: {}]  }
   0x1   :  { %v28_v0 = vld [vmem:[%s5965_s0 + $0x8] sm:$0xff]  ;;  %v27_v1 = vld [vmem:[%s5965_s0] sm:$0xff]  ;;  %3917 = vset.pattern.permute.xlu1 %v4249_v2  ;;  %3915 = vset.pattern.permute.xlu0 %v4249_v2  ;;  %v29_v5 = vld [vmem:[%s5965_s0 + $0x10] sm:$0xff] }
   0x2   :  { %111 = vperm.xlu1 %3917, %v28_v0   ;;  %106 = vperm.xlu0 %3915, %v27_v1   ;;  %v1543_v6 = vld [vmem:[%s5968_s3] sm:$0xff]  ;;  %v1544_v7 = vld [vmem:[%s5968_s3 + $0x8] sm:$0xff]  ;;  %v30_v9 = vld [vmem:[%s5965_s0 + $0x18] sm:$0xff] }
   0x3   :  { %3859 = vmatprep.subr.bf16.mxu0 %v4250_v3  ;;  %3883 = vmatprep.subr.bf16.mxu1 %v4250_v3  ;;  %v3860_v8 = vpack.c.bf16 %v1544_v7, %v1543_v6  ;;  %v1545_v10 = vld [vmem:[%s5968_s3 + $0x10] sm:$0xff]  ;;  %v1546_v11 = vld [vmem:[%s5968_s3 + $0x18] sm:$0xff]  ;;  %v1547_v13 = vld [vmem:[%s5968_s3 + $0x20] sm:$0xff] }
   0x4   :  { %v3863_v12 = vpack.c.bf16 %v1546_v11, %v1545_v10  ;;  %v1548_v14 = vld [vmem:[%s5968_s3 + $0x28] sm:$0xff]  ;;  %v31_v15 = vld [vmem:[%s5965_s0 + $0x20] sm:$0xff] }
   0x5   :  { %3861 = vmatpush3.bf16.msra.mxu0 %v3860_v8 }
   0x6   :  { %3918 = vset.pattern.permute.xlu1 %v4251_v4  ;;  %3916 = vset.pattern.permute.xlu0 %v4251_v4 }
   0x7   :  { %644 = vperm.xlu1 %3918, %v28_v0   ;;  %640 = vperm.xlu0 %3916, %v27_v1  }
   0x8   :  { %3862 = vmatprep.subr.bf16.mxu0 %v4250_v3 }
   0xb   :  { %3919 = vset.pattern.permute.xlu1 %v4249_v2  ;;  %648 = vperm.xlu0 %3916, %v29_v5  }
   0xc   :  { %116 = vperm.xlu1 %3919, %v29_v5  }
   0xf   :  { %652 = vperm.xlu0 %3916, %v30_v9  }
  0x10   :  { %121 = vperm.xlu1 %3919, %v30_v9  }
  0x11   :  { %12 = vsyncpa [#allocation3], 0  ;;  %3864 = vmatpush3.bf16.msra.mxu0 %v3863_v12  ;;  %v3866_v16 = vpack.c.bf16 %v1548_v14, %v1547_v13  ;;  %v1549_v17 = vld [vmem:[%s5968_s3 + $0x30] sm:$0xff]  ;;  %v1550_v18 = vld [vmem:[%s5968_s3 + $0x38] sm:$0xff]  ;;  %vm4252_vm0 = vmmov 0   ;;  %v4253_v28 = vmov 0.0   ;;  %v479_v57 = vlaneseq }
  0x12   :  { %3865 = vmatprep.subr.bf16.mxu0 %v4250_v3  ;;  %v32_v19 = vld [vmem:[%s5965_s0 + $0x28] sm:$0xff]  ;;  %v3869_v20 = vpack.c.bf16 %v1550_v18, %v1549_v17  ;;  %v1551_v21 = vld [vmem:[%s5968_s3 + $0x40] sm:$0xff]  ;;  %v33_v23 = vld [vmem:[%s5965_s0 + $0x30] sm:$0xff]  ;;  %3377 = vmatprep.mubr.msk.f32.mxu0 %vm4252_vm0, %v4253_v28  ;;  %s4254_s8 = smov [#allocation2]  }
  0x13   :  { %656 = vperm.xlu0 %3916, %v31_v15   ;;  %v1552_v22 = vld [vmem:[%s5968_s3 + $0x48] sm:$0xff]  ;;  %v1553_v25 = vld [vmem:[%s5968_s3 + $0x50] sm:$0xff]  ;;  %v1554_v26 = vld [vmem:[%s5968_s3 + $0x58] sm:$0xff]  ;;  %3634 = vmatprep.mubr.msk.f32.mxu1 %vm4252_vm0, %v4253_v28  ;;  %v480_v59 = vshrl.u32 %v479_v57, 7 }
  0x14   :  { %126 = vperm.xlu1 %3919, %v31_v15   ;;  %v3872_v24 = vpack.c.bf16 %v1552_v22, %v1551_v21  ;;  %v34_v27 = vld [vmem:[%s5965_s0 + $0x38] sm:$0xff]  ;;  %v3875_v29 = vpack.c.bf16 %v1554_v26, %v1553_v25  ;;  %v1555_v30 = vld [vmem:[%s5968_s3 + $0x60] sm:$0xff]  ;;  %v1556_v31 = vld [vmem:[%s5968_s3 + $0x68] sm:$0xff] }
  0x15   :  { %3867 = vmatpush3.bf16.msra.mxu0 %v3866_v16  ;;  %v35_v32 = vld [vmem:[%s5965_s0 + $0x40] sm:$0xff]  ;;  %v3878_v33 = vpack.c.bf16 %v1556_v31, %v1555_v30  ;;  %v1557_v34 = vld [vmem:[%s5968_s3 + $0x70] sm:$0xff]  ;;  %v1558_v35 = vld [vmem:[%s5968_s3 + $0x78] sm:$0xff]  ;;  %v481_v61 = vsub.s32 0, %v480_v59  ;;  %v941_v1 = vsub.s32 1, %v480_v59 }
  0x16   :  { %3868 = vmatprep.subr.bf16.mxu0 %v4250_v3  ;;  %v36_v36 = vld [vmem:[%s5965_s0 + $0x48] sm:$0xff]  ;;  %v3881_v37 = vpack.c.bf16 %v1558_v35, %v1557_v34  ;;  %v37_v38 = vld [vmem:[%s5965_s0 + $0x50] sm:$0xff]  ;;  %v38_v39 = vld [vmem:[%s5965_s0 + $0x58] sm:$0xff] }
  0x17   :  { %660 = vperm.xlu0 %3916, %v32_v19   ;;  %v39_v40 = vld [vmem:[%s5965_s0 + $0x60] sm:$0xff]  ;;  %v40_v41 = vld [vmem:[%s5965_s0 + $0x68] sm:$0xff]  ;;  %v41_v42 = vld [vmem:[%s5965_s0 + $0x70] sm:$0xff] }
  0x18   :  { %131 = vperm.xlu1 %3919, %v32_v19   ;;  %v42_v43 = vld [vmem:[%s5965_s0 + $0x78] sm:$0xff]  ;;  %v43_v44 = vld [vmem:[%s5965_s0 + $0x80] sm:$0xff]  ;;  %v44_v45 = vld [vmem:[%s5965_s0 + $0x88] sm:$0xff] }
  0x19   :  { %3870 = vmatpush3.bf16.msra.mxu0 %v3869_v20  ;;  %v45_v46 = vld [vmem:[%s5965_s0 + $0x90] sm:$0xff]  ;;  %v46_v47 = vld [vmem:[%s5965_s0 + $0x98] sm:$0xff]  ;;  %v47_v48 = vld [vmem:[%s5965_s0 + $0xa0] sm:$0xff] }
  0x1a   :  { %3871 = vmatprep.subr.bf16.mxu0 %v4250_v3  ;;  %v48_v49 = vld [vmem:[%s5965_s0 + $0xa8] sm:$0xff]  ;;  %v49_v50 = vld [vmem:[%s5965_s0 + $0xb0] sm:$0xff]  ;;  %v50_v51 = vld [vmem:[%s5965_s0 + $0xb8] sm:$0xff] }
  0x1b   :  { %664 = vperm.xlu0 %3916, %v33_v23   ;;  %v51_v52 = vld [vmem:[%s5965_s0 + $0xc0] sm:$0xff]  ;;  %v52_v53 = vld [vmem:[%s5965_s0 + $0xc8] sm:$0xff]  ;;  %v53_v54 = vld [vmem:[%s5965_s0 + $0xd0] sm:$0xff] }
  0x1c   :  { %136 = vperm.xlu1 %3919, %v33_v23   ;;  %v54_v55 = vld [vmem:[%s5965_s0 + $0xd8] sm:$0xff]  ;;  %v55_v56 = vld [vmem:[%s5965_s0 + $0xe0] sm:$0xff]  ;;  %v56_v58 = vld [vmem:[%s5965_s0 + $0xe8] sm:$0xff] }
  0x1d   :  { %3873 = vmatpush3.bf16.msra.mxu0 %v3872_v24  ;;  %v57_v60 = vld [vmem:[%s5965_s0 + $0xf0] sm:$0xff]  ;;  %v58_v62 = vld [vmem:[%s5965_s0 + $0xf8] sm:$0xff]  ;;  %v102_v63 = vld [vmem:[%s5966_s1] sm:$0x3] }
  0x1e   :  { %3874 = vmatprep.subr.bf16.mxu0 %v4250_v3  ;;  %v4457_v0 = vrot.slane %v102_v63, %v481_v61  ;;  %v59_v2 = vld [vmem:[%s5965_s0 + $0x100] sm:$0xff]  ;;  %v4464_v8 = vrot.slane %v102_v63, %v941_v1  ;;  %v60_v10 = vld [vmem:[%s5965_s0 + $0x108] sm:$0xff]  ;;  %v61_v17 = vld [vmem:[%s5965_s0 + $0x110] sm:$0xff] }
  0x1f   :  { %668 = vperm.xlu0 %3916, %v34_v27   ;;  %v4469_v9 = vld [vmem:[%s5967_s2] ss:$0 sm:$0xff]  ;;  %v62_v25 = vld [vmem:[%s5965_s0 + $0x118] sm:$0xff] }
  0x20   :  { %141 = vperm.xlu1 %3919, %v34_v27   ;;  %v63_v35 = vld [vmem:[%s5965_s0 + $0x120] sm:$0xff] }
  0x21   :  { %3876 = vmatpush3.bf16.msra.mxu0 %v3875_v29 }
  0x22   :  { %3877 = vmatprep.subr.bf16.mxu0 %v4250_v3 }
  0x23   :  { %672 = vperm.xlu0 %3916, %v35_v32  }
  0x24   :  { %146 = vperm.xlu1 %3919, %v35_v32  }
  0x25   :  { %3879 = vmatpush3.bf16.msra.mxu0 %v3878_v33 }
  0x26   :  { %3880 = vmatprep.subr.bf16.mxu0 %v4250_v3 }
  0x27   :  { %676 = vperm.xlu0 %3916, %v36_v36  }
  0x28   :  { %151 = vperm.xlu1 %3919, %v36_v36  }
  0x29   :  { %3882 = vmatpush3.bf16.msra.mxu0 %v3881_v37 }
  0x2b   :  { %680 = vperm.xlu0 %3916, %v37_v38  }
  0x2c   :  { %156 = vperm.xlu1 %3919, %v37_v38  }
  0x2f   :  { %684 = vperm.xlu0 %3916, %v38_v39  }
  0x30   :  { %161 = vperm.xlu1 %3919, %v38_v39  }
  0x33   :  { %688 = vperm.xlu0 %3916, %v39_v40  }
  0x34   :  { %166 = vperm.xlu1 %3919, %v39_v40  }
  0x37   :  { %692 = vperm.xlu0 %3916, %v40_v41  }
  0x38   :  { %171 = vperm.xlu1 %3919, %v40_v41  }
  0x3b   :  { %696 = vperm.xlu0 %3916, %v41_v42  }
  0x3c   :  { %176 = vperm.xlu1 %3919, %v41_v42  }
  0x3f   :  { %700 = vperm.xlu0 %3916, %v42_v43  }
  0x40   :  { %181 = vperm.xlu1 %3919, %v42_v43   ;;  %v64_v43 = vld [vmem:[%s5965_s0 + $0x128] sm:$0xff] }
  0x43   :  { %704 = vperm.xlu0 %3916, %v43_v44  }
  0x44   :  { %186 = vperm.xlu1 %3919, %v43_v44  }
  0x47   :  { %708 = vperm.xlu0 %3916, %v44_v45  }
  0x48   :  { %191 = vperm.xlu1 %3919, %v44_v45  }
  0x4b   :  { %712 = vperm.xlu0 %3916, %v45_v46  }
  0x4c   :  { %196 = vperm.xlu1 %3919, %v45_v46  }
  0x4f   :  { %716 = vperm.xlu0 %3916, %v46_v47  }
  0x50   :  { %201 = vperm.xlu1 %3919, %v46_v47  }
  0x53   :  { %720 = vperm.xlu0 %3916, %v47_v48  }
  0x54   :  { %206 = vperm.xlu1 %3919, %v47_v48  }
  0x57   :  { %724 = vperm.xlu0 %3916, %v48_v49  }
  0x58   :  { %211 = vperm.xlu1 %3919, %v48_v49  }
  0x5b   :  { %728 = vperm.xlu0 %3916, %v49_v50  }
  0x5c   :  { %216 = vperm.xlu1 %3919, %v49_v50  }
  0x5f   :  { %732 = vperm.xlu0 %3916, %v50_v51  }
  0x60   :  { %221 = vperm.xlu1 %3919, %v50_v51  }
  0x63   :  { %736 = vperm.xlu0 %3916, %v51_v52  }
  0x64   :  { %226 = vperm.xlu1 %3919, %v51_v52   ;;  %v65_v52 = vld [vmem:[%s5965_s0 + $0x130] sm:$0xff] }
  0x67   :  { %740 = vperm.xlu0 %3916, %v52_v53  }
  0x68   :  { %231 = vperm.xlu1 %3919, %v52_v53  }
  0x6b   :  { %744 = vperm.xlu0 %3916, %v53_v54  }
  0x6c   :  { %236 = vperm.xlu1 %3919, %v53_v54  }
  0x6f   :  { %748 = vperm.xlu0 %3916, %v54_v55  }
  0x70   :  { %241 = vperm.xlu1 %3919, %v54_v55  }
  0x73   :  { %752 = vperm.xlu0 %3916, %v55_v56  }
  0x74   :  { %246 = vperm.xlu1 %3919, %v55_v56  }
  0x77   :  { %756 = vperm.xlu0 %3916, %v56_v58  }
  0x78   :  { %251 = vperm.xlu1 %3919, %v56_v58  }
  0x7b   :  { %760 = vperm.xlu0 %3916, %v57_v60  }
  0x7c   :  { %256 = vperm.xlu1 %3919, %v57_v60  }
  0x7f   :  { %764 = vperm.xlu0 %3916, %v58_v62  }
  0x80   :  { %261 = vperm.xlu1 %3919, %v58_v62  }
  0x81   :  { %v107_v4 = vpop.permute.xlu0 %106  ;;  %v112_v5 = vpop.permute.xlu1 %111 }
  0x82   :  { %v483_v6 = vmul.f32 %v4457_v0, %v107_v4  ;;  %v484_v7 = vmul.f32 %v4457_v0, %v112_v5 }
  0x83   :  { %768 = vperm.xlu0 %3916, %v59_v2  }
  0x84   :  { %266 = vperm.xlu1 %3919, %v59_v2   ;;  %v564_v13 = vadd.f32 %v4469_v9, %v483_v6  ;;  %v565_v14 = vadd.f32 %v4469_v9, %v484_v7  ;;  %v66_v2 = vld [vmem:[%s5965_s0 + $0x138] sm:$0xff] }
  0x86   :  { %v645_v11 = vpop.permute.xlu1 %644  ;;  %v641_v12 = vpop.permute.xlu0 %640 }
  0x87   :  { %v944_v15 = vmul.f32 %v4464_v8, %v645_v11  ;;  %v943_v16 = vmul.f32 %v4464_v8, %v641_v12  ;;  %772 = vperm.xlu0 %3916, %v60_v10  }
  0x88   :  { %271 = vperm.xlu1 %3919, %v60_v10  }
  0x89   :  { %v4481_v18 = vadd.f32 %v944_v15, %v565_v14  ;;  %v1018_v19 = vadd.f32 %v943_v16, %v564_v13 }
  0x8a   :  { %v649_v20 = vpop.permute.xlu0 %648 }
  0x8b   :  { %v1169_v21 = vmin.f32 %v4481_v18, 0.0  ;;  %v1168_v22 = vmin.f32 %v1018_v19, 0.0  ;;  %v117_v23 = vpop.permute.xlu1 %116  ;;  %776 = vperm.xlu0 %3916, %v61_v17   ;;  %v945_v29 = vmul.f32 %v4464_v8, %v649_v20  ;;  %vm1093_vm1 = vcmp.gt.f32.partialorder %v1018_v19, 0.0 }
  0x8c   :  { %v485_v24 = vmul.f32 %v4457_v0, %v117_v23  ;;  %276 = vperm.xlu1 %3919, %v61_v17   ;;  %vm1094_vm2 = vcmp.gt.f32.partialorder %v4481_v18, 0.0  ;;  %v67_v17 = vld [vmem:[%s5965_s0 + $0x140] sm:$0xff] }
  0x8d   :  { %v1245_v26 = vmul.f32 1.442695, %v1169_v21  ;;  %v1243_v27 = vmul.f32 1.442695, %v1168_v22 }
  0x8e   :  { %v566_v30 = vadd.f32 %v4469_v9, %v485_v24  ;;  %v653_v31 = vpop.permute.xlu0 %652 }
  0x8f   :  { %v122_v32 = vpop.permute.xlu1 %121  ;;  %780 = vperm.xlu0 %3916, %v62_v25   ;;  %3920 = vpow2.f32 %v1243_v27  ;;  %v946_v36 = vmul.f32 %v4464_v8, %v653_v31 }
  0x90   :  { %v4490_v33 = vadd.f32 %v945_v29, %v566_v30  ;;  %v486_v34 = vmul.f32 %v4457_v0, %v122_v32  ;;  %281 = vperm.xlu1 %3919, %v62_v25   ;;  %3922 = vpow2.f32 %v1245_v26  ;;  %v68_v30 = vld [vmem:[%s5965_s0 + $0x148] sm:$0xff] }
  0x92   :  { %v567_v37 = vadd.f32 %v4469_v9, %v486_v34  ;;  %v657_v38 = vpop.permute.xlu0 %656  ;;  %v1170_v39 = vmin.f32 %v4490_v33, 0.0  ;;  %vm1095_vm3 = vcmp.gt.f32.partialorder %v4490_v33, 0.0 }
  0x93   :  { %v127_v40 = vpop.permute.xlu1 %126  ;;  %784 = vperm.xlu0 %3916, %v63_v35   ;;  %v947_v45 = vmul.f32 %v4464_v8, %v657_v38 }
  0x94   :  { %v4499_v41 = vadd.f32 %v946_v36, %v567_v37  ;;  %v487_v42 = vmul.f32 %v4457_v0, %v127_v40  ;;  %286 = vperm.xlu1 %3919, %v63_v35   ;;  %v1247_v44 = vmul.f32 1.442695, %v1170_v39 }
  0x96   :  { %v568_v46 = vadd.f32 %v4469_v9, %v487_v42  ;;  %v661_v47 = vpop.permute.xlu0 %660  ;;  %3924 = vpow2.f32 %v1247_v44  ;;  %v1171_v48 = vmin.f32 %v4499_v41, 0.0  ;;  %vm1096_vm4 = vcmp.gt.f32.partialorder %v4499_v41, 0.0  ;;  %v69_v42 = vld [vmem:[%s5965_s0 + $0x150] sm:$0xff] }
  0x97   :  { %v132_v49 = vpop.permute.xlu1 %131  ;;  %788 = vperm.xlu0 %3916, %v64_v43   ;;  %v948_v56 = vmul.f32 %v4464_v8, %v661_v47 }
  0x98   :  { %v4508_v50 = vadd.f32 %v947_v45, %v568_v46  ;;  %v488_v51 = vmul.f32 %v4457_v0, %v132_v49  ;;  %291 = vperm.xlu1 %3919, %v64_v43   ;;  %v1249_v53 = vmul.f32 1.442695, %v1171_v48 }
  0x99   :  { %v3921_v54 = vpop.eup %3920 }
  0x9a   :  { %v3923_v55 = vpop.eup %3922  ;;  %v569_v57 = vadd.f32 %v4469_v9, %v488_v51  ;;  %v665_v58 = vpop.permute.xlu0 %664  ;;  %v3011_v59 = vadd.f32 -1.0, %v3921_v54  ;;  %3926 = vpow2.f32 %v1249_v53  ;;  %v1172_v61 = vmin.f32 %v4508_v50, 0.0 }
  0x9b   :  { %v137_v60 = vpop.permute.xlu1 %136  ;;  %792 = vperm.xlu0 %3916, %v65_v52   ;;  %v3012_v4 = vadd.f32 -1.0, %v3923_v55  ;;  %v949_v6 = vmul.f32 %v4464_v8, %v665_v58  ;;  %vm1097_vm5 = vcmp.gt.f32.partialorder %v4508_v50, 0.0  ;;  %v70_v55 = vld [vmem:[%s5965_s0 + $0x158] sm:$0xff] }
  0x9c   :  { %v4517_v62 = vadd.f32 %v948_v56, %v569_v57  ;;  %v489_v63 = vmul.f32 %v4457_v0, %v137_v60  ;;  %296 = vperm.xlu1 %3919, %v65_v52   ;;  %v1468_v1 = vsel %vm1093_vm1, %v1018_v19, %v3011_v59  ;;  %v1251_v5 = vmul.f32 1.442695, %v1172_v61 }
  0x9d   :  { %3378 = vmatmul.mubr.f32.vlgmr.msra.gmra.mrb[0].mxu0 %v1468_v1  ;;  %v1469_v16 = vsel %vm1094_vm2, %v4481_v18, %v3012_v4 }
  0x9e   :  { %v570_v7 = vadd.f32 %v4469_v9, %v489_v63  ;;  %v669_v10 = vpop.permute.xlu0 %668  ;;  %3380 = vmatprep.mubr.msk.f32.mxu0 %vm4252_vm0, %v4253_v28  ;;  %v1173_v11 = vmin.f32 %v4517_v62, 0.0  ;;  %3928 = vpow2.f32 %v1251_v5  ;;  %vm1098_vm6 = vcmp.gt.f32.partialorder %v4517_v62, 0.0  ;;  %v71_v5 = vld [vmem:[%s5965_s0 + $0x160] sm:$0xff] }
  0x9f   :  { %v142_v12 = vpop.permute.xlu1 %141  ;;  %796 = vperm.xlu0 %3916, %v66_v2   ;;  %v950_v21 = vmul.f32 %v4464_v8, %v669_v10 }
  0xa0   :  { %v3925_v13 = vpop.eup %3924  ;;  %v4529_v14 = vadd.f32 %v949_v6, %v570_v7  ;;  %v490_v15 = vmul.f32 %v4457_v0, %v142_v12  ;;  %301 = vperm.xlu1 %3919, %v66_v2   ;;  %v1253_v19 = vmul.f32 1.442695, %v1173_v11 }
  0xa1   :  { %3381 = vmatmul.mubr.f32.gmra.mrb[2].mxu0 %v1469_v16  ;;  %v3013_v20 = vadd.f32 -1.0, %v3925_v13 }
  0xa2   :  { %v571_v22 = vadd.f32 %v4469_v9, %v490_v15  ;;  %v673_v23 = vpop.permute.xlu0 %672  ;;  %3383 = vmatprep.mubr.msk.f32.mxu0 %vm4252_vm0, %v4253_v28  ;;  %3930 = vpow2.f32 %v1253_v19  ;;  %v1174_v18 = vmin.f32 %v4529_v14, 0.0  ;;  %vm1099_vm7 = vcmp.gt.f32.partialorder %v4529_v14, 0.0 }
  0xa3   :  { %v147_v24 = vpop.permute.xlu1 %146  ;;  %800 = vperm.xlu0 %3916, %v67_v17   ;;  %v1470_v25 = vsel %vm1095_vm3, %v4490_v33, %v3013_v20  ;;  %v951_v34 = vmul.f32 %v4464_v8, %v673_v23  ;;  %v72_v20 = vld [vmem:[%s5965_s0 + $0x168] sm:$0xff] }
  0xa4   :  { %v3927_v26 = vpop.eup %3926  ;;  %v4543_v27 = vadd.f32 %v950_v21, %v571_v22  ;;  %v491_v29 = vmul.f32 %v4457_v0, %v147_v24  ;;  %306 = vperm.xlu1 %3919, %v67_v17   ;;  %v1255_v31 = vmul.f32 1.442695, %v1174_v18 }
  0xa5   :  { %3384 = vmatmul.mubr.f32.gmra.mrb[4].mxu0 %v1470_v25  ;;  %v3014_v32 = vadd.f32 -1.0, %v3927_v26 }
  0xa6   :  { %v572_v35 = vadd.f32 %v4469_v9, %v491_v29  ;;  %v677_v33 = vpop.permute.xlu0 %676  ;;  %3386 = vmatprep.mubr.msk.f32.mxu0 %vm4252_vm0, %v4253_v28  ;;  %3932 = vpow2.f32 %v1255_v31  ;;  %v1175_v36 = vmin.f32 %v4543_v27, 0.0  ;;  %vm1100_vm8 = vcmp.gt.f32.partialorder %v4543_v27, 0.0  ;;  %v73_v31 = vld [vmem:[%s5965_s0 + $0x170] sm:$0xff] }
  0xa7   :  { %v152_v37 = vpop.permute.xlu1 %151  ;;  %804 = vperm.xlu0 %3916, %v68_v30   ;;  %v1471_v38 = vsel %vm1096_vm4, %v4499_v41, %v3014_v32  ;;  %v952_v45 = vmul.f32 %v4464_v8, %v677_v33 }
  0xa8   :  { %v4556_v39 = vadd.f32 %v951_v34, %v572_v35  ;;  %v492_v40 = vmul.f32 %v4457_v0, %v152_v37  ;;  %311 = vperm.xlu1 %3919, %v68_v30   ;;  %v1257_v43 = vmul.f32 1.442695, %v1175_v36  ;;  %v3929_v44 = vpop.eup %3928 }
  0xa9   :  { %3387 = vmatmul.mubr.f32.gmra.mrb[6].mxu0 %v1471_v38  ;;  %v3015_v41 = vadd.f32 -1.0, %v3929_v44 }
  0xaa   :  { %v573_v46 = vadd.f32 %v4469_v9, %v492_v40  ;;  %v681_v47 = vpop.permute.xlu0 %680  ;;  %3389 = vmatprep.mubr.msk.f32.mxu0 %vm4252_vm0, %v4253_v28  ;;  %3934 = vpow2.f32 %v1257_v43  ;;  %v1176_v49 = vmin.f32 %v4556_v39, 0.0  ;;  %vm1101_vm9 = vcmp.gt.f32.partialorder %v4556_v39, 0.0 }
  0xab   :  { %v157_v48 = vpop.permute.xlu1 %156  ;;  %808 = vperm.xlu0 %3916, %v69_v42   ;;  %v1472_v54 = vsel %vm1097_vm5, %v4508_v50, %v3015_v41  ;;  %v953_v58 = vmul.f32 %v4464_v8, %v681_v47 }
  0xac   :  { %v3931_v51 = vpop.eup %3930  ;;  %v4568_v52 = vadd.f32 %v952_v45, %v573_v46  ;;  %v493_v53 = vmul.f32 %v4457_v0, %v157_v48  ;;  %316 = vperm.xlu1 %3919, %v69_v42   ;;  %v1259_v57 = vmul.f32 1.442695, %v1176_v49  ;;  %v74_v45 = vld [vmem:[%s5965_s0 + $0x178] sm:$0xff] }
  0xad   :  { %3390 = vmatmul.mubr.f32.gmra.mrb[8].mxu0 %v1472_v54  ;;  %v3016_v56 = vadd.f32 -1.0, %v3931_v51 }
  0xae   :  { %v574_v59 = vadd.f32 %v4469_v9, %v493_v53  ;;  %v685_v60 = vpop.permute.xlu0 %684  ;;  %3392 = vmatprep.mubr.msk.f32.mxu0 %vm4252_vm0, %v4253_v28  ;;  %v1177_v61 = vmin.f32 %v4568_v52, 0.0  ;;  %3936 = vpow2.f32 %v1259_v57  ;;  %vm1102_vm10 = vcmp.gt.f32.partialorder %v4568_v52, 0.0  ;;  %v75_v57 = vld [vmem:[%s5965_s0 + $0x180] sm:$0xff] }
  0xaf   :  { %v162_v50 = vpop.permute.xlu1 %161  ;;  %812 = vperm.xlu0 %3916, %v70_v55   ;;  %v1473_v63 = vsel %vm1098_vm6, %v4517_v62, %v3016_v56  ;;  %v954_v10 = vmul.f32 %v4464_v8, %v685_v60 }
  0xb0   :  { %v3933_v1 = vpop.eup %3932  ;;  %v4582_v2 = vadd.f32 %v953_v58, %v574_v59  ;;  %v494_v4 = vmul.f32 %v4457_v0, %v162_v50  ;;  %321 = vperm.xlu1 %3919, %v70_v55   ;;  %v1261_v6 = vmul.f32 1.442695, %v1177_v61 }
  0xb1   :  { %3393 = vmatmul.mubr.f32.gmra.mrb[10].mxu0 %v1473_v63  ;;  %v3017_v7 = vadd.f32 -1.0, %v3933_v1 }
  0xb2   :  { %v575_v62 = vadd.f32 %v4469_v9, %v494_v4  ;;  %v689_v11 = vpop.permute.xlu0 %688  ;;  %3395 = vmatprep.mubr.msk.f32.mxu0 %vm4252_vm0, %v4253_v28  ;;  %3938 = vpow2.f32 %v1261_v6  ;;  %v1178_v12 = vmin.f32 %v4582_v2, 0.0  ;;  %vm1103_vm11 = vcmp.gt.f32.partialorder %v4582_v2, 0.0 }
  0xb3   :  { %v167_v13 = vpop.permute.xlu1 %166  ;;  %816 = vperm.xlu0 %3916, %v71_v5   ;;  %v1474_v15 = vsel %vm1099_vm7, %v4529_v14, %v3017_v7  ;;  %v955_v23 = vmul.f32 %v4464_v8, %v689_v11  ;;  %v76_v7 = vld [vmem:[%s5965_s0 + $0x188] sm:$0xff] }
  0xb4   :  { %v3935_v16 = vpop.eup %3934  ;;  %v4595_v17 = vadd.f32 %v954_v10, %v575_v62  ;;  %v495_v19 = vmul.f32 %v4457_v0, %v167_v13  ;;  %326 = vperm.xlu1 %3919, %v71_v5   ;;  %v1263_v21 = vmul.f32 1.442695, %v1178_v12 }
  0xb5   :  { %3396 = vmatmul.mubr.f32.gmra.mrb[12].mxu0 %v1474_v15  ;;  %v3018_v22 = vadd.f32 -1.0, %v3935_v16 }
  0xb6   :  { %v576_v18 = vadd.f32 %v4469_v9, %v495_v19  ;;  %v693_v14 = vpop.permute.xlu0 %692  ;;  %3398 = vmatprep.mubr.msk.f32.mxu0 %vm4252_vm0, %v4253_v28  ;;  %3940 = vpow2.f32 %v1263_v21  ;;  %v1179_v24 = vmin.f32 %v4595_v17, 0.0  ;;  %vm1104_vm12 = vcmp.gt.f32.partialorder %v4595_v17, 0.0  ;;  %v77_v21 = vld [vmem:[%s5965_s0 + $0x190] sm:$0xff] }
  0xb7   :  { %v172_v25 = vpop.permute.xlu1 %171  ;;  %820 = vperm.xlu0 %3916, %v72_v20   ;;  %v1475_v26 = vsel %vm1100_vm8, %v4543_v27, %v3018_v22  ;;  %v956_v35 = vmul.f32 %v4464_v8, %v693_v14 }
  0xb8   :  { %v4608_v29 = vadd.f32 %v955_v23, %v576_v18  ;;  %v496_v30 = vmul.f32 %v4457_v0, %v172_v25  ;;  %331 = vperm.xlu1 %3919, %v72_v20   ;;  %v1265_v32 = vmul.f32 1.442695, %v1179_v24  ;;  %v3937_v34 = vpop.eup %3936 }
  0xb9   :  { %3399 = vmatmul.mubr.f32.gmra.mrb[14].mxu0 %v1475_v26  ;;  %v3019_v27 = vadd.f32 -1.0, %v3937_v34 }
  0xba   :  { %v577_v33 = vadd.f32 %v4469_v9, %v496_v30  ;;  %v697_v36 = vpop.permute.xlu0 %696  ;;  %3401 = vmatprep.mubr.msk.f32.mxu0 %vm4252_vm0, %v4253_v28  ;;  %3942 = vpow2.f32 %v1265_v32  ;;  %v1180_v38 = vmin.f32 %v4608_v29, 0.0  ;;  %vm1105_vm13 = vcmp.gt.f32.partialorder %v4608_v29, 0.0 }
  0xbb   :  { %v177_v37 = vpop.permute.xlu1 %176  ;;  %824 = vperm.xlu0 %3916, %v73_v31   ;;  %v1476_v44 = vsel %vm1101_vm9, %v4556_v39, %v3019_v27  ;;  %v957_v41 = vmul.f32 %v4464_v8, %v697_v36 }
  0xbc   :  { %v3939_v40 = vpop.eup %3938  ;;  %v4620_v42 = vadd.f32 %v956_v35, %v577_v33  ;;  %v497_v43 = vmul.f32 %v4457_v0, %v177_v37  ;;  %336 = vperm.xlu1 %3919, %v73_v31   ;;  %v1267_v47 = vmul.f32 1.442695, %v1180_v38  ;;  %v78_v35 = vld [vmem:[%s5965_s0 + $0x198] sm:$0xff] }
  0xbd   :  { %3402 = vmatmul.mubr.f32.gmra.mrb[16].mxu0 %v1476_v44  ;;  %v3020_v46 = vadd.f32 -1.0, %v3939_v40 }
  0xbe   :  { %v578_v48 = vadd.f32 %v4469_v9, %v497_v43  ;;  %v701_v49 = vpop.permute.xlu0 %700  ;;  %3404 = vmatprep.mubr.msk.f32.mxu0 %vm4252_vm0, %v4253_v28  ;;  %v1181_v51 = vmin.f32 %v4620_v42, 0.0  ;;  %3944 = vpow2.f32 %v1267_v47  ;;  %vm1106_vm14 = vcmp.gt.f32.partialorder %v4620_v42, 0.0  ;;  %v79_v47 = vld [vmem:[%s5965_s0 + $0x1a0] sm:$0xff] }
  0xbf   :  { %v182_v39 = vpop.permute.xlu1 %181  ;;  %828 = vperm.xlu0 %3916, %v74_v45   ;;  %v1477_v53 = vsel %vm1102_vm10, %v4568_v52, %v3020_v46  ;;  %v958_v60 = vmul.f32 %v4464_v8, %v701_v49 }
  0xc0   :  { %v3941_v54 = vpop.eup %3940  ;;  %v4634_v55 = vadd.f32 %v957_v41, %v578_v48  ;;  %v498_v56 = vmul.f32 %v4457_v0, %v182_v39  ;;  %341 = vperm.xlu1 %3919, %v74_v45   ;;  %v1269_v58 = vmul.f32 1.442695, %v1181_v51 }
  0xc1   :  { %3405 = vmatmul.mubr.f32.gmra.mrb[18].mxu0 %v1477_v53  ;;  %v3021_v59 = vadd.f32 -1.0, %v3941_v54 }
  0xc2   :  { %v579_v52 = vadd.f32 %v4469_v9, %v498_v56  ;;  %v705_v61 = vpop.permute.xlu0 %704  ;;  %3407 = vmatprep.mubr.msk.f32.mxu0 %vm4252_vm0, %v4253_v28  ;;  %3946 = vpow2.f32 %v1269_v58  ;;  %v1182_v50 = vmin.f32 %v4634_v55, 0.0  ;;  %vm1107_vm15 = vcmp.gt.f32.partialorder %v4634_v55, 0.0 }
  0xc3   :  { %v187_v63 = vpop.permute.xlu1 %186  ;;  %832 = vperm.xlu0 %3916, %v75_v57   ;;  %v1478_v1 = vsel %vm1103_vm11, %v4582_v2, %v3021_v59  ;;  %v959_v11 = vmul.f32 %v4464_v8, %v705_v61  ;;  %v80_v59 = vld [vmem:[%s5965_s0 + $0x1a8] sm:$0xff] }
  0xc4   :  { %v3943_v4 = vpop.eup %3942  ;;  %v4647_v5 = vadd.f32 %v958_v60, %v579_v52  ;;  %v499_v6 = vmul.f32 %v4457_v0, %v187_v63  ;;  %346 = vperm.xlu1 %3919, %v75_v57   ;;  %v1271_v10 = vmul.f32 1.442695, %v1182_v50 }
  0xc5   :  { %3408 = vmatmul.mubr.f32.gmra.mrb[20].mxu0 %v1478_v1  ;;  %v3022_v62 = vadd.f32 -1.0, %v3943_v4 }
  0xc6   :  { %v580_v12 = vadd.f32 %v4469_v9, %v499_v6  ;;  %v709_v2 = vpop.permute.xlu0 %708  ;;  %3410 = vmatprep.mubr.msk.f32.mxu0 %vm4252_vm0, %v4253_v28  ;;  %3948 = vpow2.f32 %v1271_v10  ;;  %v1183_v13 = vmin.f32 %v4647_v5, 0.0  ;;  %vm1108_vm1 = vcmp.gt.f32.partialorder %v4647_v5, 0.0  ;;  %v81_v10 = vld [vmem:[%s5965_s0 + $0x1b0] sm:$0xff] }
  0xc7   :  { %v192_v15 = vpop.permute.xlu1 %191  ;;  %836 = vperm.xlu0 %3916, %v76_v7   ;;  %v1479_v16 = vsel %vm1104_vm12, %v4595_v17, %v3022_v62  ;;  %v960_v18 = vmul.f32 %v4464_v8, %v709_v2 }
  0xc8   :  { %v4660_v19 = vadd.f32 %v959_v11, %v580_v12  ;;  %v500_v20 = vmul.f32 %v4457_v0, %v192_v15  ;;  %351 = vperm.xlu1 %3919, %v76_v7   ;;  %v1273_v22 = vmul.f32 1.442695, %v1183_v13  ;;  %v3945_v23 = vpop.eup %3944 }
  0xc9   :  { %3411 = vmatmul.mubr.f32.gmra.mrb[22].mxu0 %v1479_v16  ;;  %v3023_v17 = vadd.f32 -1.0, %v3945_v23 }
  0xca   :  { %v581_v14 = vadd.f32 %v4469_v9, %v500_v20  ;;  %v713_v24 = vpop.permute.xlu0 %712  ;;  %3413 = vmatprep.mubr.msk.f32.mxu0 %vm4252_vm0, %v4253_v28  ;;  %3950 = vpow2.f32 %v1273_v22  ;;  %v1184_v26 = vmin.f32 %v4660_v19, 0.0  ;;  %vm1109_vm2 = vcmp.gt.f32.partialorder %v4660_v19, 0.0 }
  0xcb   :  { %v197_v25 = vpop.permute.xlu1 %196  ;;  %840 = vperm.xlu0 %3916, %v77_v21   ;;  %v1480_v34 = vsel %vm1105_vm13, %v4608_v29, %v3023_v17  ;;  %v961_v27 = vmul.f32 %v4464_v8, %v713_v24 }
  0xcc   :  { %v3947_v30 = vpop.eup %3946  ;;  %v4672_v31 = vadd.f32 %v960_v18, %v581_v14  ;;  %v501_v32 = vmul.f32 %v4457_v0, %v197_v25  ;;  %356 = vperm.xlu1 %3919, %v77_v21   ;;  %v1275_v36 = vmul.f32 1.442695, %v1184_v26  ;;  %v82_v18 = vld [vmem:[%s5965_s0 + $0x1b8] sm:$0xff] }
  0xcd   :  { %3414 = vmatmul.mubr.f32.gmra.mrb[24].mxu0 %v1480_v34  ;;  %v3024_v33 = vadd.f32 -1.0, %v3947_v30 }
  0xce   :  { %v582_v37 = vadd.f32 %v4469_v9, %v501_v32  ;;  %v717_v38 = vpop.permute.xlu0 %716  ;;  %3416 = vmatprep.mubr.msk.f32.mxu0 %vm4252_vm0, %v4253_v28  ;;  %v1185_v40 = vmin.f32 %v4672_v31, 0.0  ;;  %3952 = vpow2.f32 %v1275_v36  ;;  %vm1110_vm3 = vcmp.gt.f32.partialorder %v4672_v31, 0.0  ;;  %v83_v36 = vld [vmem:[%s5965_s0 + $0x1c0] sm:$0xff] }
  0xcf   :  { %v202_v29 = vpop.permute.xlu1 %201  ;;  %844 = vperm.xlu0 %3916, %v78_v35   ;;  %v1481_v43 = vsel %vm1106_vm14, %v4620_v42, %v3024_v33  ;;  %v962_v49 = vmul.f32 %v4464_v8, %v717_v38 }
  0xd0   :  { %v3949_v44 = vpop.eup %3948  ;;  %v4686_v45 = vadd.f32 %v961_v27, %v582_v37  ;;  %v502_v46 = vmul.f32 %v4457_v0, %v202_v29  ;;  %361 = vperm.xlu1 %3919, %v78_v35   ;;  %v1277_v41 = vmul.f32 1.442695, %v1185_v40 }
  0xd1   :  { %3417 = vmatmul.mubr.f32.gmra.mrb[26].mxu0 %v1481_v43  ;;  %v3025_v48 = vadd.f32 -1.0, %v3949_v44 }
  0xd2   :  { %v583_v42 = vadd.f32 %v4469_v9, %v502_v46  ;;  %v721_v51 = vpop.permute.xlu0 %720  ;;  %3419 = vmatprep.mubr.msk.f32.mxu0 %vm4252_vm0, %v4253_v28  ;;  %3954 = vpow2.f32 %v1277_v41  ;;  %v1186_v39 = vmin.f32 %v4686_v45, 0.0  ;;  %vm1111_vm4 = vcmp.gt.f32.partialorder %v4686_v45, 0.0 }
  0xd3   :  { %v207_v53 = vpop.permute.xlu1 %206  ;;  %848 = vperm.xlu0 %3916, %v79_v47   ;;  %v1482_v54 = vsel %vm1107_vm15, %v4634_v55, %v3025_v48  ;;  %v963_v61 = vmul.f32 %v4464_v8, %v721_v51  ;;  %v84_v48 = vld [vmem:[%s5965_s0 + $0x1c8] sm:$0xff] }
  0xd4   :  { %v3951_v56 = vpop.eup %3950  ;;  %v4699_v57 = vadd.f32 %v962_v49, %v583_v42  ;;  %v503_v58 = vmul.f32 %v4457_v0, %v207_v53  ;;  %366 = vperm.xlu1 %3919, %v79_v47   ;;  %v1279_v60 = vmul.f32 1.442695, %v1186_v39  ;;  %v2456_v42 = vld [vmem:[%s5970_s5] sm:$0xff]  ;;  %v2457_v51 = vld [vmem:[%s5970_s5 + $0x8] sm:$0xff] }
  0xd5   :  { %3420 = vmatmul.mubr.f32.gmra.mrb[28].mxu0 %v1482_v54  ;;  %v3026_v52 = vadd.f32 -1.0, %v3951_v56  ;;  %v3884_v39 = vpack.c.bf16 %v2457_v51, %v2456_v42  ;;  %v88_v51 = vld [vmem:[%s5965_s0 + $0x1e8] sm:$0xff] }
  0xd6   :  { %v584_v50 = vadd.f32 %v4469_v9, %v503_v58  ;;  %v725_v55 = vpop.permute.xlu0 %724  ;;  %3422 = vmatprep.mubr.msk.f32.mxu0 %vm4252_vm0, %v4253_v28  ;;  %3956 = vpow2.f32 %v1279_v60  ;;  %v1187_v63 = vmin.f32 %v4699_v57, 0.0  ;;  %vm1112_vm5 = vcmp.gt.f32.partialorder %v4699_v57, 0.0 }
  0xd7   :  { %v212_v1 = vpop.permute.xlu1 %211  ;;  %852 = vperm.xlu0 %3916, %v80_v59   ;;  %v1483_v4 = vsel %vm1108_vm1, %v4647_v5, %v3026_v52  ;;  %v964_v12 = vmul.f32 %v4464_v8, %v725_v55  ;;  %3885 = vmatpush3.bf16.msra.mxu1 %v3884_v39  ;;  %v2464_v39 = vld [vmem:[%s5970_s5 + $0x40] sm:$0xff] }
  0xd8   :  { %v4712_v6 = vadd.f32 %v963_v61, %v584_v50  ;;  %v504_v7 = vmul.f32 %v4457_v0, %v212_v1  ;;  %371 = vperm.xlu1 %3919, %v80_v59   ;;  %v1281_v62 = vmul.f32 1.442695, %v1187_v63  ;;  %v3953_v11 = vpop.eup %3952  ;;  %v85_v50 = vld [vmem:[%s5965_s0 + $0x1d0] sm:$0xff]  ;;  %3886 = vmatprep.subr.bf16.mxu1 %v4250_v3 }
  0xd9   :  { %3423 = vmatmul.mubr.f32.gmra.mrb[30].mxu0 %v1483_v4  ;;  %v3027_v5 = vadd.f32 -1.0, %v3953_v11  ;;  %v2458_v63 = vld [vmem:[%s5970_s5 + $0x10] sm:$0xff] }
  0xda   :  { %v585_v2 = vadd.f32 %v4469_v9, %v504_v7  ;;  %v729_v13 = vpop.permute.xlu0 %728  ;;  %3425 = vmatprep.mubr.msk.f32.mxu0 %vm4252_vm0, %v4253_v28  ;;  %3958 = vpow2.f32 %v1281_v62  ;;  %v1188_v16 = vmin.f32 %v4712_v6, 0.0  ;;  %vm1113_vm6 = vcmp.gt.f32.partialorder %v4712_v6, 0.0 }
  0xdb   :  { %v217_v15 = vpop.permute.xlu1 %216  ;;  %856 = vperm.xlu0 %3916, %v81_v10   ;;  %v1484_v23 = vsel %vm1109_vm2, %v4660_v19, %v3027_v5  ;;  %v965_v17 = vmul.f32 %v4464_v8, %v729_v13 }
  0xdc   :  { %v3955_v20 = vpop.eup %3954  ;;  %v4724_v21 = vadd.f32 %v964_v12, %v585_v2  ;;  %v505_v22 = vmul.f32 %v4457_v0, %v217_v15  ;;  %376 = vperm.xlu1 %3919, %v81_v10   ;;  %v1283_v24 = vmul.f32 1.442695, %v1188_v16 }
  0xdd   :  { %3426 = vmatmul.mubr.f32.gmra.mrb[32].mxu0 %v1484_v23  ;;  %v3028_v14 = vadd.f32 -1.0, %v3955_v20  ;;  %v86_v20 = vld [vmem:[%s5965_s0 + $0x1d8] sm:$0xff]  ;;  %v2461_v23 = vld [vmem:[%s5970_s5 + $0x28] sm:$0xff] }
  0xde   :  { %v586_v25 = vadd.f32 %v4469_v9, %v505_v22  ;;  %v733_v26 = vpop.permute.xlu0 %732  ;;  %3428 = vmatprep.mubr.msk.f32.mxu0 %vm4252_vm0, %v4253_v28  ;;  %v1189_v30 = vmin.f32 %v4724_v21, 0.0  ;;  %3960 = vpow2.f32 %v1283_v24  ;;  %v2460_v22 = vld [vmem:[%s5970_s5 + $0x20] sm:$0xff]  ;;  %vm1114_vm7 = vcmp.gt.f32.partialorder %v4724_v21, 0.0 }
  0xdf   :  { %v222_v19 = vpop.permute.xlu1 %221  ;;  %860 = vperm.xlu0 %3916, %v82_v18   ;;  %v1485_v32 = vsel %vm1110_vm3, %v4672_v31, %v3028_v14  ;;  %v966_v38 = vmul.f32 %v4464_v8, %v733_v26  ;;  %v3890_v24 = vpack.c.bf16 %v2461_v23, %v2460_v22 }
  0xe0   :  { %v3957_v34 = vpop.eup %3956  ;;  %v4738_v35 = vadd.f32 %v965_v17, %v586_v25  ;;  %v506_v33 = vmul.f32 %v4457_v0, %v222_v19  ;;  %381 = vperm.xlu1 %3919, %v82_v18   ;;  %v1285_v27 = vmul.f32 1.442695, %v1189_v30 }
  0xe1   :  { %3429 = vmatmul.mubr.f32.gmra.mrb[34].mxu0 %v1485_v32  ;;  %v3029_v37 = vadd.f32 -1.0, %v3957_v34 }
  0xe2   :  { %v587_v31 = vadd.f32 %v4469_v9, %v506_v33  ;;  %v737_v40 = vpop.permute.xlu0 %736  ;;  %3431 = vmatprep.mubr.msk.f32.mxu0 %vm4252_vm0, %v4253_v28  ;;  %3962 = vpow2.f32 %v1285_v27  ;;  %v1190_v29 = vmin.f32 %v4738_v35, 0.0  ;;  %vm1115_vm8 = vcmp.gt.f32.partialorder %v4738_v35, 0.0 }
  0xe3   :  { %v227_v43 = vpop.permute.xlu1 %226  ;;  %864 = vperm.xlu0 %3916, %v83_v36   ;;  %v1486_v44 = vsel %vm1111_vm4, %v4686_v45, %v3029_v37  ;;  %v967_v53 = vmul.f32 %v4464_v8, %v737_v40  ;;  %v2462_v37 = vld [vmem:[%s5970_s5 + $0x30] sm:$0xff] }
  0xe4   :  { %v3959_v46 = vpop.eup %3958  ;;  %v4751_v47 = vadd.f32 %v966_v38, %v587_v31  ;;  %v507_v41 = vmul.f32 %v4457_v0, %v227_v43  ;;  %386 = vperm.xlu1 %3919, %v83_v36   ;;  %v1287_v49 = vmul.f32 1.442695, %v1190_v29  ;;  %v87_v36 = vld [vmem:[%s5965_s0 + $0x1e0] sm:$0xff] }
  0xe5   :  { %3432 = vmatmul.mubr.f32.gmra.mrb[36].mxu0 %v1486_v44  ;;  %v3030_v45 = vadd.f32 -1.0, %v3959_v46 }
  0xe6   :  { %v588_v54 = vadd.f32 %v4469_v9, %v507_v41  ;;  %v741_v56 = vpop.permute.xlu0 %740  ;;  %3434 = vmatprep.mubr.msk.f32.mxu0 %vm4252_vm0, %v4253_v28  ;;  %3964 = vpow2.f32 %v1287_v49  ;;  %v1191_v58 = vmin.f32 %v4751_v47, 0.0  ;;  %vm1116_vm9 = vcmp.gt.f32.partialorder %v4751_v47, 0.0 }
  0xe7   :  { %v232_v59 = vpop.permute.xlu1 %231  ;;  %868 = vperm.xlu0 %3916, %v84_v48   ;;  %v1487_v60 = vsel %vm1112_vm5, %v4699_v57, %v3030_v45  ;;  %v2459_v57 = vld [vmem:[%s5970_s5 + $0x18] sm:$0xff]  ;;  %v968_v7 = vmul.f32 %v4464_v8, %v741_v56 }
  0xe8   :  { %v4770_v52 = vadd.f32 %v967_v53, %v588_v54  ;;  %v508_v61 = vmul.f32 %v4457_v0, %v232_v59  ;;  %391 = vperm.xlu1 %3919, %v84_v48   ;;  %v1289_v55 = vmul.f32 1.442695, %v1191_v58  ;;  %v3961_v1 = vpop.eup %3960  ;;  %v3887_v4 = vpack.c.bf16 %v2459_v57, %v2458_v63  ;;  %v89_v57 = vld [vmem:[%s5965_s0 + $0x1f0] sm:$0xff] }
  0xe9   :  { %3435 = vmatmul.mubr.f32.gmra.mrb[38].mxu0 %v1487_v60  ;;  %v3031_v11 = vadd.f32 -1.0, %v3961_v1  ;;  %v2466_v1 = vld [vmem:[%s5970_s5 + $0x50] sm:$0xff] }
  0xea   :  { %v589_v10 = vadd.f32 %v4469_v9, %v508_v61  ;;  %v745_v62 = vpop.permute.xlu0 %744  ;;  %3437 = vmatprep.mubr.msk.f32.mxu0 %vm4252_vm0, %v4253_v28  ;;  %3966 = vpow2.f32 %v1289_v55  ;;  %v1192_v2 = vmin.f32 %v4770_v52, 0.0  ;;  %3888 = vmatpush3.bf16.msra.mxu1 %v3887_v4  ;;  %vm1117_vm10 = vcmp.gt.f32.partialorder %v4770_v52, 0.0 }
  0xeb   :  { %v237_v12 = vpop.permute.xlu1 %236  ;;  %872 = vperm.xlu0 %3916, %v85_v50   ;;  %v1488_v16 = vsel %vm1113_vm6, %v4712_v6, %v3031_v11  ;;  %3889 = vmatprep.subr.bf16.mxu1 %v4250_v3  ;;  %v969_v6 = vmul.f32 %v4464_v8, %v745_v62  ;;  %v4868_v11 = vld [vmem:[%s5967_s2] ss:$0 sm:$0xff] }
  0xec   :  { %v3963_v13 = vpop.eup %3962  ;;  %v4789_v5 = vadd.f32 %v968_v7, %v589_v10  ;;  %v509_v15 = vmul.f32 %v4457_v0, %v237_v12  ;;  %396 = vperm.xlu1 %3919, %v85_v50   ;;  %v1291_v14 = vmul.f32 1.442695, %v1192_v2 }
  0xed   :  { %3438 = vmatmul.mubr.f32.gmra.mrb[40].mxu0 %v1488_v16  ;;  %v3032_v18 = vadd.f32 -1.0, %v3963_v13 }
  0xee   :  { %v590_v17 = vadd.f32 %v4469_v9, %v509_v15  ;;  %v749_v25 = vpop.permute.xlu0 %748  ;;  %3440 = vmatprep.mubr.msk.f32.mxu0 %vm4252_vm0, %v4253_v28  ;;  %v1193_v26 = vmin.f32 %v4789_v5, 0.0  ;;  %3968 = vpow2.f32 %v1291_v14  ;;  %3891 = vmatpush3.bf16.msra.mxu1 %v3890_v24  ;;  %v2468_v24 = vld [vmem:[%s5970_s5 + $0x60] sm:$0xff]  ;;  %vm1118_vm11 = vcmp.gt.f32.partialorder %v4789_v5, 0.0 }
  0xef   :  { %v242_v30 = vpop.permute.xlu1 %241  ;;  %876 = vperm.xlu0 %3916, %v86_v20   ;;  %v1489_v19 = vsel %vm1114_vm7, %v4724_v21, %v3032_v18  ;;  %3892 = vmatprep.subr.bf16.mxu1 %v4250_v3  ;;  %v2463_v21 = vld [vmem:[%s5970_s5 + $0x38] sm:$0xff]  ;;  %v970_v29 = vmul.f32 %v4464_v8, %v749_v25 }
  0xf0   :  { %v3965_v32 = vpop.eup %3964  ;;  %v4810_v34 = vadd.f32 %v969_v6, %v590_v17  ;;  %v510_v33 = vmul.f32 %v4457_v0, %v242_v30  ;;  %401 = vperm.xlu1 %3919, %v86_v20   ;;  %v1293_v27 = vmul.f32 1.442695, %v1193_v26  ;;  %v3893_v31 = vpack.c.bf16 %v2463_v21, %v2462_v37  ;;  %v90_v18 = vld [vmem:[%s5965_s0 + $0x1f8] sm:$0xff]  ;;  %v2469_v6 = vld [vmem:[%s5970_s5 + $0x68] sm:$0xff]  ;;  %v91_v21 = vld [vmem:[%s5965_s0 + $0x200] sm:$0xff] }
  0xf1   :  { %3441 = vmatmul.mubr.f32.gmra.mrb[42].mxu0 %v1489_v19  ;;  %v3033_v38 = vadd.f32 -1.0, %v3965_v32 }
  0xf2   :  { %v1194_v40 = vmin.f32 %v4810_v34, 0.0  ;;  %v591_v43 = vadd.f32 %v4469_v9, %v510_v33  ;;  %v753_v44 = vpop.permute.xlu0 %752  ;;  %3443 = vmatprep.mubr.msk.f32.mxu0 %vm4252_vm0, %v4253_v28  ;;  %3970 = vpow2.f32 %v1293_v27  ;;  %3894 = vmatpush3.bf16.msra.mxu1 %v3893_v31  ;;  %v2470_v31 = vld [vmem:[%s5970_s5 + $0x70] sm:$0xff]  ;;  %vm1119_vm12 = vcmp.gt.f32.partialorder %v4810_v34, 0.0 }
  0xf3   :  { %v247_v46 = vpop.permute.xlu1 %246  ;;  %880 = vperm.xlu0 %3916, %v87_v36   ;;  %v1490_v41 = vsel %vm1115_vm8, %v4738_v35, %v3033_v38  ;;  %3895 = vmatprep.subr.bf16.mxu1 %v4250_v3  ;;  %v2465_v35 = vld [vmem:[%s5970_s5 + $0x48] sm:$0xff]  ;;  %v971_v58 = vmul.f32 %v4464_v8, %v753_v44 }
  0xf4   :  { %v3967_v48 = vpop.eup %3966  ;;  %v4830_v49 = vadd.f32 %v970_v29, %v591_v43  ;;  %v511_v42 = vmul.f32 %v4457_v0, %v247_v46  ;;  %406 = vperm.xlu1 %3919, %v87_v36   ;;  %v1295_v45 = vmul.f32 1.442695, %v1194_v40  ;;  %v3896_v54 = vpack.c.bf16 %v2465_v35, %v2464_v39  ;;  %v92_v39 = vld [vmem:[%s5965_s0 + $0x208] sm:$0xff] }
  0xf5   :  { %3444 = vmatmul.mubr.f32.gmra.mrb[44].mxu0 %v1490_v41  ;;  %v3034_v53 = vadd.f32 -1.0, %v3967_v48 }
  0xf6   :  { %v1195_v56 = vmin.f32 %v4830_v49, 0.0  ;;  %v592_v59 = vadd.f32 %v4469_v9, %v511_v42  ;;  %v757_v60 = vpop.permute.xlu0 %756  ;;  %3446 = vmatprep.mubr.msk.f32.mxu0 %vm4252_vm0, %v4253_v28  ;;  %3972 = vpow2.f32 %v1295_v45  ;;  %3897 = vmatpush3.bf16.msra.mxu1 %v3896_v54  ;;  %vm1120_vm13 = vcmp.gt.f32.partialorder %v4830_v49, 0.0 }
  0xf7   :  { %v252_v61 = vpop.permute.xlu1 %251  ;;  %884 = vperm.xlu0 %3916, %v88_v51   ;;  %v1491_v50 = vsel %vm1116_vm9, %v4751_v47, %v3034_v53  ;;  %3898 = vmatprep.subr.bf16.mxu1 %v4250_v3  ;;  %v2467_v47 = vld [vmem:[%s5970_s5 + $0x58] sm:$0xff]  ;;  %v972_v7 = vmul.f32 %v4464_v8, %v757_v60 }
  0xf8   :  { %v4850_v55 = vadd.f32 %v971_v58, %v592_v59  ;;  %v512_v63 = vmul.f32 %v4457_v0, %v252_v61  ;;  %411 = vperm.xlu1 %3919, %v88_v51   ;;  %v1297_v9 = vmul.f32 1.442695, %v1195_v56  ;;  %v3969_v4 = vpop.eup %3968  ;;  %v3899_v10 = vpack.c.bf16 %v2467_v47, %v2466_v1 }
  0xf9   :  { %3447 = vmatmul.mubr.f32.gmra.mrb[46].mxu0 %v1491_v50  ;;  %v3035_v13 = vadd.f32 -1.0, %v3969_v4 }
  0xfa   :  { %v1196_v62 = vmin.f32 %v4850_v55, 0.0  ;;  %v593_v12 = vadd.f32 %v4868_v11, %v512_v63  ;;  %v761_v2 = vpop.permute.xlu0 %760  ;;  %3449 = vmatprep.mubr.msk.f32.mxu0 %vm4252_vm0, %v4253_v28  ;;  %3974 = vpow2.f32 %v1297_v9  ;;  %3900 = vmatpush3.bf16.msra.mxu1 %v3899_v10  ;;  %vm1121_vm14 = vcmp.gt.f32.partialorder %v4850_v55, 0.0 }
  0xfb   :  { %v257_v15 = vpop.permute.xlu1 %256  ;;  %888 = vperm.xlu0 %3916, %v89_v57   ;;  %v1492_v23 = vsel %vm1117_vm10, %v4770_v52, %v3035_v13  ;;  %3901 = vmatprep.subr.bf16.mxu1 %v4250_v3  ;;  %v3902_v52 = vpack.c.bf16 %v2469_v6, %v2468_v24  ;;  %v973_v26 = vmul.f32 %v4464_v8, %v761_v2 }
  0xfc   :  { %v3971_v16 = vpop.eup %3970  ;;  %v4874_v20 = vadd.f32 %v972_v7, %v593_v12  ;;  %v513_v22 = vmul.f32 %v4457_v0, %v257_v15  ;;  %416 = vperm.xlu1 %3919, %v89_v57   ;;  %v1299_v14 = vmul.f32 1.442695, %v1196_v62  ;;  %v93_v57 = vld [vmem:[%s5965_s0 + $0x210] sm:$0xff]  ;;  %v94_v15 = vld [vmem:[%s5965_s0 + $0x218] sm:$0xff] }
  0xfd   :  { %3450 = vmatmul.mubr.f32.gmra.mrb[48].mxu0 %v1492_v23  ;;  %v3036_v17 = vadd.f32 -1.0, %v3971_v16 }
  0xfe   :  { %v1197_v25 = vmin.f32 %v4874_v20, 0.0  ;;  %v594_v30 = vadd.f32 %v4868_v11, %v513_v22  ;;  %v765_v19 = vpop.permute.xlu0 %764  ;;  %3452 = vmatprep.mubr.msk.f32.mxu0 %vm4252_vm0, %v4253_v28  ;;  %3976 = vpow2.f32 %v1299_v14  ;;  %3903 = vmatpush3.bf16.msra.mxu1 %v3902_v52  ;;  %vm1122_vm15 = vcmp.gt.f32.partialorder %v4874_v20, 0.0 }
  0xff   :  { %v262_v32 = vpop.permute.xlu1 %261  ;;  %892 = vperm.xlu0 %3916, %v90_v18   ;;  %v1493_v33 = vsel %vm1118_vm11, %v4789_v5, %v3036_v17  ;;  %3904 = vmatprep.subr.bf16.mxu1 %v4250_v3  ;;  %v2471_v5 = vld [vmem:[%s5970_s5 + $0x78] sm:$0xff]  ;;  %v974_v44 = vmul.f32 %v4464_v8, %v765_v19 }
 0x100   :  { %v3973_v36 = vpop.eup %3972  ;;  %v4895_v27 = vadd.f32 %v973_v26, %v594_v30  ;;  %v514_v37 = vmul.f32 %v4457_v0, %v262_v32  ;;  %421 = vperm.xlu1 %3919, %v90_v18   ;;  %v1301_v38 = vmul.f32 1.442695, %v1197_v25  ;;  %v3905_v29 = vpack.c.bf16 %v2471_v5, %v2470_v31  ;;  %v95_v26 = vld [vmem:[%s5965_s0 + $0x220] sm:$0xff] }
 0x101   :  { %3453 = vmatmul.mubr.f32.gmra.mrb[50].mxu0 %v1493_v33  ;;  %v3037_v40 = vadd.f32 -1.0, %v3973_v36 }
 0x102   :  { %v1198_v43 = vmin.f32 %v4895_v27, 0.0  ;;  %v595_v46 = vadd.f32 %v4868_v11, %v514_v37  ;;  %v769_v3 = vpop.permute.xlu0 %768  ;;  %3455 = vmatprep.mubr.msk.f32.mxu0 %vm4252_vm0, %v4253_v28  ;;  %3978 = vpow2.f32 %v1301_v38  ;;  %3906 = vmatpush3.bf16.msra.mxu1 %v3905_v29  ;;  %vm1123_vm1 = vcmp.gt.f32.partialorder %v4895_v27, 0.0 }
 0x103   :  { %v267_v41 = vpop.permute.xlu1 %266  ;;  %896 = vperm.xlu0 %3916, %v91_v21   ;;  %v1494_v48 = vsel %vm1119_vm12, %v4810_v34, %v3037_v40  ;;  %v975_v34 = vmul.f32 %v4464_v8, %v769_v3  ;;  %v96_v40 = vld [vmem:[%s5965_s0 + $0x228] sm:$0xff] }
 0x104   :  { %v3975_v42 = vpop.eup %3974  ;;  %v4915_v51 = vadd.f32 %v974_v44, %v595_v46  ;;  %v515_v45 = vmul.f32 %v4457_v0, %v267_v41  ;;  %426 = vperm.xlu1 %3919, %v91_v21   ;;  %v1303_v35 = vmul.f32 1.442695, %v1198_v43 }
 0x105   :  { %3456 = vmatmul.mubr.f32.gmra.mrb[52].mxu0 %v1494_v48  ;;  %v3038_v53 = vadd.f32 -1.0, %v3975_v42 }
 0x106   :  { %v1199_v54 = vmin.f32 %v4915_v51, 0.0  ;;  %v596_v56 = vadd.f32 %v4868_v11, %v515_v45  ;;  %v773_v58 = vpop.permute.xlu0 %772  ;;  %3458 = vmatprep.mubr.msk.f32.mxu0 %vm4252_vm0, %v4253_v28  ;;  %3980 = vpow2.f32 %v1303_v35  ;;  %vm1124_vm2 = vcmp.gt.f32.partialorder %v4915_v51, 0.0  ;;  %v97_v35 = vld [vmem:[%s5965_s0 + $0x230] sm:$0xff] }
 0x107   :  { %v272_v59 = vpop.permute.xlu1 %271  ;;  %900 = vperm.xlu0 %3916, %v92_v39   ;;  %v1495_v60 = vsel %vm1120_vm13, %v4830_v49, %v3038_v53  ;;  %v976_v4 = vmul.f32 %v4464_v8, %v773_v58 }
 0x108   :  { %v3977_v61 = vpop.eup %3976  ;;  %v4928_v50 = vadd.f32 %v975_v34, %v596_v56  ;;  %v516_v63 = vmul.f32 %v4457_v0, %v272_v59  ;;  %431 = vperm.xlu1 %3919, %v92_v39   ;;  %v1305_v9 = vmul.f32 1.442695, %v1199_v54 }
 0x109   :  { %3459 = vmatmul.mubr.f32.gmra.mrb[54].mxu0 %v1495_v60  ;;  %v3039_v1 = vadd.f32 -1.0, %v3977_v61 }
 0x10a   :  { %v1200_v47 = vmin.f32 %v4928_v50, 0.0  ;;  %v597_v49 = vadd.f32 %v4868_v11, %v516_v63  ;;  %v777_v7 = vpop.permute.xlu0 %776  ;;  %3461 = vmatprep.mubr.msk.f32.mxu0 %vm4252_vm0, %v4253_v28  ;;  %3982 = vpow2.f32 %v1305_v9  ;;  %vm1125_vm3 = vcmp.gt.f32.partialorder %v4928_v50, 0.0  ;;  %v98_v9 = vld [vmem:[%s5965_s0 + $0x238] sm:$0xff] }
 0x10b   :  { %v277_v10 = vpop.permute.xlu1 %276  ;;  %904 = vperm.xlu0 %3916, %v93_v57   ;;  %v1496_v62 = vsel %vm1121_vm14, %v4850_v55, %v3039_v1  ;;  %v977_v18 = vmul.f32 %v4464_v8, %v777_v7 }
 0x10c   :  { %v3979_v12 = vpop.eup %3978  ;;  %v4941_v2 = vadd.f32 %v976_v4, %v597_v49  ;;  %v517_v13 = vmul.f32 %v4457_v0, %v277_v10  ;;  %436 = vperm.xlu1 %3919, %v93_v57   ;;  %v1307_v16 = vmul.f32 1.442695, %v1200_v47 }
 0x10d   :  { %3462 = vmatmul.mubr.f32.gmra.mrb[56].mxu0 %v1496_v62  ;;  %v3040_v22 = vadd.f32 -1.0, %v3979_v12 }
 0x10e   :  { %v1201_v23 = vmin.f32 %v4941_v2, 0.0  ;;  %v598_v55 = vadd.f32 %v4868_v11, %v517_v13  ;;  %v781_v14 = vpop.permute.xlu0 %780  ;;  %3464 = vmatprep.mubr.msk.f32.mxu0 %vm4252_vm0, %v4253_v28  ;;  %3984 = vpow2.f32 %v1307_v16  ;;  %vm1126_vm4 = vcmp.gt.f32.partialorder %v4941_v2, 0.0  ;;  %v99_v16 = vld [vmem:[%s5965_s0 + $0x240] sm:$0xff] }
 0x10f   :  { %v282_v24 = vpop.permute.xlu1 %281  ;;  %908 = vperm.xlu0 %3916, %v94_v15   ;;  %v1497_v6 = vsel %vm1122_vm15, %v4874_v20, %v3040_v22  ;;  %v978_v33 = vmul.f32 %v4464_v8, %v781_v14 }
 0x110   :  { %v3981_v17 = vpop.eup %3980  ;;  %v4954_v52 = vadd.f32 %v977_v18, %v598_v55  ;;  %v518_v25 = vmul.f32 %v4457_v0, %v282_v24  ;;  %441 = vperm.xlu1 %3919, %v94_v15   ;;  %v1309_v30 = vmul.f32 1.442695, %v1201_v23 }
 0x111   :  { %3465 = vmatmul.mubr.f32.gmra.mrb[58].mxu0 %v1497_v6  ;;  %v3041_v19 = vadd.f32 -1.0, %v3981_v17 }
 0x112   :  { %v1202_v32 = vmin.f32 %v4954_v52, 0.0  ;;  %v599_v20 = vadd.f32 %v4868_v11, %v518_v25  ;;  %v785_v36 = vpop.permute.xlu0 %784  ;;  %3467 = vmatprep.mubr.msk.f32.mxu0 %vm4252_vm0, %v4253_v28  ;;  %3986 = vpow2.f32 %v1309_v30  ;;  %vm1127_vm5 = vcmp.gt.f32.partialorder %v4954_v52, 0.0  ;;  %v100_v30 = vld [vmem:[%s5965_s0 + $0x248] sm:$0xff] }
 0x113   :  { %v287_v37 = vpop.permute.xlu1 %286  ;;  %912 = vperm.xlu0 %3916, %v95_v26   ;;  %v1498_v21 = vsel %vm1123_vm1, %v4895_v27, %v3041_v19  ;;  %v979_v46 = vmul.f32 %v4464_v8, %v785_v36 }
 0x114   :  { %v3983_v38 = vpop.eup %3982  ;;  %v4967_v31 = vadd.f32 %v978_v33, %v599_v20  ;;  %v519_v5 = vmul.f32 %v4457_v0, %v287_v37  ;;  %446 = vperm.xlu1 %3919, %v95_v26   ;;  %v1311_v29 = vmul.f32 1.442695, %v1202_v32 }
 0x115   :  { %3468 = vmatmul.mubr.f32.gmra.mrb[60].mxu0 %v1498_v21  ;;  %v3042_v43 = vadd.f32 -1.0, %v3983_v38 }
 0x116   :  { %v1203_v44 = vmin.f32 %v4967_v31, 0.0  ;;  %v600_v27 = vadd.f32 %v4868_v11, %v519_v5  ;;  %v789_v3 = vpop.permute.xlu0 %788  ;;  %3470 = vmatprep.mubr.msk.f32.mxu0 %vm4252_vm0, %v4253_v28  ;;  %3988 = vpow2.f32 %v1311_v29  ;;  %vm1128_vm6 = vcmp.gt.f32.partialorder %v4967_v31, 0.0  ;;  %v101_v29 = vld [vmem:[%s5965_s0 + $0x250] sm:$0xff] }
 0x117   :  { %v292_v41 = vpop.permute.xlu1 %291  ;;  %916 = vperm.xlu0 %3916, %v96_v40   ;;  %v1499_v48 = vsel %vm1124_vm2, %v4915_v51, %v3042_v43  ;;  %v980_v56 = vmul.f32 %v4464_v8, %v789_v3 }
 0x118   :  { %v3985_v42 = vpop.eup %3984  ;;  %v4980_v45 = vadd.f32 %v979_v46, %v600_v27  ;;  %v520_v39 = vmul.f32 %v4457_v0, %v292_v41  ;;  %451 = vperm.xlu1 %3919, %v96_v40   ;;  %v1313_v53 = vmul.f32 1.442695, %v1203_v44 }
 0x119   :  { %3471 = vmatmul.mubr.f32.gmra.mrb[62].mxu0 %v1499_v48  ;;  %v3043_v54 = vadd.f32 -1.0, %v3985_v42 }
 0x11a   :  { %v1204_v34 = vmin.f32 %v4980_v45, 0.0  ;;  %v601_v51 = vadd.f32 %v4868_v11, %v520_v39  ;;  %v793_v58 = vpop.permute.xlu0 %792  ;;  %3473 = vmatprep.mubr.msk.f32.mxu0 %vm4252_vm0, %v4253_v28  ;;  %3990 = vpow2.f32 %v1313_v53  ;;  %vm1129_vm7 = vcmp.gt.f32.partialorder %v4980_v45, 0.0 }
 0x11b   :  { %v297_v59 = vpop.permute.xlu1 %296  ;;  %920 = vperm.xlu0 %3916, %v97_v35   ;;  %v1500_v60 = vsel %vm1125_vm3, %v4928_v50, %v3043_v54  ;;  %v981_v49 = vmul.f32 %v4464_v8, %v793_v58 }
 0x11c   :  { %v3987_v61 = vpop.eup %3986  ;;  %v4993_v63 = vadd.f32 %v980_v56, %v601_v51  ;;  %v521_v57 = vmul.f32 %v4457_v0, %v297_v59  ;;  %456 = vperm.xlu1 %3919, %v97_v35   ;;  %v1315_v1 = vmul.f32 1.442695, %v1204_v34 }
 0x11d   :  { %3474 = vmatmul.mubr.f32.gmra.mrb[64].mxu0 %v1500_v60  ;;  %v3044_v47 = vadd.f32 -1.0, %v3987_v61 }
 0x11e   :  { %v1205_v4 = vmin.f32 %v4993_v63, 0.0  ;;  %v602_v50 = vadd.f32 %v4868_v11, %v521_v57  ;;  %v797_v7 = vpop.permute.xlu0 %796  ;;  %3476 = vmatprep.mubr.msk.f32.mxu0 %vm4252_vm0, %v4253_v28  ;;  %3992 = vpow2.f32 %v1315_v1  ;;  %vm1130_vm8 = vcmp.gt.f32.partialorder %v4993_v63, 0.0 }
 0x11f   :  { %v302_v10 = vpop.permute.xlu1 %301  ;;  %924 = vperm.xlu0 %3916, %v98_v9   ;;  %v1501_v62 = vsel %vm1126_vm4, %v4941_v2, %v3044_v47  ;;  %v982_v55 = vmul.f32 %v4464_v8, %v797_v7 }
 0x120   :  { %v3989_v12 = vpop.eup %3988  ;;  %v5006_v13 = vadd.f32 %v981_v49, %v602_v50  ;;  %v522_v15 = vmul.f32 %v4457_v0, %v302_v10  ;;  %461 = vperm.xlu1 %3919, %v98_v9   ;;  %v1317_v22 = vmul.f32 1.442695, %v1205_v4 }
 0x121   :  { %3477 = vmatmul.mubr.f32.gmra.mrb[66].mxu0 %v1501_v62  ;;  %v3045_v23 = vadd.f32 -1.0, %v3989_v12 }
 0x122   :  { %v1206_v18 = vmin.f32 %v5006_v13, 0.0  ;;  %v603_v2 = vadd.f32 %v4868_v11, %v522_v15  ;;  %v801_v14 = vpop.permute.xlu0 %800  ;;  %3479 = vmatprep.mubr.msk.f32.mxu0 %vm4252_vm0, %v4253_v28  ;;  %3994 = vpow2.f32 %v1317_v22  ;;  %vm1131_vm9 = vcmp.gt.f32.partialorder %v5006_v13, 0.0 }
 0x123   :  { %v307_v24 = vpop.permute.xlu1 %306  ;;  %928 = vperm.xlu0 %3916, %v99_v16   ;;  %v1502_v6 = vsel %vm1127_vm5, %v4954_v52, %v3045_v23  ;;  %v983_v20 = vmul.f32 %v4464_v8, %v801_v14 }
 0x124   :  { %v3991_v17 = vpop.eup %3990  ;;  %v5019_v25 = vadd.f32 %v982_v55, %v603_v2  ;;  %v523_v26 = vmul.f32 %v4457_v0, %v307_v24  ;;  %466 = vperm.xlu1 %3919, %v99_v16   ;;  %v1319_v19 = vmul.f32 1.442695, %v1206_v18 }
 0x125   :  { %3480 = vmatmul.mubr.f32.gmra.mrb[68].mxu0 %v1502_v6  ;;  %v3046_v32 = vadd.f32 -1.0, %v3991_v17 }
 0x126   :  { %v1207_v33 = vmin.f32 %v5019_v25, 0.0  ;;  %v604_v52 = vadd.f32 %v4868_v11, %v523_v26  ;;  %v805_v36 = vpop.permute.xlu0 %804  ;;  %3482 = vmatprep.mubr.msk.f32.mxu0 %vm4252_vm0, %v4253_v28  ;;  %3996 = vpow2.f32 %v1319_v19  ;;  %vm1132_vm10 = vcmp.gt.f32.partialorder %v5019_v25, 0.0 }
 0x127   :  { %v312_v37 = vpop.permute.xlu1 %311  ;;  %932 = vperm.xlu0 %3916, %v100_v30   ;;  %v1503_v21 = vsel %vm1128_vm6, %v4967_v31, %v3046_v32  ;;  %v984_v27 = vmul.f32 %v4464_v8, %v805_v36 }
 0x128   :  { %v3993_v38 = vpop.eup %3992  ;;  %v5032_v5 = vadd.f32 %v983_v20, %v604_v52  ;;  %v524_v40 = vmul.f32 %v4457_v0, %v312_v37  ;;  %471 = vperm.xlu1 %3919, %v100_v30   ;;  %v1321_v43 = vmul.f32 1.442695, %v1207_v33 }
 0x129   :  { %3483 = vmatmul.mubr.f32.gmra.mrb[70].mxu0 %v1503_v21  ;;  %v3047_v44 = vadd.f32 -1.0, %v3993_v38 }
 0x12a   :  { %v1208_v46 = vmin.f32 %v5032_v5, 0.0  ;;  %v605_v31 = vadd.f32 %v4868_v11, %v524_v40  ;;  %v809_v3 = vpop.permute.xlu0 %808  ;;  %3485 = vmatprep.mubr.msk.f32.mxu0 %vm4252_vm0, %v4253_v28  ;;  %3998 = vpow2.f32 %v1321_v43  ;;  %vm1133_vm11 = vcmp.gt.f32.partialorder %v5032_v5, 0.0 }
 0x12b   :  { %v317_v41 = vpop.permute.xlu1 %316  ;;  %936 = vperm.xlu0 %3916, %v101_v29   ;;  %v1504_v48 = vsel %vm1129_vm7, %v4980_v45, %v3047_v44  ;;  %v985_v56 = vmul.f32 %v4464_v8, %v809_v3 }
 0x12c   :  { %v3995_v42 = vpop.eup %3994  ;;  %v5045_v39 = vadd.f32 %v984_v27, %v605_v31  ;;  %v525_v35 = vmul.f32 %v4457_v0, %v317_v41  ;;  %476 = vperm.xlu1 %3919, %v101_v29   ;;  %v1323_v53 = vmul.f32 1.442695, %v1208_v46 }
 0x12d   :  { %3486 = vmatmul.mubr.f32.gmra.mrb[72].mxu0 %v1504_v48  ;;  %v3048_v54 = vadd.f32 -1.0, %v3995_v42 }
 0x12e   :  { %v1209_v34 = vmin.f32 %v5045_v39, 0.0  ;;  %v606_v51 = vadd.f32 %v4868_v11, %v525_v35  ;;  %v813_v58 = vpop.permute.xlu0 %812  ;;  %3488 = vmatprep.mubr.msk.f32.mxu0 %vm4252_vm0, %v4253_v28  ;;  %4000 = vpow2.f32 %v1323_v53  ;;  %vm1134_vm12 = vcmp.gt.f32.partialorder %v5045_v39, 0.0 }
 0x12f   :  { %v322_v45 = vpop.permute.xlu1 %321  ;;  %v1505_v59 = vsel %vm1130_vm8, %v4993_v63, %v3048_v54  ;;  %v986_v4 = vmul.f32 %v4464_v8, %v813_v58 }
 0x130   :  { %v3997_v60 = vpop.eup %3996  ;;  %v5055_v61 = vadd.f32 %v985_v56, %v606_v51  ;;  %v526_v57 = vmul.f32 %v4457_v0, %v322_v45  ;;  %v1325_v9 = vmul.f32 1.442695, %v1209_v34 }
 0x131   :  { %3489 = vmatmul.mubr.f32.gmra.mrb[74].mxu0 %v1505_v59  ;;  %v3049_v1 = vadd.f32 -1.0, %v3997_v60 }
 0x132   :  { %v1210_v47 = vmin.f32 %v5055_v61, 0.0  ;;  %v607_v49 = vadd.f32 %v4868_v11, %v526_v57  ;;  %v817_v50 = vpop.permute.xlu0 %816  ;;  %3491 = vmatprep.mubr.msk.f32.mxu0 %vm4252_vm0, %v4253_v28  ;;  %4002 = vpow2.f32 %v1325_v9  ;;  %vm1135_vm13 = vcmp.gt.f32.partialorder %v5055_v61, 0.0 }
 0x133   :  { %v327_v63 = vpop.permute.xlu1 %326  ;;  %v1506_v7 = vsel %vm1131_vm9, %v5006_v13, %v3049_v1  ;;  %v987_v23 = vmul.f32 %v4464_v8, %v817_v50 }
 0x134   :  { %v3999_v10 = vpop.eup %3998  ;;  %v5065_v62 = vadd.f32 %v986_v4, %v607_v49  ;;  %v527_v12 = vmul.f32 %v4457_v0, %v327_v63  ;;  %v1327_v15 = vmul.f32 1.442695, %v1210_v47 }
 0x135   :  { %3492 = vmatmul.mubr.f32.gmra.mrb[76].mxu0 %v1506_v7  ;;  %v3050_v16 = vadd.f32 -1.0, %v3999_v10 }
 0x136   :  { %v1211_v22 = vmin.f32 %v5065_v62, 0.0  ;;  %v608_v18 = vadd.f32 %v4868_v11, %v527_v12  ;;  %v821_v55 = vpop.permute.xlu0 %820  ;;  %3494 = vmatprep.mubr.msk.f32.mxu0 %vm4252_vm0, %v4253_v28  ;;  %4004 = vpow2.f32 %v1327_v15  ;;  %vm1136_vm14 = vcmp.gt.f32.partialorder %v5065_v62, 0.0 }
 0x137   :  { %v332_v13 = vpop.permute.xlu1 %331  ;;  %v1507_v2 = vsel %vm1132_vm10, %v5019_v25, %v3050_v16  ;;  %v988_v19 = vmul.f32 %v4464_v8, %v821_v55 }
 0x138   :  { %v4001_v14 = vpop.eup %4000  ;;  %v5075_v24 = vadd.f32 %v987_v23, %v608_v18  ;;  %v528_v6 = vmul.f32 %v4457_v0, %v332_v13  ;;  %v1329_v17 = vmul.f32 1.442695, %v1211_v22 }
 0x139   :  { %3495 = vmatmul.mubr.f32.gmra.mrb[78].mxu0 %v1507_v2  ;;  %v3051_v26 = vadd.f32 -1.0, %v4001_v14 }
 0x13a   :  { %v1212_v30 = vmin.f32 %v5075_v24, 0.0  ;;  %v609_v32 = vadd.f32 %v4868_v11, %v528_v6  ;;  %v825_v33 = vpop.permute.xlu0 %824  ;;  %3497 = vmatprep.mubr.msk.f32.mxu0 %vm4252_vm0, %v4253_v28  ;;  %4006 = vpow2.f32 %v1329_v17  ;;  %vm1137_vm15 = vcmp.gt.f32.partialorder %v5075_v24, 0.0 }
 0x13b   :  { %v337_v25 = vpop.permute.xlu1 %336  ;;  %v1508_v20 = vsel %vm1133_vm11, %v5032_v5, %v3051_v26  ;;  %v989_v29 = vmul.f32 %v4464_v8, %v825_v33 }
 0x13c   :  { %v4003_v52 = vpop.eup %4002  ;;  %v5085_v36 = vadd.f32 %v988_v19, %v609_v32  ;;  %v529_v37 = vmul.f32 %v4457_v0, %v337_v25  ;;  %v1331_v21 = vmul.f32 1.442695, %v1212_v30 }
 0x13d   :  { %3498 = vmatmul.mubr.f32.gmra.mrb[80].mxu0 %v1508_v20  ;;  %v3052_v38 = vadd.f32 -1.0, %v4003_v52 }
 0x13e   :  { %v1213_v40 = vmin.f32 %v5085_v36, 0.0  ;;  %v610_v43 = vadd.f32 %v4868_v11, %v529_v37  ;;  %v829_v44 = vpop.permute.xlu0 %828  ;;  %3500 = vmatprep.mubr.msk.f32.mxu0 %vm4252_vm0, %v4253_v28  ;;  %4008 = vpow2.f32 %v1331_v21  ;;  %vm1138_vm1 = vcmp.gt.f32.partialorder %v5085_v36, 0.0 }
 0x13f   :  { %v342_v5 = vpop.permute.xlu1 %341  ;;  %v1509_v46 = vsel %vm1134_vm12, %v5045_v39, %v3052_v38  ;;  %v990_v35 = vmul.f32 %v4464_v8, %v829_v44 }
 0x140   :  { %v4005_v27 = vpop.eup %4004  ;;  %v5095_v31 = vadd.f32 %v989_v29, %v610_v43  ;;  %v530_v3 = vmul.f32 %v4457_v0, %v342_v5  ;;  %v1333_v41 = vmul.f32 1.442695, %v1213_v40 }
 0x141   :  { %3501 = vmatmul.mubr.f32.gmra.mrb[82].mxu0 %v1509_v46  ;;  %v3053_v48 = vadd.f32 -1.0, %v4005_v27 }
 0x142   :  { %v1214_v42 = vmin.f32 %v5095_v31, 0.0  ;;  %v611_v53 = vadd.f32 %v4868_v11, %v530_v3  ;;  %v833_v54 = vpop.permute.xlu0 %832  ;;  %3503 = vmatprep.mubr.msk.f32.mxu0 %vm4252_vm0, %v4253_v28  ;;  %4010 = vpow2.f32 %v1333_v41  ;;  %vm1139_vm2 = vcmp.gt.f32.partialorder %v5095_v31, 0.0 }
 0x143   :  { %v347_v39 = vpop.permute.xlu1 %346  ;;  %v1510_v34 = vsel %vm1135_vm13, %v5055_v61, %v3053_v48  ;;  %v991_v57 = vmul.f32 %v4464_v8, %v833_v54 }
 0x144   :  { %v4007_v56 = vpop.eup %4006  ;;  %v5105_v51 = vadd.f32 %v990_v35, %v611_v53  ;;  %v531_v58 = vmul.f32 %v4457_v0, %v347_v39  ;;  %v1335_v45 = vmul.f32 1.442695, %v1214_v42 }
 0x145   :  { %3504 = vmatmul.mubr.f32.gmra.mrb[84].mxu0 %v1510_v34  ;;  %v3054_v59 = vadd.f32 -1.0, %v4007_v56 }
 0x146   :  { %v1215_v60 = vmin.f32 %v5105_v51, 0.0  ;;  %v612_v9 = vadd.f32 %v4868_v11, %v531_v58  ;;  %v837_v1 = vpop.permute.xlu0 %836  ;;  %3506 = vmatprep.mubr.msk.f32.mxu0 %vm4252_vm0, %v4253_v28  ;;  %4012 = vpow2.f32 %v1335_v45  ;;  %vm1140_vm3 = vcmp.gt.f32.partialorder %v5105_v51, 0.0 }
 0x147   :  { %v352_v61 = vpop.permute.xlu1 %351  ;;  %v1511_v47 = vsel %vm1136_vm14, %v5065_v62, %v3054_v59  ;;  %v992_v12 = vmul.f32 %v4464_v8, %v837_v1 }
 0x148   :  { %v4009_v4 = vpop.eup %4008  ;;  %v5115_v49 = vadd.f32 %v991_v57, %v612_v9  ;;  %v532_v50 = vmul.f32 %v4457_v0, %v352_v61  ;;  %v1337_v63 = vmul.f32 1.442695, %v1215_v60 }
 0x149   :  { %3507 = vmatmul.mubr.f32.gmra.mrb[86].mxu0 %v1511_v47  ;;  %v3055_v7 = vadd.f32 -1.0, %v4009_v4 }
 0x14a   :  { %v1216_v10 = vmin.f32 %v5115_v49, 0.0  ;;  %v613_v15 = vadd.f32 %v4868_v11, %v532_v50  ;;  %v841_v16 = vpop.permute.xlu0 %840  ;;  %3509 = vmatprep.mubr.msk.f32.mxu0 %vm4252_vm0, %v4253_v28  ;;  %4014 = vpow2.f32 %v1337_v63  ;;  %vm1141_vm4 = vcmp.gt.f32.partialorder %v5115_v49, 0.0 }
 0x14b   :  { %v357_v62 = vpop.permute.xlu1 %356  ;;  %v1512_v22 = vsel %vm1137_vm15, %v5075_v24, %v3055_v7  ;;  %v993_v6 = vmul.f32 %v4464_v8, %v841_v16 }
 0x14c   :  { %v4011_v23 = vpop.eup %4010  ;;  %v5125_v18 = vadd.f32 %v992_v12, %v613_v15  ;;  %v533_v55 = vmul.f32 %v4457_v0, %v357_v62  ;;  %v1339_v13 = vmul.f32 1.442695, %v1216_v10 }
 0x14d   :  { %3510 = vmatmul.mubr.f32.gmra.mrb[88].mxu0 %v1512_v22  ;;  %v3056_v2 = vadd.f32 -1.0, %v4011_v23 }
 0x14e   :  { %v1217_v14 = vmin.f32 %v5125_v18, 0.0  ;;  %v614_v17 = vadd.f32 %v4868_v11, %v533_v55  ;;  %v845_v26 = vpop.permute.xlu0 %844  ;;  %3512 = vmatprep.mubr.msk.f32.mxu0 %vm4252_vm0, %v4253_v28  ;;  %4016 = vpow2.f32 %v1339_v13  ;;  %vm1142_vm5 = vcmp.gt.f32.partialorder %v5125_v18, 0.0 }
 0x14f   :  { %v362_v24 = vpop.permute.xlu1 %361  ;;  %v1513_v30 = vsel %vm1138_vm1, %v5085_v36, %v3056_v2  ;;  %v994_v37 = vmul.f32 %v4464_v8, %v845_v26 }
 0x150   :  { %v4013_v19 = vpop.eup %4012  ;;  %v5135_v32 = vadd.f32 %v993_v6, %v614_v17  ;;  %v534_v33 = vmul.f32 %v4457_v0, %v362_v24  ;;  %v1341_v25 = vmul.f32 1.442695, %v1217_v14 }
 0x151   :  { %3513 = vmatmul.mubr.f32.gmra.mrb[90].mxu0 %v1513_v30  ;;  %v3057_v20 = vadd.f32 -1.0, %v4013_v19 }
 0x152   :  { %v1218_v52 = vmin.f32 %v5135_v32, 0.0  ;;  %v615_v21 = vadd.f32 %v4868_v11, %v534_v33  ;;  %v849_v38 = vpop.permute.xlu0 %848  ;;  %3515 = vmatprep.mubr.msk.f32.mxu0 %vm4252_vm0, %v4253_v28  ;;  %4018 = vpow2.f32 %v1341_v25  ;;  %vm1143_vm6 = vcmp.gt.f32.partialorder %v5135_v32, 0.0 }
 0x153   :  { %v367_v36 = vpop.permute.xlu1 %366  ;;  %v1514_v40 = vsel %vm1139_vm2, %v5095_v31, %v3057_v20  ;;  %v995_v3 = vmul.f32 %v4464_v8, %v849_v38 }
 0x154   :  { %v4015_v29 = vpop.eup %4014  ;;  %v5145_v43 = vadd.f32 %v994_v37, %v615_v21  ;;  %v535_v44 = vmul.f32 %v4457_v0, %v367_v36  ;;  %v1343_v5 = vmul.f32 1.442695, %v1218_v52 }
 0x155   :  { %3516 = vmatmul.mubr.f32.gmra.mrb[92].mxu0 %v1514_v40  ;;  %v3058_v46 = vadd.f32 -1.0, %v4015_v29 }
 0x156   :  { %v1219_v27 = vmin.f32 %v5145_v43, 0.0  ;;  %v616_v41 = vadd.f32 %v4868_v11, %v535_v44  ;;  %v853_v48 = vpop.permute.xlu0 %852  ;;  %3518 = vmatprep.mubr.msk.f32.mxu0 %vm4252_vm0, %v4253_v28  ;;  %4020 = vpow2.f32 %v1343_v5  ;;  %vm1144_vm7 = vcmp.gt.f32.partialorder %v5145_v43, 0.0 }
 0x157   :  { %v372_v31 = vpop.permute.xlu1 %371  ;;  %v1515_v42 = vsel %vm1140_vm3, %v5105_v51, %v3058_v46  ;;  %v996_v58 = vmul.f32 %v4464_v8, %v853_v48 }
 0x158   :  { %v4017_v35 = vpop.eup %4016  ;;  %v5155_v53 = vadd.f32 %v995_v3, %v616_v41  ;;  %v536_v54 = vmul.f32 %v4457_v0, %v372_v31  ;;  %v1345_v39 = vmul.f32 1.442695, %v1219_v27 }
 0x159   :  { %3519 = vmatmul.mubr.f32.gmra.mrb[94].mxu0 %v1515_v42  ;;  %v3059_v34 = vadd.f32 -1.0, %v4017_v35 }
 0x15a   :  { %v1220_v56 = vmin.f32 %v5155_v53, 0.0  ;;  %v617_v45 = vadd.f32 %v4868_v11, %v536_v54  ;;  %v857_v59 = vpop.permute.xlu0 %856  ;;  %3521 = vmatprep.mubr.msk.f32.mxu0 %vm4252_vm0, %v4253_v28  ;;  %4022 = vpow2.f32 %v1345_v39  ;;  %vm1145_vm8 = vcmp.gt.f32.partialorder %v5155_v53, 0.0 }
 0x15b   :  { %v377_v51 = vpop.permute.xlu1 %376  ;;  %v1516_v60 = vsel %vm1141_vm4, %v5115_v49, %v3059_v34  ;;  %v997_v50 = vmul.f32 %v4464_v8, %v857_v59 }
 0x15c   :  { %v4019_v57 = vpop.eup %4018  ;;  %v5165_v9 = vadd.f32 %v996_v58, %v617_v45  ;;  %v537_v1 = vmul.f32 %v4457_v0, %v377_v51  ;;  %v1347_v61 = vmul.f32 1.442695, %v1220_v56 }
 0x15d   :  { %3522 = vmatmul.mubr.f32.gmra.mrb[96].mxu0 %v1516_v60  ;;  %v3060_v47 = vadd.f32 -1.0, %v4019_v57 }
 0x15e   :  { %v1221_v4 = vmin.f32 %v5165_v9, 0.0  ;;  %v618_v63 = vadd.f32 %v4868_v11, %v537_v1  ;;  %v861_v7 = vpop.permute.xlu0 %860  ;;  %3524 = vmatprep.mubr.msk.f32.mxu0 %vm4252_vm0, %v4253_v28  ;;  %4024 = vpow2.f32 %v1347_v61  ;;  %vm1146_vm9 = vcmp.gt.f32.partialorder %v5165_v9, 0.0 }
 0x15f   :  { %v382_v49 = vpop.permute.xlu1 %381  ;;  %v1517_v10 = vsel %vm1142_vm5, %v5125_v18, %v3060_v47  ;;  %v998_v55 = vmul.f32 %v4464_v8, %v861_v7 }
 0x160   :  { %v4021_v12 = vpop.eup %4020  ;;  %v5175_v15 = vadd.f32 %v997_v50, %v618_v63  ;;  %v538_v16 = vmul.f32 %v4457_v0, %v382_v49  ;;  %v1349_v62 = vmul.f32 1.442695, %v1221_v4 }
 0x161   :  { %3525 = vmatmul.mubr.f32.gmra.mrb[98].mxu0 %v1517_v10  ;;  %v3061_v22 = vadd.f32 -1.0, %v4021_v12 }
 0x162   :  { %v1222_v23 = vmin.f32 %v5175_v15, 0.0  ;;  %v619_v13 = vadd.f32 %v4868_v11, %v538_v16  ;;  %v865_v2 = vpop.permute.xlu0 %864  ;;  %3527 = vmatprep.mubr.msk.f32.mxu0 %vm4252_vm0, %v4253_v28  ;;  %4026 = vpow2.f32 %v1349_v62  ;;  %vm1147_vm10 = vcmp.gt.f32.partialorder %v5175_v15, 0.0 }
 0x163   :  { %v387_v18 = vpop.permute.xlu1 %386  ;;  %v1518_v14 = vsel %vm1143_vm6, %v5135_v32, %v3061_v22  ;;  %v999_v33 = vmul.f32 %v4464_v8, %v865_v2 }
 0x164   :  { %v4023_v6 = vpop.eup %4022  ;;  %v5185_v17 = vadd.f32 %v998_v55, %v619_v13  ;;  %v539_v26 = vmul.f32 %v4457_v0, %v387_v18  ;;  %v1351_v24 = vmul.f32 1.442695, %v1222_v23 }
 0x165   :  { %3528 = vmatmul.mubr.f32.gmra.mrb[100].mxu0 %v1518_v14  ;;  %v3062_v30 = vadd.f32 -1.0, %v4023_v6  ;;  %v5246_v14 = vld [vmem:[%s5967_s2] ss:$0 sm:$0xff] }
 0x166   :  { %v1223_v19 = vmin.f32 %v5185_v17, 0.0  ;;  %v620_v25 = vadd.f32 %v4868_v11, %v539_v26  ;;  %v869_v20 = vpop.permute.xlu0 %868  ;;  %3530 = vmatprep.mubr.msk.f32.mxu0 %vm4252_vm0, %v4253_v28  ;;  %4028 = vpow2.f32 %v1351_v24  ;;  %vm1148_vm11 = vcmp.gt.f32.partialorder %v5185_v17, 0.0 }
 0x167   :  { %v392_v32 = vpop.permute.xlu1 %391  ;;  %v1519_v52 = vsel %vm1144_vm7, %v5145_v43, %v3062_v30  ;;  %v1000_v44 = vmul.f32 %v4464_v8, %v869_v20 }
 0x168   :  { %v4025_v37 = vpop.eup %4024  ;;  %v5195_v21 = vadd.f32 %v999_v33, %v620_v25  ;;  %v540_v38 = vmul.f32 %v4457_v0, %v392_v32  ;;  %v1353_v36 = vmul.f32 1.442695, %v1223_v19 }
 0x169   :  { %3531 = vmatmul.mubr.f32.gmra.mrb[102].mxu0 %v1519_v52  ;;  %v3063_v40 = vadd.f32 -1.0, %v4025_v37 }
 0x16a   :  { %v1224_v29 = vmin.f32 %v5195_v21, 0.0  ;;  %v621_v5 = vadd.f32 %v4868_v11, %v540_v38  ;;  %v873_v46 = vpop.permute.xlu0 %872  ;;  %3533 = vmatprep.mubr.msk.f32.mxu0 %vm4252_vm0, %v4253_v28  ;;  %4030 = vpow2.f32 %v1353_v36  ;;  %vm1149_vm12 = vcmp.gt.f32.partialorder %v5195_v21, 0.0 }
 0x16b   :  { %v397_v43 = vpop.permute.xlu1 %396  ;;  %v1520_v27 = vsel %vm1145_vm8, %v5155_v53, %v3063_v40  ;;  %v1001_v54 = vmul.f32 %v4464_v8, %v873_v46  ;;  %v5215_v53 = vld [vmem:[%s5969_s4] ss:$0 sm:$0xff] }
 0x16c   :  { %v4027_v3 = vpop.eup %4026  ;;  %v5205_v41 = vadd.f32 %v1000_v44, %v621_v5  ;;  %v541_v48 = vmul.f32 %v4457_v0, %v397_v43  ;;  %v1355_v31 = vmul.f32 1.442695, %v1224_v29 }
 0x16d   :  { %3534 = vmatmul.mubr.f32.gmra.mrb[104].mxu0 %v1520_v27  ;;  %v3064_v42 = vadd.f32 -1.0, %v4027_v3 }
 0x16e   :  { %v1225_v35 = vmin.f32 %v5205_v41, 0.0  ;;  %v622_v39 = vadd.f32 %v4868_v11, %v541_v48  ;;  %v877_v34 = vpop.permute.xlu0 %876  ;;  %3536 = vmatprep.mubr.msk.f32.mxu0 %vm4252_vm0, %v4253_v28  ;;  %4032 = vpow2.f32 %v1355_v31  ;;  %vm1150_vm13 = vcmp.gt.f32.partialorder %v5205_v41, 0.0 }
 0x16f   :  { %v402_v56 = vpop.permute.xlu1 %401  ;;  %v1521_v58 = vsel %vm1146_vm9, %v5165_v9, %v3064_v42  ;;  %v1002_v50 = vmul.f32 %v4464_v8, %v877_v34 }
 0x170   :  { %v4029_v45 = vpop.eup %4028  ;;  %v5220_v59 = vadd.f32 %v1001_v54, %v622_v39  ;;  %v542_v51 = vmul.f32 %v4457_v0, %v402_v56  ;;  %v1632_v60 = vpop.f32.mrb[0].mxu0  ;;  %v1357_v57 = vmul.f32 1.442695, %v1225_v35 }
 0x171   :  { %v5224_v1 = vadd.f32 %v5215_v53, %v1632_v60  ;;  %v3379_v61 = vpop.f32.mrb[1].mxu0  ;;  %3537 = vmatmul.mubr.f32.gmra.mrb[106].mxu0 %v1521_v58  ;;  %v3065_v47 = vadd.f32 -1.0, %v4029_v45 }
 0x172   :  { %v1226_v4 = vmin.f32 %v5220_v59, 0.0  ;;  %v623_v9 = vadd.f32 %v4868_v11, %v542_v51  ;;  %v881_v63 = vpop.permute.xlu0 %880  ;;  %3539 = vmatprep.mubr.msk.f32.mxu0 %vm4252_vm0, %v4253_v28  ;;  %4034 = vpow2.f32 %v1357_v57  ;;  %vm1151_vm14 = vcmp.gt.f32.partialorder %v5220_v59, 0.0 }
 0x173   :  { %v2081_v7 = vmin.f32 %v5224_v1, 0.0  ;;  %v407_v49 = vpop.permute.xlu1 %406  ;;  %v1522_v10 = vsel %vm1147_vm10, %v5175_v15, %v3065_v47  ;;  %v1003_v15 = vmul.f32 %v4464_v8, %v881_v63  ;;  %vm2006_vm15 = vcmp.gt.f32.partialorder %v5224_v1, 0.0 }
 0x174   :  { %v4031_v12 = vpop.eup %4030  ;;  %v5234_v16 = vadd.f32 %v1002_v50, %v623_v9  ;;  %v543_v62 = vmul.f32 %v4457_v0, %v407_v49  ;;  %v1637_v22 = vpop.f32.mrb[2].mxu0  ;;  %v1359_v23 = vmul.f32 1.442695, %v1226_v4 }
 0x175   :  { %v2156_v55 = vmul.f32 1.442695, %v2081_v7  ;;  %v5238_v11 = vadd.f32 %v5215_v53, %v1637_v22  ;;  %v3382_v13 = vpop.f32.mrb[3].mxu0  ;;  %3540 = vmatmul.mubr.f32.gmra.mrb[108].mxu0 %v1522_v10  ;;  %v3066_v2 = vadd.f32 -1.0, %v4031_v12 }
 0x176   :  { %v1227_v18 = vmin.f32 %v5234_v16, 0.0  ;;  %v624_v6 = vadd.f32 %v5246_v14, %v543_v62  ;;  %v885_v26 = vpop.permute.xlu0 %884  ;;  %3542 = vmatprep.mubr.msk.f32.mxu0 %vm4252_vm0, %v4253_v28  ;;  %4036 = vpow2.f32 %v1359_v23  ;;  %vm1152_vm1 = vcmp.gt.f32.partialorder %v5234_v16, 0.0 }
 0x177   :  { %4038 = vpow2.f32 %v2156_v55  ;;  %v2082_v24 = vmin.f32 %v5238_v11, 0.0  ;;  %v412_v30 = vpop.permute.xlu1 %411  ;;  %v1523_v19 = vsel %vm1148_vm11, %v5185_v17, %v3066_v2  ;;  %v1004_v17 = vmul.f32 %v4464_v8, %v885_v26 }
 0x178   :  { %v4033_v33 = vpop.eup %4032  ;;  %v5253_v25 = vadd.f32 %v1003_v15, %v624_v6  ;;  %v544_v20 = vmul.f32 %v4457_v0, %v412_v30  ;;  %v1642_v32 = vpop.f32.mrb[4].mxu0  ;;  %v1361_v52 = vmul.f32 1.442695, %v1227_v18  ;;  %vm2007_vm2 = vcmp.gt.f32.partialorder %v5238_v11, 0.0 }
 0x179   :  { %v2158_v37 = vmul.f32 1.442695, %v2082_v24  ;;  %v5257_v38 = vadd.f32 %v5215_v53, %v1642_v32  ;;  %v3385_v36 = vpop.f32.mrb[5].mxu0  ;;  %3543 = vmatmul.mubr.f32.gmra.mrb[110].mxu0 %v1523_v19  ;;  %v3067_v40 = vadd.f32 -1.0, %v4033_v33 }
 0x17a   :  { %v1228_v29 = vmin.f32 %v5253_v25, 0.0  ;;  %v625_v44 = vadd.f32 %v5246_v14, %v544_v20  ;;  %v889_v5 = vpop.permute.xlu0 %888  ;;  %3545 = vmatprep.mubr.msk.f32.mxu0 %vm4252_vm0, %v4253_v28  ;;  %4040 = vpow2.f32 %v1361_v52  ;;  %vm1153_vm3 = vcmp.gt.f32.partialorder %v5253_v25, 0.0 }
 0x17b   :  { %4042 = vpow2.f32 %v2158_v37  ;;  %v2083_v46 = vmin.f32 %v5257_v38, 0.0  ;;  %v417_v43 = vpop.permute.xlu1 %416  ;;  %v1524_v27 = vsel %vm1149_vm12, %v5195_v21, %v3067_v40  ;;  %v1005_v21 = vmul.f32 %v4464_v8, %v889_v5 }
 0x17c   :  { %v4035_v3 = vpop.eup %4034  ;;  %v5267_v48 = vadd.f32 %v1004_v17, %v625_v44  ;;  %v545_v31 = vmul.f32 %v4457_v0, %v417_v43  ;;  %v1647_v42 = vpop.f32.mrb[6].mxu0  ;;  %v1363_v35 = vmul.f32 1.442695, %v1228_v29  ;;  %vm2008_vm4 = vcmp.gt.f32.partialorder %v5257_v38, 0.0 }
 0x17d   :  { %v2160_v54 = vmul.f32 1.442695, %v2083_v46  ;;  %v5271_v39 = vadd.f32 %v5215_v53, %v1647_v42  ;;  %v3388_v34 = vpop.f32.mrb[7].mxu0  ;;  %3546 = vmatmul.mubr.f32.gmra.mrb[112].mxu0 %v1524_v27  ;;  %v3068_v56 = vadd.f32 -1.0, %v4035_v3 }
 0x17e   :  { %v1229_v58 = vmin.f32 %v5267_v48, 0.0  ;;  %v626_v45 = vadd.f32 %v5246_v14, %v545_v31  ;;  %v893_v51 = vpop.permute.xlu0 %892  ;;  %3548 = vmatprep.mubr.msk.f32.mxu0 %vm4252_vm0, %v4253_v28  ;;  %4044 = vpow2.f32 %v1363_v35  ;;  %vm1154_vm5 = vcmp.gt.f32.partialorder %v5267_v48, 0.0 }
 0x17f   :  { %4046 = vpow2.f32 %v2160_v54  ;;  %v2084_v60 = vmin.f32 %v5271_v39, 0.0  ;;  %v422_v57 = vpop.permute.xlu1 %421  ;;  %v1525_v61 = vsel %vm1150_vm13, %v5205_v41, %v3068_v56  ;;  %v1006_v10 = vmul.f32 %v4464_v8, %v893_v51 }
 0x180   :  { %v4037_v47 = vpop.eup %4036  ;;  %v5282_v4 = vadd.f32 %v1005_v21, %v626_v45  ;;  %v546_v50 = vmul.f32 %v4457_v0, %v422_v57  ;;  %v1652_v9 = vpop.f32.mrb[8].mxu0  ;;  %v1365_v63 = vmul.f32 1.442695, %v1229_v58  ;;  %vm2009_vm6 = vcmp.gt.f32.partialorder %v5271_v39, 0.0 }
 0x181   :  { %v4039_v7 = vpop.eup %4038  ;;  %v2162_v49 = vmul.f32 1.442695, %v2084_v60  ;;  %v5288_v12 = vadd.f32 %v5215_v53, %v1652_v9  ;;  %v3391_v62 = vpop.f32.mrb[9].mxu0  ;;  %3549 = vmatmul.mubr.f32.gmra.mrb[114].mxu0 %v1525_v61  ;;  %v3069_v41 = vadd.f32 -1.0, %v4037_v47 }
 0x182   :  { %v1230_v22 = vmin.f32 %v5282_v4, 0.0  ;;  %v627_v23 = vadd.f32 %v5246_v14, %v546_v50  ;;  %v897_v55 = vpop.permute.xlu0 %896  ;;  %3551 = vmatprep.mubr.msk.f32.mxu0 %vm4252_vm0, %v4253_v28  ;;  %v3087_v13 = vadd.f32 -1.0, %v4039_v7  ;;  %4048 = vpow2.f32 %v1365_v63 }
 0x183   :  { %4050 = vpow2.f32 %v2162_v49  ;;  %v2085_v2 = vmin.f32 %v5288_v12, 0.0  ;;  %v427_v18 = vpop.permute.xlu1 %426  ;;  %v1526_v15 = vsel %vm1151_vm14, %v5220_v59, %v3069_v41  ;;  %v1007_v40 = vmul.f32 %v4464_v8, %v897_v55 }
 0x184   :  { %v4041_v6 = vpop.eup %4040  ;;  %v5299_v26 = vadd.f32 %v1006_v10, %v627_v23  ;;  %v547_v24 = vmul.f32 %v4457_v0, %v427_v18  ;;  %v1657_v30 = vpop.f32.mrb[10].mxu0  ;;  %v2381_v19 = vsel %vm2006_vm15, %v5224_v1, %v3087_v13  ;;  %v1367_v37 = vmul.f32 1.442695, %v1230_v22 }
 0x185   :  { %v4043_v33 = vpop.eup %4042  ;;  %v2164_v20 = vmul.f32 1.442695, %v2085_v2  ;;  %v5307_v32 = vadd.f32 %v5215_v53, %v1657_v30  ;;  %v3394_v59 = vpop.f32.mrb[11].mxu0  ;;  %3552 = vmatmul.mubr.f32.gmra.mrb[116].mxu0 %v1526_v15  ;;  %3635 = vmatmul.mubr.f32.vlgmr.msra.gmra.mrb[0].mxu1 %v2381_v19  ;;  %v3070_v52 = vadd.f32 -1.0, %v4041_v6  ;;  %vm1155_vm7 = vcmp.gt.f32.partialorder %v5282_v4, 0.0 }
 0x186   :  { %v1231_v36 = vmin.f32 %v5299_v26, 0.0  ;;  %v628_v29 = vadd.f32 %v5246_v14, %v547_v24  ;;  %v901_v17 = vpop.permute.xlu0 %900  ;;  %3554 = vmatprep.mubr.msk.f32.mxu0 %vm4252_vm0, %v4253_v28  ;;  %3637 = vmatprep.mubr.msk.f32.mxu1 %vm4252_vm0, %v4253_v28  ;;  %v3088_v1 = vadd.f32 -1.0, %v4043_v33  ;;  %vm2010_vm8 = vcmp.gt.f32.partialorder %v5288_v12, 0.0 }
 0x187   :  { %4052 = vpow2.f32 %v2164_v20  ;;  %v2086_v44 = vmin.f32 %v5307_v32, 0.0  ;;  %v432_v5 = vpop.permute.xlu1 %431  ;;  %v1527_v46 = vsel %vm1152_vm1, %v5234_v16, %v3070_v52  ;;  %v1008_v58 = vmul.f32 %v4464_v8, %v901_v17 }
 0x188   :  { %v4045_v43 = vpop.eup %4044  ;;  %v5321_v27 = vadd.f32 %v1007_v40, %v628_v29  ;;  %v548_v3 = vmul.f32 %v4457_v0, %v432_v5  ;;  %v1662_v31 = vpop.f32.mrb[12].mxu0  ;;  %v2382_v42 = vsel %vm2007_vm2, %v5238_v11, %v3088_v1  ;;  %4054 = vpow2.f32 %v1367_v37 }
 0x189   :  { %v4047_v35 = vpop.eup %4046  ;;  %v2166_v54 = vmul.f32 1.442695, %v2086_v44  ;;  %v5328_v34 = vadd.f32 %v5215_v53, %v1662_v31  ;;  %v3397_v56 = vpop.f32.mrb[13].mxu0  ;;  %3555 = vmatmul.mubr.f32.gmra.mrb[118].mxu0 %v1527_v46  ;;  %3638 = vmatmul.mubr.f32.gmra.mrb[2].mxu1 %v2382_v42  ;;  %v3071_v16 = vadd.f32 -1.0, %v4045_v43  ;;  %v1369_v51 = vmul.f32 1.442695, %v1231_v36 }
 0x18a   :  { %v629_v21 = vadd.f32 %v5246_v14, %v548_v3  ;;  %v905_v45 = vpop.permute.xlu0 %904  ;;  %3557 = vmatprep.mubr.msk.f32.mxu0 %vm4252_vm0, %v4253_v28  ;;  %3640 = vmatprep.mubr.msk.f32.mxu1 %vm4252_vm0, %v4253_v28  ;;  %v3089_v11 = vadd.f32 -1.0, %v4047_v35  ;;  %v1232_v60 = vmin.f32 %v5321_v27, 0.0  ;;  %vm1156_vm9 = vcmp.gt.f32.partialorder %v5299_v26, 0.0 }
 0x18b   :  { %4056 = vpow2.f32 %v2166_v54  ;;  %v2087_v57 = vmin.f32 %v5328_v34, 0.0  ;;  %v437_v61 = vpop.permute.xlu1 %436  ;;  %v1528_v47 = vsel %vm1153_vm3, %v5253_v25, %v3071_v16  ;;  %v1009_v13 = vmul.f32 %v4464_v8, %v905_v45 }
 0x18c   :  { %v4049_v50 = vpop.eup %4048  ;;  %v5342_v9 = vadd.f32 %v1008_v58, %v629_v21  ;;  %v549_v63 = vmul.f32 %v4457_v0, %v437_v61  ;;  %v1667_v7 = vpop.f32.mrb[14].mxu0  ;;  %v2383_v49 = vsel %vm2008_vm4, %v5257_v38, %v3089_v11  ;;  %4058 = vpow2.f32 %v1369_v51 }
 0x18d   :  { %v4051_v10 = vpop.eup %4050  ;;  %v2168_v62 = vmul.f32 1.442695, %v2087_v57  ;;  %v5349_v41 = vadd.f32 %v5215_v53, %v1667_v7  ;;  %v3400_v22 = vpop.f32.mrb[15].mxu0  ;;  %3558 = vmatmul.mubr.f32.gmra.mrb[120].mxu0 %v1528_v47  ;;  %3641 = vmatmul.mubr.f32.gmra.mrb[4].mxu1 %v2383_v49  ;;  %v3072_v25 = vadd.f32 -1.0, %v4049_v50  ;;  %v1371_v33 = vmul.f32 1.442695, %v1232_v60 }
 0x18e   :  { %v630_v23 = vadd.f32 %v5246_v14, %v549_v63  ;;  %v909_v55 = vpop.permute.xlu0 %908  ;;  %3560 = vmatprep.mubr.msk.f32.mxu0 %vm4252_vm0, %v4253_v28  ;;  %3643 = vmatprep.mubr.msk.f32.mxu1 %vm4252_vm0, %v4253_v28  ;;  %v3090_v38 = vadd.f32 -1.0, %v4051_v10  ;;  %v1233_v6 = vmin.f32 %v5342_v9, 0.0  ;;  %vm2011_vm10 = vcmp.gt.f32.partialorder %v5307_v32, 0.0 }
 0x18f   :  { %4060 = vpow2.f32 %v2168_v62  ;;  %v2088_v2 = vmin.f32 %v5349_v41, 0.0  ;;  %v442_v18 = vpop.permute.xlu1 %441  ;;  %v1529_v15 = vsel %vm1154_vm5, %v5267_v48, %v3072_v25  ;;  %v1010_v40 = vmul.f32 %v4464_v8, %v909_v55 }
 0x190   :  { %v550_v24 = vmul.f32 %v4457_v0, %v442_v18  ;;  %v1672_v30 = vpop.f32.mrb[16].mxu0  ;;  %v2384_v19 = vsel %vm2009_vm6, %v5271_v39, %v3090_v38  ;;  %v5364_v59 = vadd.f32 %v1009_v13, %v630_v23  ;;  %4062 = vpow2.f32 %v1371_v33 }
 0x191   :  { %v4053_v20 = vpop.eup %4052  ;;  %v2170_v52 = vmul.f32 1.442695, %v2088_v2  ;;  %v5367_v37 = vadd.f32 %v5215_v53, %v1672_v30  ;;  %v3403_v36 = vpop.f32.mrb[17].mxu0  ;;  %3561 = vmatmul.mubr.f32.gmra.mrb[122].mxu0 %v1529_v15  ;;  %3644 = vmatmul.mubr.f32.gmra.mrb[6].mxu1 %v2384_v19  ;;  %v1373_v42 = vmul.f32 1.442695, %v1233_v6  ;;  %vm1157_vm11 = vcmp.gt.f32.partialorder %v5321_v27, 0.0 }
 0x192   :  { %v4055_v48 = vpop.eup %4054  ;;  %v631_v29 = vadd.f32 %v5246_v14, %v550_v24  ;;  %v913_v17 = vpop.permute.xlu0 %912  ;;  %3563 = vmatprep.mubr.msk.f32.mxu0 %vm4252_vm0, %v4253_v28  ;;  %3646 = vmatprep.mubr.msk.f32.mxu1 %vm4252_vm0, %v4253_v28  ;;  %v3091_v39 = vadd.f32 -1.0, %v4053_v20  ;;  %v1234_v54 = vmin.f32 %v5364_v59, 0.0  ;;  %vm2012_vm12 = vcmp.gt.f32.partialorder %v5328_v34, 0.0 }
 0x193   :  { %4064 = vpow2.f32 %v2170_v52  ;;  %v2089_v1 = vmin.f32 %v5367_v37, 0.0  ;;  %v447_v44 = vpop.permute.xlu1 %446  ;;  %v3073_v5 = vadd.f32 -1.0, %v4055_v48  ;;  %v1011_v47 = vmul.f32 %v4464_v8, %v913_v17 }
 0x194   :  { %v5378_v46 = vadd.f32 %v1010_v40, %v631_v29  ;;  %v551_v43 = vmul.f32 %v4457_v0, %v447_v44  ;;  %v1677_v3 = vpop.f32.mrb[18].mxu0  ;;  %v2385_v31 = vsel %vm2010_vm8, %v5288_v12, %v3091_v39  ;;  %4066 = vpow2.f32 %v1373_v42 }
 0x195   :  { %v4057_v35 = vpop.eup %4056  ;;  %v2172_v56 = vmul.f32 1.442695, %v2089_v1  ;;  %v5384_v16 = vadd.f32 %v5215_v53, %v1677_v3  ;;  %v3406_v58 = vpop.f32.mrb[19].mxu0  ;;  %v1530_v21 = vsel %vm1155_vm7, %v5282_v4, %v3073_v5  ;;  %3647 = vmatmul.mubr.f32.gmra.mrb[8].mxu1 %v2385_v31  ;;  %v1375_v23 = vmul.f32 1.442695, %v1234_v54 }
 0x196   :  { %v4059_v45 = vpop.eup %4058  ;;  %v632_v11 = vadd.f32 %v5246_v14, %v551_v43  ;;  %3564 = vmatmul.mubr.f32.gmra.mrb[124].mxu0 %v1530_v21  ;;  %v917_v51 = vpop.permute.xlu0 %916  ;;  %3649 = vmatprep.mubr.msk.f32.mxu1 %vm4252_vm0, %v4253_v28  ;;  %v3092_v12 = vadd.f32 -1.0, %v4057_v35  ;;  %v1235_v61 = vmin.f32 %v5378_v46, 0.0  ;;  %vm1158_vm13 = vcmp.gt.f32.partialorder %v5342_v9, 0.0 }
 0x197   :  { %4068 = vpow2.f32 %v2172_v56  ;;  %v2090_v60 = vmin.f32 %v5384_v16, 0.0  ;;  %v452_v57 = vpop.permute.xlu1 %451  ;;  %3566 = vmatprep.mubr.msk.f32.mxu0 %vm4252_vm0, %v4253_v28  ;;  %v3074_v4 = vadd.f32 -1.0, %v4059_v45  ;;  %v1012_v15 = vmul.f32 %v4464_v8, %v917_v51 }
 0x198   :  { %v552_v50 = vmul.f32 %v4457_v0, %v452_v57  ;;  %v1682_v63 = vpop.f32.mrb[20].mxu0  ;;  %v2386_v7 = vsel %vm2011_vm10, %v5307_v32, %v3092_v12  ;;  %v5407_v55 = vadd.f32 %v1011_v47, %v632_v11  ;;  %v1377_v48 = vmul.f32 1.442695, %v1235_v61 }
 0x199   :  { %v4061_v49 = vpop.eup %4060  ;;  %v2174_v10 = vmul.f32 1.442695, %v2090_v60  ;;  %v5402_v62 = vadd.f32 %v5215_v53, %v1682_v63  ;;  %v3409_v22 = vpop.f32.mrb[21].mxu0  ;;  %v1531_v25 = vsel %vm1156_vm9, %v5299_v26, %v3074_v4  ;;  %3650 = vmatmul.mubr.f32.gmra.mrb[10].mxu1 %v2386_v7  ;;  %vm2013_vm14 = vcmp.gt.f32.partialorder %v5349_v41, 0.0 }
 0x19a   :  { %v633_v38 = vadd.f32 %v5246_v14, %v552_v50  ;;  %3567 = vmatmul.mubr.f32.gmra.mrb[126].mxu0 %v1531_v25  ;;  %v921_v13 = vpop.permute.xlu0 %920  ;;  %3652 = vmatprep.mubr.msk.f32.mxu1 %vm4252_vm0, %v4253_v28  ;;  %v3093_v32 = vadd.f32 -1.0, %v4061_v49  ;;  %v4063_v26 = vpop.eup %4062  ;;  %v1236_v40 = vmin.f32 %v5407_v55, 0.0  ;;  %vm1159_vm15 = vcmp.gt.f32.partialorder %v5364_v59, 0.0 }
 0x19b   :  { %4070 = vpow2.f32 %v2174_v10  ;;  %v2091_v2 = vmin.f32 %v5402_v62, 0.0  ;;  %v457_v18 = vpop.permute.xlu1 %456  ;;  %3569 = vmatprep.mubr.msk.f32.mxu0 %vm4252_vm0, %v4253_v28  ;;  %v3075_v36 = vadd.f32 -1.0, %v4063_v26  ;;  %vm2014_vm1 = vcmp.gt.f32.partialorder %v5367_v37, 0.0 }
 0x19c   :  { %v553_v6 = vmul.f32 %v4457_v0, %v457_v18  ;;  %v1687_v24 = vpop.f32.mrb[22].mxu0  ;;  %v2387_v30 = vsel %vm2012_vm12, %v5328_v34, %v3093_v32  ;;  %4072 = vpow2.f32 %v1375_v23  ;;  %v5424_v29 = vadd.f32 %v1012_v15, %v633_v38 }
 0x19d   :  { %v4065_v19 = vpop.eup %4064  ;;  %v2176_v33 = vmul.f32 1.442695, %v2091_v2  ;;  %v5421_v20 = vadd.f32 %v5215_v53, %v1687_v24  ;;  %v3412_v52 = vpop.f32.mrb[23].mxu0  ;;  %3653 = vmatmul.mubr.f32.gmra.mrb[12].mxu1 %v2387_v30  ;;  %v1532_v1 = vsel %vm1157_vm11, %v5321_v27, %v3075_v36  ;;  %v1379_v51 = vmul.f32 1.442695, %v1236_v40 }
 0x19e   :  { %v925_v17 = vpop.permute.xlu0 %924  ;;  %3655 = vmatprep.mubr.msk.f32.mxu1 %vm4252_vm0, %v4253_v28  ;;  %v3094_v34 = vadd.f32 -1.0, %v4065_v19  ;;  %v4067_v5 = vpop.eup %4066  ;;  %v634_v43 = vadd.f32 %v5246_v14, %v553_v6  ;;  %3570 = vmatmul.mubr.f32.gmra.mrb[128].mxu0 %v1532_v1  ;;  %v1237_v21 = vmin.f32 %v5424_v29, 0.0  ;;  %vm1160_vm2 = vcmp.gt.f32.partialorder %v5378_v46, 0.0 }
 0x19f   :  { %4074 = vpow2.f32 %v2176_v33  ;;  %v2092_v39 = vmin.f32 %v5421_v20, 0.0  ;;  %v462_v44 = vpop.permute.xlu1 %461  ;;  %3572 = vmatprep.mubr.msk.f32.mxu0 %vm4252_vm0, %v4253_v28  ;;  %v3076_v58 = vadd.f32 -1.0, %v4067_v5  ;;  %v1014_v49 = vmul.f32 %v4464_v8, %v925_v17 }
 0x1a0   :  { %v554_v3 = vmul.f32 %v4457_v0, %v462_v44  ;;  %v1692_v31 = vpop.f32.mrb[24].mxu0  ;;  %v2388_v42 = vsel %vm2013_vm14, %v5349_v41, %v3094_v34  ;;  %4076 = vpow2.f32 %v1377_v48  ;;  %v1013_v41 = vmul.f32 %v4464_v8, %v921_v13 }
 0x1a1   :  { %v4069_v35 = vpop.eup %4068  ;;  %v2178_v54 = vmul.f32 1.442695, %v2092_v39  ;;  %v5439_v56 = vadd.f32 %v5215_v53, %v1692_v31  ;;  %v3415_v27 = vpop.f32.mrb[25].mxu0  ;;  %3656 = vmatmul.mubr.f32.gmra.mrb[14].mxu1 %v2388_v42  ;;  %v1533_v57 = vsel %vm1158_vm13, %v5342_v9, %v3076_v58  ;;  %vm2015_vm3 = vcmp.gt.f32.partialorder %v5384_v16, 0.0 }
 0x1a2   :  { %v929_v45 = vpop.permute.xlu0 %928  ;;  %3658 = vmatprep.mubr.msk.f32.mxu1 %vm4252_vm0, %v4253_v28  ;;  %v3095_v11 = vadd.f32 -1.0, %v4069_v35  ;;  %v635_v12 = vadd.f32 %v5246_v14, %v554_v3  ;;  %v5453_v61 = vadd.f32 %v1013_v41, %v634_v43  ;;  %3573 = vmatmul.mubr.f32.gmra.mrb[130].mxu0 %v1533_v57  ;;  %v1381_v32 = vmul.f32 1.442695, %v1237_v21 }
 0x1a3   :  { %4078 = vpow2.f32 %v2178_v54  ;;  %v2093_v60 = vmin.f32 %v5439_v56, 0.0  ;;  %v467_v4 = vpop.permute.xlu1 %466  ;;  %3575 = vmatprep.mubr.msk.f32.mxu0 %vm4252_vm0, %v4253_v28  ;;  %vm1161_vm4 = vcmp.gt.f32.partialorder %v5407_v55, 0.0  ;;  %vm2016_vm5 = vcmp.gt.f32.partialorder %v5402_v62, 0.0 }
 0x1a4   :  { %v555_v47 = vmul.f32 %v4457_v0, %v467_v4  ;;  %v1697_v50 = vpop.f32.mrb[26].mxu0  ;;  %v2389_v63 = vsel %vm2014_vm1, %v5367_v37, %v3095_v11  ;;  %4080 = vpow2.f32 %v1379_v51  ;;  %v1015_v37 = vmul.f32 %v4464_v8, %v929_v45 }
 0x1a5   :  { %v4071_v7 = vpop.eup %4070  ;;  %v2180_v10 = vmul.f32 1.442695, %v2093_v60  ;;  %v5462_v9 = vadd.f32 %v5215_v53, %v1697_v50  ;;  %v3418_v22 = vpop.f32.mrb[27].mxu0  ;;  %3659 = vmatmul.mubr.f32.gmra.mrb[16].mxu1 %v2389_v63  ;;  %v5471_v2 = vadd.f32 %v1014_v49, %v635_v12  ;;  %v1238_v6 = vmin.f32 %v5453_v61, 0.0 }
 0x1a6   :  { %v4073_v25 = vpop.eup %4072  ;;  %v636_v23 = vadd.f32 %v5246_v14, %v555_v47  ;;  %v933_v38 = vpop.permute.xlu0 %932  ;;  %3661 = vmatprep.mubr.msk.f32.mxu1 %vm4252_vm0, %v4253_v28  ;;  %v3096_v13 = vadd.f32 -1.0, %v4071_v7  ;;  %vm2017_vm6 = vcmp.gt.f32.partialorder %v5421_v20, 0.0  ;;  %vm2018_vm7 = vcmp.gt.f32.partialorder %v5439_v56, 0.0 }
 0x1a7   :  { %4082 = vpow2.f32 %v2180_v10  ;;  %v2094_v18 = vmin.f32 %v5462_v9, 0.0  ;;  %v3077_v26 = vadd.f32 -1.0, %v4073_v25  ;;  %v472_v15 = vpop.permute.xlu1 %471  ;;  %v1239_v44 = vmin.f32 %v5471_v2, 0.0 }
 0x1a8   :  { %v556_v24 = vmul.f32 %v4457_v0, %v472_v15  ;;  %v1702_v30 = vpop.f32.mrb[28].mxu0  ;;  %v2390_v19 = vsel %vm2015_vm3, %v5384_v16, %v3096_v13  ;;  %4084 = vpow2.f32 %v1381_v32  ;;  %v5480_v52 = vadd.f32 %v1015_v37, %v636_v23 }
 0x1a9   :  { %v4075_v33 = vpop.eup %4074  ;;  %v2182_v36 = vmul.f32 1.442695, %v2094_v18  ;;  %v1534_v48 = vsel %vm1159_vm15, %v5364_v59, %v3077_v26  ;;  %v5486_v40 = vadd.f32 %v5215_v53, %v1702_v30  ;;  %v3421_v17 = vpop.f32.mrb[29].mxu0  ;;  %3662 = vmatmul.mubr.f32.gmra.mrb[18].mxu1 %v2390_v19  ;;  %v1016_v16 = vmul.f32 %v4464_v8, %v933_v38 }
 0x1aa   :  { %v4077_v34 = vpop.eup %4076  ;;  %3576 = vmatmul.mubr.f32.gmra.mrb[132].mxu0 %v1534_v48  ;;  %v637_v39 = vadd.f32 %v5246_v14, %v556_v24  ;;  %3664 = vmatprep.mubr.msk.f32.mxu1 %vm4252_vm0, %v4253_v28  ;;  %v3097_v1 = vadd.f32 -1.0, %v4075_v33  ;;  %v937_v43 = vpop.permute.xlu0 %936  ;;  %v1383_v27 = vmul.f32 1.442695, %v1238_v6  ;;  %v1240_v21 = vmin.f32 %v5480_v52, 0.0 }
 0x1ab   :  { %4086 = vpow2.f32 %v2182_v36  ;;  %v2095_v59 = vmin.f32 %v5486_v40, 0.0  ;;  %3578 = vmatprep.mubr.msk.f32.mxu0 %vm4252_vm0, %v4253_v28  ;;  %v3078_v5 = vadd.f32 -1.0, %v4077_v34  ;;  %v477_v3 = vpop.permute.xlu1 %476  ;;  %v1385_v50 = vmul.f32 1.442695, %v1239_v44 }
 0x1ac   :  { %v5497_v31 = vadd.f32 %v1016_v16, %v637_v39  ;;  %v557_v42 = vmul.f32 %v4457_v0, %v477_v3  ;;  %v1707_v35 = vpop.f32.mrb[30].mxu0  ;;  %v2391_v54 = vsel %vm2016_vm5, %v5402_v62, %v3097_v1  ;;  %v1017_v0 = vmul.f32 %v4464_v8, %v937_v43 }
 0x1ad   :  { %v4079_v58 = vpop.eup %4078  ;;  %v2184_v41 = vmul.f32 1.442695, %v2095_v59  ;;  %v1535_v45 = vsel %vm1160_vm2, %v5378_v46, %v3078_v5  ;;  %v5506_v11 = vadd.f32 %v5215_v53, %v1707_v35  ;;  %v3424_v51 = vpop.f32.mrb[31].mxu0  ;;  %3665 = vmatmul.mubr.f32.gmra.mrb[20].mxu1 %v2391_v54  ;;  %4088 = vpow2.f32 %v1383_v27 }
 0x1ae   :  { %v4081_v12 = vpop.eup %4080  ;;  %3579 = vmatmul.mubr.f32.gmra.mrb[134].mxu0 %v1535_v45  ;;  %v638_v62 = vadd.f32 %v5246_v14, %v557_v42  ;;  %3667 = vmatprep.mubr.msk.f32.mxu1 %vm4252_vm0, %v4253_v28  ;;  %v3098_v60 = vadd.f32 -1.0, %v4079_v58  ;;  %v1241_v4 = vmin.f32 %v5497_v31, 0.0  ;;  %v1387_v23 = vmul.f32 1.442695, %v1240_v21 }
 0x1af   :  { %4090 = vpow2.f32 %v2184_v41  ;;  %v2096_v57 = vmin.f32 %v5506_v11, 0.0  ;;  %3581 = vmatprep.mubr.msk.f32.mxu0 %vm4252_vm0, %v4253_v28  ;;  %v3079_v46 = vadd.f32 -1.0, %v4081_v12  ;;  %vm1162_vm8 = vcmp.gt.f32.partialorder %v5424_v29, 0.0 }
 0x1b0   :  { %v5517_v47 = vadd.f32 %v1017_v0, %v638_v62  ;;  %v1712_v8 = vpop.f32.mrb[32].mxu0  ;;  %v2392_v14 = vsel %vm2017_vm6, %v5421_v20, %v3098_v60  ;;  %4092 = vpow2.f32 %v1385_v50  ;;  %v1389_v18 = vmul.f32 1.442695, %v1241_v4 }
 0x1b1   :  { %v4083_v63 = vpop.eup %4082  ;;  %v2186_v7 = vmul.f32 1.442695, %v2096_v57  ;;  %v1536_v49 = vsel %vm1161_vm4, %v5407_v55, %v3079_v46  ;;  %v5524_v10 = vadd.f32 %v5215_v53, %v1712_v8  ;;  %v3427_v22 = vpop.f32.mrb[33].mxu0  ;;  %3668 = vmatmul.mubr.f32.gmra.mrb[22].mxu1 %v2392_v14  ;;  %vm2019_vm9 = vcmp.gt.f32.partialorder %v5462_v9, 0.0 }
 0x1b2   :  { %v4085_v25 = vpop.eup %4084  ;;  %v1242_v37 = vmin.f32 %v5517_v47, 0.0  ;;  %3582 = vmatmul.mubr.f32.gmra.mrb[136].mxu0 %v1536_v49  ;;  %3670 = vmatprep.mubr.msk.f32.mxu1 %vm4252_vm0, %v4253_v28  ;;  %v3099_v20 = vadd.f32 -1.0, %v4083_v63  ;;  %vm1163_vm10 = vcmp.gt.f32.partialorder %v5453_v61, 0.0  ;;  %vm2020_vm11 = vcmp.gt.f32.partialorder %v5486_v40, 0.0 }
 0x1b3   :  { %4094 = vpow2.f32 %v2186_v7  ;;  %v2097_v38 = vmin.f32 %v5524_v10, 0.0  ;;  %3584 = vmatprep.mubr.msk.f32.mxu0 %vm4252_vm0, %v4253_v28  ;;  %v3080_v55 = vadd.f32 -1.0, %v4085_v25  ;;  %vm1164_vm12 = vcmp.gt.f32.partialorder %v5471_v2, 0.0 }
 0x1b4   :  { %v1717_v13 = vpop.f32.mrb[34].mxu0  ;;  %v2393_v32 = vsel %vm2018_vm7, %v5439_v56, %v3099_v20  ;;  %4096 = vpow2.f32 %v1387_v23  ;;  %v1391_v33 = vmul.f32 1.442695, %v1242_v37  ;;  %vm2021_vm13 = vcmp.gt.f32.partialorder %v5506_v11, 0.0 }
 0x1b5   :  { %v4087_v26 = vpop.eup %4086  ;;  %v2188_v15 = vmul.f32 1.442695, %v2097_v38  ;;  %v1537_v6 = vsel %vm1162_vm8, %v5424_v29, %v3080_v55  ;;  %v5537_v24 = vadd.f32 %v5215_v53, %v1717_v13  ;;  %v3430_v30 = vpop.f32.mrb[35].mxu0  ;;  %3671 = vmatmul.mubr.f32.gmra.mrb[24].mxu1 %v2393_v32  ;;  %4098 = vpow2.f32 %v1389_v18  ;;  %v5599_v13 = vld [vmem:[%s5969_s4] ss:$0 sm:$0xff] }
 0x1b6   :  { %3585 = vmatmul.mubr.f32.gmra.mrb[138].mxu0 %v1537_v6  ;;  %3673 = vmatprep.mubr.msk.f32.mxu1 %vm4252_vm0, %v4253_v28  ;;  %v3100_v19 = vadd.f32 -1.0, %v4087_v26  ;;  %vm1165_vm14 = vcmp.gt.f32.partialorder %v5480_v52, 0.0  ;;  %vm2022_vm15 = vcmp.gt.f32.partialorder %v5524_v10, 0.0  ;;  %vm1166_vm1 = vcmp.gt.f32.partialorder %v5497_v31, 0.0 }
 0x1b7   :  { %4100 = vpow2.f32 %v2188_v15  ;;  %v2098_v56 = vmin.f32 %v5537_v24, 0.0  ;;  %3587 = vmatprep.mubr.msk.f32.mxu0 %vm4252_vm0, %v4253_v28  ;;  %v4089_v29 = vpop.eup %4088  ;;  %vm2023_vm2 = vcmp.gt.f32.partialorder %v5537_v24, 0.0  ;;  %vm1167_vm3 = vcmp.gt.f32.partialorder %v5517_v47, 0.0 }
 0x1b8   :  { %v1722_v36 = vpop.f32.mrb[36].mxu0  ;;  %v2394_v48 = vsel %vm2019_vm9, %v5462_v9, %v3100_v19  ;;  %4102 = vpow2.f32 %v1391_v33  ;;  %v3081_v16 = vadd.f32 -1.0, %v4089_v29 }
 0x1b9   :  { %v4091_v17 = vpop.eup %4090  ;;  %v2190_v34 = vmul.f32 1.442695, %v2098_v56  ;;  %v5547_v39 = vadd.f32 %v5215_v53, %v1722_v36  ;;  %v3433_v1 = vpop.f32.mrb[37].mxu0  ;;  %3674 = vmatmul.mubr.f32.gmra.mrb[26].mxu1 %v2394_v48 }
 0x1ba   :  { %3676 = vmatprep.mubr.msk.f32.mxu1 %vm4252_vm0, %v4253_v28  ;;  %v3101_v44 = vadd.f32 -1.0, %v4091_v17  ;;  %v1538_v59 = vsel %vm1163_vm10, %v5453_v61, %v3081_v16  ;;  %v4093_v5 = vpop.eup %4092 }
 0x1bb   :  { %4104 = vpow2.f32 %v2190_v34  ;;  %v2099_v9 = vmin.f32 %v5547_v39, 0.0  ;;  %3588 = vmatmul.mubr.f32.gmra.mrb[140].mxu0 %v1538_v59  ;;  %v3082_v54 = vadd.f32 -1.0, %v4093_v5  ;;  %vm2024_vm4 = vcmp.gt.f32.partialorder %v5547_v39, 0.0 }
 0x1bc   :  { %v1727_v43 = vpop.f32.mrb[38].mxu0  ;;  %v2395_v3 = vsel %vm2020_vm11, %v5486_v40, %v3101_v44  ;;  %3590 = vmatprep.mubr.msk.f32.mxu0 %vm4252_vm0, %v4253_v28 }
 0x1bd   :  { %v4095_v42 = vpop.eup %4094  ;;  %v2192_v35 = vmul.f32 1.442695, %v2099_v9  ;;  %v5559_v27 = vadd.f32 %v5215_v53, %v1727_v43  ;;  %v3436_v58 = vpop.f32.mrb[39].mxu0  ;;  %3677 = vmatmul.mubr.f32.gmra.mrb[28].mxu1 %v2395_v3  ;;  %v1539_v21 = vsel %vm1164_vm12, %v5471_v2, %v3082_v54 }
 0x1be   :  { %v4097_v61 = vpop.eup %4096  ;;  %3679 = vmatprep.mubr.msk.f32.mxu1 %vm4252_vm0, %v4253_v28  ;;  %v3102_v40 = vadd.f32 -1.0, %v4095_v42 }
 0x1bf   :  { %4106 = vpow2.f32 %v2192_v35  ;;  %v2100_v41 = vmin.f32 %v5559_v27, 0.0  ;;  %v3083_v45 = vadd.f32 -1.0, %v4097_v61  ;;  %v4099_v51 = vpop.eup %4098  ;;  %3591 = vmatmul.mubr.f32.gmra.mrb[142].mxu0 %v1539_v21  ;;  %vm2025_vm5 = vcmp.gt.f32.partialorder %v5559_v27, 0.0 }
 0x1c0   :  { %v1732_v12 = vpop.f32.mrb[40].mxu0  ;;  %v2396_v0 = vsel %vm2021_vm13, %v5506_v11, %v3102_v40  ;;  %3593 = vmatprep.mubr.msk.f32.mxu0 %vm4252_vm0, %v4253_v28  ;;  %v3084_v4 = vadd.f32 -1.0, %v4099_v51 }
 0x1c1   :  { %v4101_v62 = vpop.eup %4100  ;;  %v2194_v60 = vmul.f32 1.442695, %v2100_v41  ;;  %v1540_v57 = vsel %vm1165_vm14, %v5480_v52, %v3083_v45  ;;  %v5573_v46 = vadd.f32 %v5215_v53, %v1732_v12  ;;  %v3439_v2 = vpop.f32.mrb[41].mxu0  ;;  %3680 = vmatmul.mubr.f32.gmra.mrb[30].mxu1 %v2396_v0 }
 0x1c2   :  { %v4103_v8 = vpop.eup %4102  ;;  %3682 = vmatprep.mubr.msk.f32.mxu1 %vm4252_vm0, %v4253_v28  ;;  %v3103_v14 = vadd.f32 -1.0, %v4101_v62  ;;  %v1541_v49 = vsel %vm1166_vm1, %v5497_v31, %v3084_v4 }
 0x1c3   :  { %4108 = vpow2.f32 %v2194_v60  ;;  %v2101_v11 = vmin.f32 %v5573_v46, 0.0  ;;  %3594 = vmatmul.mubr.f32.gmra.mrb[144].mxu0 %v1540_v57  ;;  %v3085_v37 = vadd.f32 -1.0, %v4103_v8  ;;  %vm2026_vm6 = vcmp.gt.f32.partialorder %v5573_v46, 0.0 }
 0x1c4   :  { %v1737_v52 = vpop.f32.mrb[42].mxu0  ;;  %v2397_v50 = vsel %vm2022_vm15, %v5524_v10, %v3103_v14  ;;  %3596 = vmatprep.mubr.msk.f32.mxu0 %vm4252_vm0, %v4253_v28 }
 0x1c5   :  { %v4105_v63 = vpop.eup %4104  ;;  %v2196_v7 = vmul.f32 1.442695, %v2101_v11  ;;  %v5585_v22 = vadd.f32 %v5215_v53, %v1737_v52  ;;  %v3442_v25 = vpop.f32.mrb[43].mxu0  ;;  %3683 = vmatmul.mubr.f32.gmra.mrb[32].mxu1 %v2397_v50  ;;  %v1542_v55 = vsel %vm1167_vm3, %v5517_v47, %v3085_v37 }
 0x1c6   :  { %3685 = vmatprep.mubr.msk.f32.mxu1 %vm4252_vm0, %v4253_v28  ;;  %v3104_v20 = vadd.f32 -1.0, %v4105_v63 }
 0x1c7   :  { %4110 = vpow2.f32 %v2196_v7  ;;  %v2102_v10 = vmin.f32 %v5585_v22, 0.0  ;;  %3597 = vmatmul.mubr.f32.gmra.mrb[146].mxu0 %v1541_v49  ;;  %vm2027_vm7 = vcmp.gt.f32.partialorder %v5585_v22, 0.0 }
 0x1c8   :  { %v1742_v23 = vpop.f32.mrb[44].mxu0  ;;  %v2398_v31 = vsel %vm2023_vm2, %v5537_v24, %v3104_v20  ;;  %3599 = vmatprep.mubr.msk.f32.mxu0 %vm4252_vm0, %v4253_v28 }
 0x1c9   :  { %v4107_v53 = vpop.eup %4106  ;;  %v2198_v38 = vmul.f32 1.442695, %v2102_v10  ;;  %v1743_v32 = vadd.f32 %v5599_v13, %v1742_v23  ;;  %v3445_v18 = vpop.f32.mrb[45].mxu0  ;;  %3686 = vmatmul.mubr.f32.gmra.mrb[34].mxu1 %v2398_v31 }
 0x1ca   :  { %3688 = vmatprep.mubr.msk.f32.mxu1 %vm4252_vm0, %v4253_v28  ;;  %v3105_v26 = vadd.f32 -1.0, %v4107_v53 }
 0x1cb   :  { %4112 = vpow2.f32 %v2198_v38  ;;  %v2103_v15 = vmin.f32 %v1743_v32, 0.0  ;;  %3600 = vmatmul.mubr.f32.gmra.mrb[148].mxu0 %v1542_v55  ;;  %vm2028_vm8 = vcmp.gt.f32.partialorder %v1743_v32, 0.0 }
 0x1cc   :  { %v1747_v6 = vpop.f32.mrb[46].mxu0  ;;  %v2399_v47 = vsel %vm2024_vm4, %v5547_v39, %v3105_v26 }
 0x1cd   :  { %v4109_v24 = vpop.eup %4108  ;;  %v2200_v30 = vmul.f32 1.442695, %v2103_v15  ;;  %v1748_v19 = vadd.f32 %v5599_v13, %v1747_v6  ;;  %v3448_v33 = vpop.f32.mrb[47].mxu0  ;;  %3689 = vmatmul.mubr.f32.gmra.mrb[36].mxu1 %v2399_v47 }
 0x1ce   :  { %3691 = vmatprep.mubr.msk.f32.mxu1 %vm4252_vm0, %v4253_v28  ;;  %v3106_v56 = vadd.f32 -1.0, %v4109_v24 }
 0x1cf   :  { %4114 = vpow2.f32 %v2200_v30  ;;  %v2104_v29 = vmin.f32 %v1748_v19, 0.0  ;;  %vm2029_vm9 = vcmp.gt.f32.partialorder %v1748_v19, 0.0 }
 0x1d0   :  { %v1752_v36 = vpop.f32.mrb[48].mxu0  ;;  %v2400_v48 = vsel %vm2025_vm5, %v5559_v27, %v3106_v56 }
 0x1d1   :  { %v4111_v17 = vpop.eup %4110  ;;  %v2202_v34 = vmul.f32 1.442695, %v2104_v29  ;;  %v1753_v16 = vadd.f32 %v5599_v13, %v1752_v36  ;;  %v3451_v39 = vpop.f32.mrb[49].mxu0  ;;  %3692 = vmatmul.mubr.f32.gmra.mrb[38].mxu1 %v2400_v48 }
 0x1d2   :  { %3694 = vmatprep.mubr.msk.f32.mxu1 %vm4252_vm0, %v4253_v28  ;;  %v3107_v1 = vadd.f32 -1.0, %v4111_v17 }
 0x1d3   :  { %4116 = vpow2.f32 %v2202_v34  ;;  %v2105_v44 = vmin.f32 %v1753_v16, 0.0  ;;  %vm2030_vm10 = vcmp.gt.f32.partialorder %v1753_v16, 0.0 }
 0x1d4   :  { %v1757_v59 = vpop.f32.mrb[50].mxu0  ;;  %v2401_v9 = vsel %vm2026_vm6, %v5573_v46, %v3107_v1 }
 0x1d5   :  { %v4113_v5 = vpop.eup %4112  ;;  %v2204_v43 = vmul.f32 1.442695, %v2105_v44  ;;  %v1758_v3 = vadd.f32 %v5599_v13, %v1757_v59  ;;  %v3454_v42 = vpop.f32.mrb[51].mxu0  ;;  %3695 = vmatmul.mubr.f32.gmra.mrb[40].mxu1 %v2401_v9 }
 0x1d6   :  { %3697 = vmatprep.mubr.msk.f32.mxu1 %vm4252_vm0, %v4253_v28  ;;  %v3108_v35 = vadd.f32 -1.0, %v4113_v5 }
 0x1d7   :  { %4118 = vpow2.f32 %v2204_v43  ;;  %v2106_v54 = vmin.f32 %v1758_v3, 0.0  ;;  %vm2031_vm11 = vcmp.gt.f32.partialorder %v1758_v3, 0.0 }
 0x1d8   :  { %v1762_v27 = vpop.f32.mrb[52].mxu0  ;;  %v2402_v58 = vsel %vm2027_vm7, %v5585_v22, %v3108_v35 }
 0x1d9   :  { %v4115_v61 = vpop.eup %4114  ;;  %v2206_v40 = vmul.f32 1.442695, %v2106_v54  ;;  %v1763_v21 = vadd.f32 %v5599_v13, %v1762_v27  ;;  %v3457_v41 = vpop.f32.mrb[53].mxu0  ;;  %3698 = vmatmul.mubr.f32.gmra.mrb[42].mxu1 %v2402_v58 }
 0x1da   :  { %3700 = vmatprep.mubr.msk.f32.mxu1 %vm4252_vm0, %v4253_v28  ;;  %v3109_v45 = vadd.f32 -1.0, %v4115_v61 }
 0x1db   :  { %4120 = vpow2.f32 %v2206_v40  ;;  %v2107_v51 = vmin.f32 %v1763_v21, 0.0  ;;  %vm2032_vm12 = vcmp.gt.f32.partialorder %v1763_v21, 0.0 }
 0x1dc   :  { %v1767_v12 = vpop.f32.mrb[54].mxu0  ;;  %v2403_v0 = vsel %vm2028_vm8, %v1743_v32, %v3109_v45 }
 0x1dd   :  { %v4117_v62 = vpop.eup %4116  ;;  %v2208_v60 = vmul.f32 1.442695, %v2107_v51  ;;  %v1768_v57 = vadd.f32 %v5599_v13, %v1767_v12  ;;  %v3460_v46 = vpop.f32.mrb[55].mxu0  ;;  %3701 = vmatmul.mubr.f32.gmra.mrb[44].mxu1 %v2403_v0 }
 0x1de   :  { %3703 = vmatprep.mubr.msk.f32.mxu1 %vm4252_vm0, %v4253_v28  ;;  %v3110_v2 = vadd.f32 -1.0, %v4117_v62 }
 0x1df   :  { %4122 = vpow2.f32 %v2208_v60  ;;  %v2108_v4 = vmin.f32 %v1768_v57, 0.0  ;;  %vm2033_vm13 = vcmp.gt.f32.partialorder %v1768_v57, 0.0 }
 0x1e0   :  { %v1772_v8 = vpop.f32.mrb[56].mxu0  ;;  %v2404_v14 = vsel %vm2029_vm9, %v1748_v19, %v3110_v2 }
 0x1e1   :  { %v4119_v11 = vpop.eup %4118  ;;  %v2210_v52 = vmul.f32 1.442695, %v2108_v4  ;;  %v1773_v50 = vadd.f32 %v5599_v13, %v1772_v8  ;;  %v3463_v63 = vpop.f32.mrb[57].mxu0  ;;  %3704 = vmatmul.mubr.f32.gmra.mrb[46].mxu1 %v2404_v14 }
 0x1e2   :  { %3706 = vmatprep.mubr.msk.f32.mxu1 %vm4252_vm0, %v4253_v28  ;;  %v3111_v7 = vadd.f32 -1.0, %v4119_v11 }
 0x1e3   :  { %4124 = vpow2.f32 %v2210_v52  ;;  %v2109_v49 = vmin.f32 %v1773_v50, 0.0  ;;  %vm2034_vm14 = vcmp.gt.f32.partialorder %v1773_v50, 0.0 }
 0x1e4   :  { %v1777_v22 = vpop.f32.mrb[58].mxu0  ;;  %v2405_v25 = vsel %vm2030_vm10, %v1753_v16, %v3111_v7 }
 0x1e5   :  { %v4121_v37 = vpop.eup %4120  ;;  %v2212_v20 = vmul.f32 1.442695, %v2109_v49  ;;  %v1778_v10 = vadd.f32 %v5599_v13, %v1777_v22  ;;  %v3466_v23 = vpop.f32.mrb[59].mxu0  ;;  %3707 = vmatmul.mubr.f32.gmra.mrb[48].mxu1 %v2405_v25 }
 0x1e6   :  { %3709 = vmatprep.mubr.msk.f32.mxu1 %vm4252_vm0, %v4253_v28  ;;  %v3112_v31 = vadd.f32 -1.0, %v4121_v37 }
 0x1e7   :  { %4126 = vpow2.f32 %v2212_v20  ;;  %v2110_v53 = vmin.f32 %v1778_v10, 0.0  ;;  %vm2035_vm15 = vcmp.gt.f32.partialorder %v1778_v10, 0.0 }
 0x1e8   :  { %v1782_v38 = vpop.f32.mrb[60].mxu0  ;;  %v2406_v55 = vsel %vm2031_vm11, %v1758_v3, %v3112_v31 }
 0x1e9   :  { %v4123_v32 = vpop.eup %4122  ;;  %v2214_v18 = vmul.f32 1.442695, %v2110_v53  ;;  %v1783_v26 = vadd.f32 %v5599_v13, %v1782_v38  ;;  %v3469_v15 = vpop.f32.mrb[61].mxu0  ;;  %3710 = vmatmul.mubr.f32.gmra.mrb[50].mxu1 %v2406_v55 }
 0x1ea   :  { %3712 = vmatprep.mubr.msk.f32.mxu1 %vm4252_vm0, %v4253_v28  ;;  %v3113_v6 = vadd.f32 -1.0, %v4123_v32 }
 0x1eb   :  { %4128 = vpow2.f32 %v2214_v18  ;;  %v2111_v47 = vmin.f32 %v1783_v26, 0.0  ;;  %vm2036_vm1 = vcmp.gt.f32.partialorder %v1783_v26, 0.0 }
 0x1ec   :  { %v1787_v24 = vpop.f32.mrb[62].mxu0  ;;  %v2407_v30 = vsel %vm2032_vm12, %v1763_v21, %v3113_v6 }
 0x1ed   :  { %v4125_v19 = vpop.eup %4124  ;;  %v2216_v33 = vmul.f32 1.442695, %v2111_v47  ;;  %v1788_v56 = vadd.f32 %v5599_v13, %v1787_v24  ;;  %v3472_v29 = vpop.f32.mrb[63].mxu0  ;;  %3713 = vmatmul.mubr.f32.gmra.mrb[52].mxu1 %v2407_v30 }
 0x1ee   :  { %3715 = vmatprep.mubr.msk.f32.mxu1 %vm4252_vm0, %v4253_v28  ;;  %v3114_v36 = vadd.f32 -1.0, %v4125_v19 }
 0x1ef   :  { %4130 = vpow2.f32 %v2216_v33  ;;  %v2112_v48 = vmin.f32 %v1788_v56, 0.0  ;;  %vm2037_vm2 = vcmp.gt.f32.partialorder %v1788_v56, 0.0 }
 0x1f0   :  { %v1792_v17 = vpop.f32.mrb[64].mxu0  ;;  %v2408_v34 = vsel %vm2033_vm13, %v1768_v57, %v3114_v36 }
 0x1f1   :  { %v4127_v16 = vpop.eup %4126  ;;  %v2218_v39 = vmul.f32 1.442695, %v2112_v48  ;;  %v1793_v1 = vadd.f32 %v5599_v13, %v1792_v17  ;;  %v3475_v44 = vpop.f32.mrb[65].mxu0  ;;  %3716 = vmatmul.mubr.f32.gmra.mrb[54].mxu1 %v2408_v34 }
 0x1f2   :  { %3718 = vmatprep.mubr.msk.f32.mxu1 %vm4252_vm0, %v4253_v28  ;;  %v3115_v59 = vadd.f32 -1.0, %v4127_v16 }
 0x1f3   :  { %4132 = vpow2.f32 %v2218_v39  ;;  %v2113_v9 = vmin.f32 %v1793_v1, 0.0  ;;  %vm2038_vm3 = vcmp.gt.f32.partialorder %v1793_v1, 0.0 }
 0x1f4   :  { %v1797_v5 = vpop.f32.mrb[66].mxu0  ;;  %v2409_v43 = vsel %vm2034_vm14, %v1773_v50, %v3115_v59 }
 0x1f5   :  { %v4129_v3 = vpop.eup %4128  ;;  %v2220_v42 = vmul.f32 1.442695, %v2113_v9  ;;  %v1798_v35 = vadd.f32 %v5599_v13, %v1797_v5  ;;  %v3478_v54 = vpop.f32.mrb[67].mxu0  ;;  %3719 = vmatmul.mubr.f32.gmra.mrb[56].mxu1 %v2409_v43 }
 0x1f6   :  { %3721 = vmatprep.mubr.msk.f32.mxu1 %vm4252_vm0, %v4253_v28  ;;  %v3116_v27 = vadd.f32 -1.0, %v4129_v3 }
 0x1f7   :  { %4134 = vpow2.f32 %v2220_v42  ;;  %v2114_v58 = vmin.f32 %v1798_v35, 0.0  ;;  %vm2039_vm4 = vcmp.gt.f32.partialorder %v1798_v35, 0.0 }
 0x1f8   :  { %v1802_v61 = vpop.f32.mrb[68].mxu0  ;;  %v2410_v40 = vsel %vm2035_vm15, %v1778_v10, %v3116_v27 }
 0x1f9   :  { %v4131_v21 = vpop.eup %4130  ;;  %v2222_v41 = vmul.f32 1.442695, %v2114_v58  ;;  %v1803_v45 = vadd.f32 %v5599_v13, %v1802_v61  ;;  %v3481_v51 = vpop.f32.mrb[69].mxu0  ;;  %3722 = vmatmul.mubr.f32.gmra.mrb[58].mxu1 %v2410_v40 }
 0x1fa   :  { %3724 = vmatprep.mubr.msk.f32.mxu1 %vm4252_vm0, %v4253_v28  ;;  %v3117_v12 = vadd.f32 -1.0, %v4131_v21 }
 0x1fb   :  { %4136 = vpow2.f32 %v2222_v41  ;;  %v2115_v0 = vmin.f32 %v1803_v45, 0.0  ;;  %vm2040_vm5 = vcmp.gt.f32.partialorder %v1803_v45, 0.0 }
 0x1fc   :  { %v1807_v62 = vpop.f32.mrb[70].mxu0  ;;  %v2411_v60 = vsel %vm2036_vm1, %v1783_v26, %v3117_v12 }
 0x1fd   :  { %v4133_v57 = vpop.eup %4132  ;;  %v2224_v46 = vmul.f32 1.442695, %v2115_v0  ;;  %v1808_v2 = vadd.f32 %v5599_v13, %v1807_v62  ;;  %v3484_v4 = vpop.f32.mrb[71].mxu0  ;;  %3725 = vmatmul.mubr.f32.gmra.mrb[60].mxu1 %v2411_v60 }
 0x1fe   :  { %3727 = vmatprep.mubr.msk.f32.mxu1 %vm4252_vm0, %v4253_v28  ;;  %v3118_v8 = vadd.f32 -1.0, %v4133_v57 }
 0x1ff   :  { %4138 = vpow2.f32 %v2224_v46  ;;  %v2116_v14 = vmin.f32 %v1808_v2, 0.0  ;;  %vm2041_vm6 = vcmp.gt.f32.partialorder %v1808_v2, 0.0 }
 0x200   :  { %v1812_v11 = vpop.f32.mrb[72].mxu0  ;;  %v2412_v52 = vsel %vm2037_vm2, %v1788_v56, %v3118_v8 }
 0x201   :  { %v4135_v50 = vpop.eup %4134  ;;  %v2226_v63 = vmul.f32 1.442695, %v2116_v14  ;;  %v1813_v7 = vadd.f32 %v5599_v13, %v1812_v11  ;;  %v3487_v49 = vpop.f32.mrb[73].mxu0  ;;  %3728 = vmatmul.mubr.f32.gmra.mrb[62].mxu1 %v2412_v52 }
 0x202   :  { %3730 = vmatprep.mubr.msk.f32.mxu1 %vm4252_vm0, %v4253_v28  ;;  %v3119_v22 = vadd.f32 -1.0, %v4135_v50 }
 0x203   :  { %4140 = vpow2.f32 %v2226_v63  ;;  %v2117_v25 = vmin.f32 %v1813_v7, 0.0  ;;  %vm2042_vm7 = vcmp.gt.f32.partialorder %v1813_v7, 0.0 }
 0x204   :  { %v1817_v37 = vpop.f32.mrb[74].mxu0  ;;  %v2413_v20 = vsel %vm2038_vm3, %v1793_v1, %v3119_v22 }
 0x205   :  { %v4137_v10 = vpop.eup %4136  ;;  %v2228_v23 = vmul.f32 1.442695, %v2117_v25  ;;  %v1818_v31 = vadd.f32 %v5599_v13, %v1817_v37  ;;  %v3490_v53 = vpop.f32.mrb[75].mxu0  ;;  %3731 = vmatmul.mubr.f32.gmra.mrb[64].mxu1 %v2413_v20 }
 0x206   :  { %3733 = vmatprep.mubr.msk.f32.mxu1 %vm4252_vm0, %v4253_v28  ;;  %v3120_v38 = vadd.f32 -1.0, %v4137_v10 }
 0x207   :  { %4142 = vpow2.f32 %v2228_v23  ;;  %v2118_v55 = vmin.f32 %v1818_v31, 0.0  ;;  %vm2043_vm8 = vcmp.gt.f32.partialorder %v1818_v31, 0.0 }
 0x208   :  { %v1822_v32 = vpop.f32.mrb[76].mxu0  ;;  %v2414_v18 = vsel %vm2039_vm4, %v1798_v35, %v3120_v38 }
 0x209   :  { %v4139_v26 = vpop.eup %4138  ;;  %v2230_v15 = vmul.f32 1.442695, %v2118_v55  ;;  %v1823_v6 = vadd.f32 %v5599_v13, %v1822_v32  ;;  %v3493_v47 = vpop.f32.mrb[77].mxu0  ;;  %3734 = vmatmul.mubr.f32.gmra.mrb[66].mxu1 %v2414_v18 }
 0x20a   :  { %3736 = vmatprep.mubr.msk.f32.mxu1 %vm4252_vm0, %v4253_v28  ;;  %v3121_v24 = vadd.f32 -1.0, %v4139_v26 }
 0x20b   :  { %4144 = vpow2.f32 %v2230_v15  ;;  %v2119_v30 = vmin.f32 %v1823_v6, 0.0  ;;  %vm2044_vm9 = vcmp.gt.f32.partialorder %v1823_v6, 0.0 }
 0x20c   :  { %v1827_v19 = vpop.f32.mrb[78].mxu0  ;;  %v2415_v33 = vsel %vm2040_vm5, %v1803_v45, %v3121_v24 }
 0x20d   :  { %v4141_v56 = vpop.eup %4140  ;;  %v2232_v29 = vmul.f32 1.442695, %v2119_v30  ;;  %v1828_v36 = vadd.f32 %v5599_v13, %v1827_v19  ;;  %v3496_v48 = vpop.f32.mrb[79].mxu0  ;;  %3737 = vmatmul.mubr.f32.gmra.mrb[68].mxu1 %v2415_v33 }
 0x20e   :  { %3739 = vmatprep.mubr.msk.f32.mxu1 %vm4252_vm0, %v4253_v28  ;;  %v3122_v17 = vadd.f32 -1.0, %v4141_v56 }
 0x20f   :  { %4146 = vpow2.f32 %v2232_v29  ;;  %v2120_v34 = vmin.f32 %v1828_v36, 0.0  ;;  %vm2045_vm10 = vcmp.gt.f32.partialorder %v1828_v36, 0.0 }
 0x210   :  { %v1832_v16 = vpop.f32.mrb[80].mxu0  ;;  %v2416_v39 = vsel %vm2041_vm6, %v1808_v2, %v3122_v17 }
 0x211   :  { %v4143_v1 = vpop.eup %4142  ;;  %v2234_v44 = vmul.f32 1.442695, %v2120_v34  ;;  %v1833_v59 = vadd.f32 %v5599_v13, %v1832_v16  ;;  %v3499_v9 = vpop.f32.mrb[81].mxu0  ;;  %3740 = vmatmul.mubr.f32.gmra.mrb[70].mxu1 %v2416_v39 }
 0x212   :  { %3742 = vmatprep.mubr.msk.f32.mxu1 %vm4252_vm0, %v4253_v28  ;;  %v3123_v5 = vadd.f32 -1.0, %v4143_v1 }
 0x213   :  { %4148 = vpow2.f32 %v2234_v44  ;;  %v2121_v43 = vmin.f32 %v1833_v59, 0.0  ;;  %vm2046_vm11 = vcmp.gt.f32.partialorder %v1833_v59, 0.0 }
 0x214   :  { %v1837_v3 = vpop.f32.mrb[82].mxu0  ;;  %v2417_v42 = vsel %vm2042_vm7, %v1813_v7, %v3123_v5 }
 0x215   :  { %v4145_v35 = vpop.eup %4144  ;;  %v2236_v54 = vmul.f32 1.442695, %v2121_v43  ;;  %v1838_v27 = vadd.f32 %v5599_v13, %v1837_v3  ;;  %v3502_v58 = vpop.f32.mrb[83].mxu0  ;;  %3743 = vmatmul.mubr.f32.gmra.mrb[72].mxu1 %v2417_v42 }
 0x216   :  { %3745 = vmatprep.mubr.msk.f32.mxu1 %vm4252_vm0, %v4253_v28  ;;  %v3124_v61 = vadd.f32 -1.0, %v4145_v35 }
 0x217   :  { %4150 = vpow2.f32 %v2236_v54  ;;  %v2122_v40 = vmin.f32 %v1838_v27, 0.0  ;;  %vm2047_vm12 = vcmp.gt.f32.partialorder %v1838_v27, 0.0 }
 0x218   :  { %v1842_v21 = vpop.f32.mrb[84].mxu0  ;;  %v2418_v41 = vsel %vm2043_vm8, %v1818_v31, %v3124_v61 }
 0x219   :  { %v4147_v45 = vpop.eup %4146  ;;  %v2238_v51 = vmul.f32 1.442695, %v2122_v40  ;;  %v1843_v12 = vadd.f32 %v5599_v13, %v1842_v21  ;;  %v3505_v0 = vpop.f32.mrb[85].mxu0  ;;  %3746 = vmatmul.mubr.f32.gmra.mrb[74].mxu1 %v2418_v41 }
 0x21a   :  { %3748 = vmatprep.mubr.msk.f32.mxu1 %vm4252_vm0, %v4253_v28  ;;  %v3125_v62 = vadd.f32 -1.0, %v4147_v45 }
 0x21b   :  { %4152 = vpow2.f32 %v2238_v51  ;;  %v2123_v60 = vmin.f32 %v1843_v12, 0.0  ;;  %vm2048_vm13 = vcmp.gt.f32.partialorder %v1843_v12, 0.0 }
 0x21c   :  { %v1847_v57 = vpop.f32.mrb[86].mxu0  ;;  %v2419_v46 = vsel %vm2044_vm9, %v1823_v6, %v3125_v62 }
 0x21d   :  { %v4149_v2 = vpop.eup %4148  ;;  %v2240_v4 = vmul.f32 1.442695, %v2123_v60  ;;  %v1848_v8 = vadd.f32 %v5599_v13, %v1847_v57  ;;  %v3508_v14 = vpop.f32.mrb[87].mxu0  ;;  %3749 = vmatmul.mubr.f32.gmra.mrb[76].mxu1 %v2419_v46 }
 0x21e   :  { %3751 = vmatprep.mubr.msk.f32.mxu1 %vm4252_vm0, %v4253_v28  ;;  %v3126_v11 = vadd.f32 -1.0, %v4149_v2 }
 0x21f   :  { %4154 = vpow2.f32 %v2240_v4  ;;  %v2124_v52 = vmin.f32 %v1848_v8, 0.0  ;;  %vm2049_vm14 = vcmp.gt.f32.partialorder %v1848_v8, 0.0 }
 0x220   :  { %v1852_v50 = vpop.f32.mrb[88].mxu0  ;;  %v2420_v63 = vsel %vm2045_vm10, %v1828_v36, %v3126_v11 }
 0x221   :  { %v4151_v7 = vpop.eup %4150  ;;  %v2242_v49 = vmul.f32 1.442695, %v2124_v52  ;;  %v1853_v22 = vadd.f32 %v5599_v13, %v1852_v50  ;;  %v3511_v25 = vpop.f32.mrb[89].mxu0  ;;  %3752 = vmatmul.mubr.f32.gmra.mrb[78].mxu1 %v2420_v63 }
 0x222   :  { %3754 = vmatprep.mubr.msk.f32.mxu1 %vm4252_vm0, %v4253_v28  ;;  %v3127_v37 = vadd.f32 -1.0, %v4151_v7 }
 0x223   :  { %4156 = vpow2.f32 %v2242_v49  ;;  %v2125_v20 = vmin.f32 %v1853_v22, 0.0  ;;  %vm2050_vm15 = vcmp.gt.f32.partialorder %v1853_v22, 0.0 }
 0x224   :  { %v1857_v10 = vpop.f32.mrb[90].mxu0  ;;  %v2421_v23 = vsel %vm2046_vm11, %v1833_v59, %v3127_v37 }
 0x225   :  { %v4153_v31 = vpop.eup %4152  ;;  %v2244_v53 = vmul.f32 1.442695, %v2125_v20  ;;  %v1858_v38 = vadd.f32 %v5599_v13, %v1857_v10  ;;  %v3514_v55 = vpop.f32.mrb[91].mxu0  ;;  %3755 = vmatmul.mubr.f32.gmra.mrb[80].mxu1 %v2421_v23 }
 0x226   :  { %3757 = vmatprep.mubr.msk.f32.mxu1 %vm4252_vm0, %v4253_v28  ;;  %v3128_v32 = vadd.f32 -1.0, %v4153_v31 }
 0x227   :  { %4158 = vpow2.f32 %v2244_v53  ;;  %v2126_v18 = vmin.f32 %v1858_v38, 0.0  ;;  %vm2051_vm1 = vcmp.gt.f32.partialorder %v1858_v38, 0.0 }
 0x228   :  { %v1862_v26 = vpop.f32.mrb[92].mxu0  ;;  %v2422_v15 = vsel %vm2047_vm12, %v1838_v27, %v3128_v32 }
 0x229   :  { %v4155_v6 = vpop.eup %4154  ;;  %v2246_v47 = vmul.f32 1.442695, %v2126_v18  ;;  %v1863_v24 = vadd.f32 %v5599_v13, %v1862_v26  ;;  %v3517_v30 = vpop.f32.mrb[93].mxu0  ;;  %3758 = vmatmul.mubr.f32.gmra.mrb[82].mxu1 %v2422_v15 }
 0x22a   :  { %3760 = vmatprep.mubr.msk.f32.mxu1 %vm4252_vm0, %v4253_v28  ;;  %v3129_v19 = vadd.f32 -1.0, %v4155_v6 }
 0x22b   :  { %4160 = vpow2.f32 %v2246_v47  ;;  %v2127_v33 = vmin.f32 %v1863_v24, 0.0  ;;  %vm2052_vm2 = vcmp.gt.f32.partialorder %v1863_v24, 0.0 }
 0x22c   :  { %v1867_v56 = vpop.f32.mrb[94].mxu0  ;;  %v2423_v29 = vsel %vm2048_vm13, %v1843_v12, %v3129_v19 }
 0x22d   :  { %v4157_v36 = vpop.eup %4156  ;;  %v2248_v48 = vmul.f32 1.442695, %v2127_v33  ;;  %v1868_v17 = vadd.f32 %v5599_v13, %v1867_v56  ;;  %v3520_v34 = vpop.f32.mrb[95].mxu0  ;;  %3761 = vmatmul.mubr.f32.gmra.mrb[84].mxu1 %v2423_v29 }
 0x22e   :  { %3763 = vmatprep.mubr.msk.f32.mxu1 %vm4252_vm0, %v4253_v28  ;;  %v3130_v16 = vadd.f32 -1.0, %v4157_v36 }
 0x22f   :  { %4162 = vpow2.f32 %v2248_v48  ;;  %v2128_v39 = vmin.f32 %v1868_v17, 0.0  ;;  %vm2053_vm3 = vcmp.gt.f32.partialorder %v1868_v17, 0.0 }
 0x230   :  { %v1872_v1 = vpop.f32.mrb[96].mxu0  ;;  %v2424_v44 = vsel %vm2049_vm14, %v1848_v8, %v3130_v16 }
 0x231   :  { %v4159_v59 = vpop.eup %4158  ;;  %v2250_v9 = vmul.f32 1.442695, %v2128_v39  ;;  %v1873_v5 = vadd.f32 %v5599_v13, %v1872_v1  ;;  %v3523_v43 = vpop.f32.mrb[97].mxu0  ;;  %3764 = vmatmul.mubr.f32.gmra.mrb[86].mxu1 %v2424_v44 }
 0x232   :  { %3766 = vmatprep.mubr.msk.f32.mxu1 %vm4252_vm0, %v4253_v28  ;;  %v3131_v3 = vadd.f32 -1.0, %v4159_v59 }
 0x233   :  { %4164 = vpow2.f32 %v2250_v9  ;;  %v2129_v42 = vmin.f32 %v1873_v5, 0.0  ;;  %vm2054_vm4 = vcmp.gt.f32.partialorder %v1873_v5, 0.0 }
 0x234   :  { %v1877_v35 = vpop.f32.mrb[98].mxu0  ;;  %v2425_v54 = vsel %vm2050_vm15, %v1853_v22, %v3131_v3 }
 0x235   :  { %v4161_v27 = vpop.eup %4160  ;;  %v2252_v58 = vmul.f32 1.442695, %v2129_v42  ;;  %v1878_v61 = vadd.f32 %v5599_v13, %v1877_v35  ;;  %v3526_v40 = vpop.f32.mrb[99].mxu0  ;;  %3767 = vmatmul.mubr.f32.gmra.mrb[88].mxu1 %v2425_v54 }
 0x236   :  { %3769 = vmatprep.mubr.msk.f32.mxu1 %vm4252_vm0, %v4253_v28  ;;  %v3132_v21 = vadd.f32 -1.0, %v4161_v27 }
 0x237   :  { %4166 = vpow2.f32 %v2252_v58  ;;  %v2130_v41 = vmin.f32 %v1878_v61, 0.0  ;;  %vm2055_vm5 = vcmp.gt.f32.partialorder %v1878_v61, 0.0 }
 0x238   :  { %v1882_v45 = vpop.f32.mrb[100].mxu0  ;;  %v2426_v51 = vsel %vm2051_vm1, %v1858_v38, %v3132_v21 }
 0x239   :  { %v4163_v12 = vpop.eup %4162  ;;  %v2254_v0 = vmul.f32 1.442695, %v2130_v41  ;;  %v1883_v62 = vadd.f32 %v5599_v13, %v1882_v45  ;;  %v3529_v60 = vpop.f32.mrb[101].mxu0  ;;  %3770 = vmatmul.mubr.f32.gmra.mrb[90].mxu1 %v2426_v51  ;;  %v5729_v45 = vld [vmem:[%s5971_s6] ss:$0 sm:$0xff] }
 0x23a   :  { %3772 = vmatprep.mubr.msk.f32.mxu1 %vm4252_vm0, %v4253_v28  ;;  %v3133_v57 = vadd.f32 -1.0, %v4163_v12 }
 0x23b   :  { %4168 = vpow2.f32 %v2254_v0  ;;  %v2131_v46 = vmin.f32 %v1883_v62, 0.0  ;;  %vm2056_vm6 = vcmp.gt.f32.partialorder %v1883_v62, 0.0 }
 0x23c   :  { %v1887_v2 = vpop.f32.mrb[102].mxu0  ;;  %v2427_v4 = vsel %vm2052_vm2, %v1863_v24, %v3133_v57 }
 0x23d   :  { %v4165_v8 = vpop.eup %4164  ;;  %v2256_v14 = vmul.f32 1.442695, %v2131_v46  ;;  %v1888_v11 = vadd.f32 %v5599_v13, %v1887_v2  ;;  %v3532_v52 = vpop.f32.mrb[103].mxu0  ;;  %3773 = vmatmul.mubr.f32.gmra.mrb[92].mxu1 %v2427_v4 }
 0x23e   :  { %3775 = vmatprep.mubr.msk.f32.mxu1 %vm4252_vm0, %v4253_v28  ;;  %v3134_v50 = vadd.f32 -1.0, %v4165_v8 }
 0x23f   :  { %4170 = vpow2.f32 %v2256_v14  ;;  %v2132_v63 = vmin.f32 %v1888_v11, 0.0  ;;  %vm2057_vm7 = vcmp.gt.f32.partialorder %v1888_v11, 0.0 }
 0x240   :  { %v1892_v7 = vpop.f32.mrb[104].mxu0  ;;  %v2428_v49 = vsel %vm2053_vm3, %v1868_v17, %v3134_v50 }
 0x241   :  { %v4167_v22 = vpop.eup %4166  ;;  %v2258_v25 = vmul.f32 1.442695, %v2132_v63  ;;  %v1893_v37 = vadd.f32 %v5599_v13, %v1892_v7  ;;  %v3535_v20 = vpop.f32.mrb[105].mxu0  ;;  %3776 = vmatmul.mubr.f32.gmra.mrb[94].mxu1 %v2428_v49 }
 0x242   :  { %3778 = vmatprep.mubr.msk.f32.mxu1 %vm4252_vm0, %v4253_v28  ;;  %v3135_v10 = vadd.f32 -1.0, %v4167_v22 }
 0x243   :  { %4172 = vpow2.f32 %v2258_v25  ;;  %v2133_v23 = vmin.f32 %v1893_v37, 0.0  ;;  %vm2058_vm8 = vcmp.gt.f32.partialorder %v1893_v37, 0.0 }
 0x244   :  { %v1897_v31 = vpop.f32.mrb[106].mxu0  ;;  %v2429_v53 = vsel %vm2054_vm4, %v1873_v5, %v3135_v10 }
 0x245   :  { %v4169_v38 = vpop.eup %4168  ;;  %v2260_v55 = vmul.f32 1.442695, %v2133_v23  ;;  %v1898_v32 = vadd.f32 %v5599_v13, %v1897_v31  ;;  %v3538_v18 = vpop.f32.mrb[107].mxu0  ;;  %3779 = vmatmul.mubr.f32.gmra.mrb[96].mxu1 %v2429_v53 }
 0x246   :  { %3781 = vmatprep.mubr.msk.f32.mxu1 %vm4252_vm0, %v4253_v28  ;;  %v3136_v26 = vadd.f32 -1.0, %v4169_v38 }
 0x247   :  { %4174 = vpow2.f32 %v2260_v55  ;;  %v2134_v15 = vmin.f32 %v1898_v32, 0.0  ;;  %vm2059_vm9 = vcmp.gt.f32.partialorder %v1898_v32, 0.0 }
 0x248   :  { %v1902_v6 = vpop.f32.mrb[108].mxu0  ;;  %v2430_v47 = vsel %vm2055_vm5, %v1878_v61, %v3136_v26 }
 0x249   :  { %v4171_v24 = vpop.eup %4170  ;;  %v2262_v30 = vmul.f32 1.442695, %v2134_v15  ;;  %v5706_v19 = vadd.f32 %v5599_v13, %v1902_v6  ;;  %v3541_v33 = vpop.f32.mrb[109].mxu0  ;;  %3782 = vmatmul.mubr.f32.gmra.mrb[98].mxu1 %v2430_v47 }
 0x24a   :  { %3784 = vmatprep.mubr.msk.f32.mxu1 %vm4252_vm0, %v4253_v28  ;;  %v3137_v56 = vadd.f32 -1.0, %v4171_v24 }
 0x24b   :  { %4176 = vpow2.f32 %v2262_v30  ;;  %v2135_v29 = vmin.f32 %v5706_v19, 0.0  ;;  %vm2060_vm10 = vcmp.gt.f32.partialorder %v5706_v19, 0.0 }
 0x24c   :  { %v1907_v36 = vpop.f32.mrb[110].mxu0  ;;  %v2431_v48 = vsel %vm2056_vm6, %v1883_v62, %v3137_v56 }
 0x24d   :  { %v4173_v17 = vpop.eup %4172  ;;  %v2264_v34 = vmul.f32 1.442695, %v2135_v29  ;;  %v5712_v16 = vadd.f32 %v5599_v13, %v1907_v36  ;;  %v3544_v39 = vpop.f32.mrb[111].mxu0  ;;  %3785 = vmatmul.mubr.f32.gmra.mrb[100].mxu1 %v2431_v48 }
 0x24e   :  { %3787 = vmatprep.mubr.msk.f32.mxu1 %vm4252_vm0, %v4253_v28  ;;  %v3138_v1 = vadd.f32 -1.0, %v4173_v17 }
 0x24f   :  { %4178 = vpow2.f32 %v2264_v34  ;;  %v2136_v44 = vmin.f32 %v5712_v16, 0.0  ;;  %vm2061_vm11 = vcmp.gt.f32.partialorder %v5712_v16, 0.0 }
 0x250   :  { %v1912_v59 = vpop.f32.mrb[112].mxu0  ;;  %v2432_v9 = vsel %vm2057_vm7, %v1888_v11, %v3138_v1 }
 0x251   :  { %v4175_v5 = vpop.eup %4174  ;;  %v2266_v43 = vmul.f32 1.442695, %v2136_v44  ;;  %v5718_v3 = vadd.f32 %v5599_v13, %v1912_v59  ;;  %v3547_v42 = vpop.f32.mrb[113].mxu0  ;;  %3788 = vmatmul.mubr.f32.gmra.mrb[102].mxu1 %v2432_v9 }
 0x252   :  { %3790 = vmatprep.mubr.msk.f32.mxu1 %vm4252_vm0, %v4253_v28  ;;  %v3139_v35 = vadd.f32 -1.0, %v4175_v5 }
 0x253   :  { %4180 = vpow2.f32 %v2266_v43  ;;  %v2137_v54 = vmin.f32 %v5718_v3, 0.0  ;;  %vm2062_vm12 = vcmp.gt.f32.partialorder %v5718_v3, 0.0 }
 0x254   :  { %v1917_v27 = vpop.f32.mrb[114].mxu0  ;;  %v2433_v58 = vsel %vm2058_vm8, %v1893_v37, %v3139_v35 }
 0x255   :  { %v4177_v61 = vpop.eup %4176  ;;  %v2268_v40 = vmul.f32 1.442695, %v2137_v54  ;;  %v5724_v21 = vadd.f32 %v5599_v13, %v1917_v27  ;;  %v3550_v41 = vpop.f32.mrb[115].mxu0  ;;  %3791 = vmatmul.mubr.f32.gmra.mrb[104].mxu1 %v2433_v58 }
 0x256   :  { %3793 = vmatprep.mubr.msk.f32.mxu1 %vm4252_vm0, %v4253_v28  ;;  %v3140_v51 = vadd.f32 -1.0, %v4177_v61 }
 0x257   :  { %4182 = vpow2.f32 %v2268_v40  ;;  %v2138_v12 = vmin.f32 %v5724_v21, 0.0  ;;  %vm2063_vm13 = vcmp.gt.f32.partialorder %v5724_v21, 0.0 }
 0x258   :  { %v1922_v0 = vpop.f32.mrb[116].mxu0  ;;  %v2545_v62 = vpop.f32.mrb[0].mxu1  ;;  %v2434_v60 = vsel %vm2059_vm9, %v1898_v32, %v3140_v51 }
 0x259   :  { %v4179_v57 = vpop.eup %4178  ;;  %v2270_v46 = vmul.f32 1.442695, %v2138_v12  ;;  %v5735_v2 = vadd.f32 %v5599_v13, %v1922_v0  ;;  %v2546_v4 = vadd.f32 %v5729_v45, %v2545_v62  ;;  %v3553_v8 = vpop.f32.mrb[117].mxu0  ;;  %3794 = vmatmul.mubr.f32.gmra.mrb[106].mxu1 %v2434_v60  ;;  %v5783_v0 = vld [vmem:[%s5969_s4] ss:$0 sm:$0xff] }
 0x25a   :  { %v3636_v14 = vpop.f32.mrb[1].mxu1  ;;  %3796 = vmatprep.mubr.msk.f32.mxu1 %vm4252_vm0, %v4253_v28  ;;  %v3141_v11 = vadd.f32 -1.0, %v4179_v57 }
 0x25b   :  { %4184 = vpow2.f32 %v2270_v46  ;;  %v2139_v52 = vmin.f32 %v5735_v2, 0.0  ;;  %2919 = vst [vmem:[#allocation2] sm:$0xff] %v2546_v4  ;;  %vm2064_vm14 = vcmp.gt.f32.partialorder %v5735_v2, 0.0 }
 0x25c   :  { %v1927_v50 = vpop.f32.mrb[118].mxu0  ;;  %v2550_v63 = vpop.f32.mrb[2].mxu1  ;;  %v2435_v7 = vsel %vm2060_vm10, %v5706_v19, %v3141_v11 }
 0x25d   :  { %v4181_v49 = vpop.eup %4180  ;;  %v2272_v22 = vmul.f32 1.442695, %v2139_v52  ;;  %v5744_v25 = vadd.f32 %v5599_v13, %v1927_v50  ;;  %v2551_v37 = vadd.f32 %v5729_v45, %v2550_v63  ;;  %v3556_v20 = vpop.f32.mrb[119].mxu0  ;;  %3797 = vmatmul.mubr.f32.gmra.mrb[108].mxu1 %v2435_v7 }
 0x25e   :  { %v3639_v10 = vpop.f32.mrb[3].mxu1  ;;  %3799 = vmatprep.mubr.msk.f32.mxu1 %vm4252_vm0, %v4253_v28  ;;  %v3142_v23 = vadd.f32 -1.0, %v4181_v49 }
 0x25f   :  { %4186 = vpow2.f32 %v2272_v22  ;;  %v2140_v31 = vmin.f32 %v5744_v25, 0.0  ;;  %2920 = vst [vmem:[#allocation2 + $0x8] sm:$0xff] %v2551_v37  ;;  %vm2065_vm15 = vcmp.gt.f32.partialorder %v5744_v25, 0.0 }
 0x260   :  { %v1932_v53 = vpop.f32.mrb[120].mxu0  ;;  %v2555_v38 = vpop.f32.mrb[4].mxu1  ;;  %v2436_v55 = vsel %vm2061_vm11, %v5712_v16, %v3142_v23 }
 0x261   :  { %v4183_v32 = vpop.eup %4182  ;;  %v2274_v18 = vmul.f32 1.442695, %v2140_v31  ;;  %v5753_v26 = vadd.f32 %v5599_v13, %v1932_v53  ;;  %v2556_v15 = vadd.f32 %v5729_v45, %v2555_v38  ;;  %v3559_v6 = vpop.f32.mrb[121].mxu0  ;;  %3800 = vmatmul.mubr.f32.gmra.mrb[110].mxu1 %v2436_v55 }
 0x262   :  { %v3642_v47 = vpop.f32.mrb[5].mxu1  ;;  %3802 = vmatprep.mubr.msk.f32.mxu1 %vm4252_vm0, %v4253_v28  ;;  %v3143_v24 = vadd.f32 -1.0, %v4183_v32 }
 0x263   :  { %4188 = vpow2.f32 %v2274_v18  ;;  %v2141_v30 = vmin.f32 %v5753_v26, 0.0  ;;  %2921 = vst [vmem:[#allocation2 + $0x10] sm:$0xff] %v2556_v15  ;;  %vm2066_vm1 = vcmp.gt.f32.partialorder %v5753_v26, 0.0 }
 0x264   :  { %v1937_v19 = vpop.f32.mrb[122].mxu0  ;;  %v2560_v33 = vpop.f32.mrb[6].mxu1  ;;  %v2437_v56 = vsel %vm2062_vm12, %v5718_v3, %v3143_v24 }
 0x265   :  { %v4185_v29 = vpop.eup %4184  ;;  %v2276_v36 = vmul.f32 1.442695, %v2141_v30  ;;  %v5762_v48 = vadd.f32 %v5599_v13, %v1937_v19  ;;  %v2561_v17 = vadd.f32 %v5729_v45, %v2560_v33  ;;  %v3562_v34 = vpop.f32.mrb[123].mxu0  ;;  %3803 = vmatmul.mubr.f32.gmra.mrb[112].mxu1 %v2437_v56 }
 0x266   :  { %v3645_v16 = vpop.f32.mrb[7].mxu1  ;;  %3805 = vmatprep.mubr.msk.f32.mxu1 %vm4252_vm0, %v4253_v28  ;;  %v3144_v39 = vadd.f32 -1.0, %v4185_v29 }
 0x267   :  { %4190 = vpow2.f32 %v2276_v36  ;;  %v2142_v1 = vmin.f32 %v5762_v48, 0.0  ;;  %2922 = vst [vmem:[#allocation2 + $0x18] sm:$0xff] %v2561_v17  ;;  %vm2067_vm2 = vcmp.gt.f32.partialorder %v5762_v48, 0.0 }
 0x268   :  { %v2565_v44 = vpop.f32.mrb[8].mxu1  ;;  %v2438_v59 = vsel %vm2063_vm13, %v5724_v21, %v3144_v39 }
 0x269   :  { %v4187_v9 = vpop.eup %4186  ;;  %v2278_v5 = vmul.f32 1.442695, %v2142_v1  ;;  %v1942_v43 = vpop.f32.mrb[124].mxu0  ;;  %v2566_v3 = vadd.f32 %v5729_v45, %v2565_v44  ;;  %3806 = vmatmul.mubr.f32.gmra.mrb[114].mxu1 %v2438_v59 }
 0x26a   :  { %v3648_v42 = vpop.f32.mrb[9].mxu1  ;;  %v5772_v35 = vadd.f32 %v5599_v13, %v1942_v43  ;;  %v3565_v54 = vpop.f32.mrb[125].mxu0  ;;  %3808 = vmatprep.mubr.msk.f32.mxu1 %vm4252_vm0, %v4253_v28  ;;  %v3145_v27 = vadd.f32 -1.0, %v4187_v9 }
 0x26b   :  { %4192 = vpow2.f32 %v2278_v5  ;;  %2923 = vst [vmem:[#allocation2 + $0x20] sm:$0xff] %v2566_v3 }
 0x26c   :  { %v2143_v58 = vmin.f32 %v5772_v35, 0.0  ;;  %v2570_v61 = vpop.f32.mrb[10].mxu1  ;;  %v2439_v40 = vsel %vm2064_vm14, %v5735_v2, %v3145_v27  ;;  %vm2068_vm3 = vcmp.gt.f32.partialorder %v5772_v35, 0.0 }
 0x26d   :  { %v4189_v21 = vpop.eup %4188  ;;  %v1947_v41 = vpop.f32.mrb[126].mxu0  ;;  %v2571_v51 = vadd.f32 %v5729_v45, %v2570_v61  ;;  %3809 = vmatmul.mubr.f32.gmra.mrb[116].mxu1 %v2439_v40 }
 0x26e   :  { %v3651_v13 = vpop.f32.mrb[11].mxu1  ;;  %v2280_v12 = vmul.f32 1.442695, %v2143_v58  ;;  %v5786_v62 = vadd.f32 %v5783_v0, %v1947_v41  ;;  %v3568_v60 = vpop.f32.mrb[127].mxu0  ;;  %3811 = vmatprep.mubr.msk.f32.mxu1 %vm4252_vm0, %v4253_v28  ;;  %v3146_v57 = vadd.f32 -1.0, %v4189_v21 }
 0x26f   :  { %2924 = vst [vmem:[#allocation2 + $0x28] sm:$0xff] %v2571_v51 }
 0x270   :  { %4194 = vpow2.f32 %v2280_v12  ;;  %v2144_v46 = vmin.f32 %v5786_v62, 0.0  ;;  %v2575_v2 = vpop.f32.mrb[12].mxu1  ;;  %v2440_v4 = vsel %vm2065_vm15, %v5744_v25, %v3146_v57  ;;  %vm2069_vm4 = vcmp.gt.f32.partialorder %v5786_v62, 0.0 }
 0x271   :  { %v4191_v8 = vpop.eup %4190  ;;  %v2576_v14 = vadd.f32 %v5729_v45, %v2575_v2  ;;  %v3654_v11 = vpop.f32.mrb[13].mxu1  ;;  %3812 = vmatmul.mubr.f32.gmra.mrb[118].mxu1 %v2440_v4 }
 0x272   :  { %v2282_v52 = vmul.f32 1.442695, %v2144_v46  ;;  %3814 = vmatprep.mubr.msk.f32.mxu1 %vm4252_vm0, %v4253_v28  ;;  %v3147_v50 = vadd.f32 -1.0, %v4191_v8  ;;  %v1952_v63 = vpop.f32.mrb[128].mxu0 }
 0x273   :  { %2925 = vst [vmem:[#allocation2 + $0x30] sm:$0xff] %v2576_v14  ;;  %v5798_v7 = vadd.f32 %v5783_v0, %v1952_v63  ;;  %v3571_v49 = vpop.f32.mrb[129].mxu0 }
 0x274   :  { %4196 = vpow2.f32 %v2282_v52  ;;  %v2580_v22 = vpop.f32.mrb[14].mxu1  ;;  %v2441_v25 = vsel %vm2066_vm1, %v5753_v26, %v3147_v50 }
 0x275   :  { %v4193_v37 = vpop.eup %4192  ;;  %v2581_v20 = vadd.f32 %v5729_v45, %v2580_v22  ;;  %v3657_v10 = vpop.f32.mrb[15].mxu1  ;;  %3815 = vmatmul.mubr.f32.gmra.mrb[120].mxu1 %v2441_v25  ;;  %v2145_v23 = vmin.f32 %v5798_v7, 0.0  ;;  %vm2070_vm5 = vcmp.gt.f32.partialorder %v5798_v7, 0.0 }
 0x276   :  { %3817 = vmatprep.mubr.msk.f32.mxu1 %vm4252_vm0, %v4253_v28  ;;  %v3148_v31 = vadd.f32 -1.0, %v4193_v37  ;;  %v1957_v53 = vpop.f32.mrb[130].mxu0 }
 0x277   :  { %2926 = vst [vmem:[#allocation2 + $0x38] sm:$0xff] %v2581_v20  ;;  %v2284_v38 = vmul.f32 1.442695, %v2145_v23  ;;  %v5807_v55 = vadd.f32 %v5783_v0, %v1957_v53  ;;  %v3574_v32 = vpop.f32.mrb[131].mxu0 }
 0x278   :  { %v2585_v18 = vpop.f32.mrb[16].mxu1  ;;  %v2442_v26 = vsel %vm2067_vm2, %v5762_v48, %v3148_v31 }
 0x279   :  { %v2586_v15 = vadd.f32 %v5729_v45, %v2585_v18  ;;  %v3660_v6 = vpop.f32.mrb[17].mxu1  ;;  %3818 = vmatmul.mubr.f32.gmra.mrb[122].mxu1 %v2442_v26  ;;  %4198 = vpow2.f32 %v2284_v38  ;;  %v2146_v24 = vmin.f32 %v5807_v55, 0.0  ;;  %vm2071_vm6 = vcmp.gt.f32.partialorder %v5807_v55, 0.0 }
 0x27a   :  { %v4195_v47 = vpop.eup %4194  ;;  %3820 = vmatprep.mubr.msk.f32.mxu1 %vm4252_vm0, %v4253_v28 }
 0x27b   :  { %2927 = vst [vmem:[#allocation2 + $0x40] sm:$0xff] %v2586_v15  ;;  %v3149_v30 = vadd.f32 -1.0, %v4195_v47  ;;  %v2286_v19 = vmul.f32 1.442695, %v2146_v24 }
 0x27c   :  { %v2590_v33 = vpop.f32.mrb[18].mxu1 }
 0x27d   :  { %v1962_v56 = vpop.f32.mrb[132].mxu0  ;;  %v2591_v29 = vadd.f32 %v5729_v45, %v2590_v33  ;;  %v3663_v36 = vpop.f32.mrb[19].mxu1  ;;  %v2443_v48 = vsel %vm2068_vm3, %v5772_v35, %v3149_v30  ;;  %4200 = vpow2.f32 %v2286_v19 }
 0x27e   :  { %v4197_v17 = vpop.eup %4196  ;;  %v5818_v34 = vadd.f32 %v5783_v0, %v1962_v56  ;;  %v3577_v16 = vpop.f32.mrb[133].mxu0  ;;  %3821 = vmatmul.mubr.f32.gmra.mrb[124].mxu1 %v2443_v48 }
 0x27f   :  { %2928 = vst [vmem:[#allocation2 + $0x48] sm:$0xff] %v2591_v29  ;;  %3823 = vmatprep.mubr.msk.f32.mxu1 %vm4252_vm0, %v4253_v28  ;;  %v3150_v39 = vadd.f32 -1.0, %v4197_v17 }
 0x280   :  { %v2147_v1 = vmin.f32 %v5818_v34, 0.0  ;;  %v2595_v44 = vpop.f32.mrb[20].mxu1  ;;  %vm2072_vm7 = vcmp.gt.f32.partialorder %v5818_v34, 0.0 }
 0x281   :  { %v1967_v59 = vpop.f32.mrb[134].mxu0  ;;  %v2596_v9 = vadd.f32 %v5729_v45, %v2595_v44  ;;  %v3666_v5 = vpop.f32.mrb[21].mxu1  ;;  %v2444_v43 = vsel %vm2069_vm4, %v5786_v62, %v3150_v39 }
 0x282   :  { %v2288_v3 = vmul.f32 1.442695, %v2147_v1  ;;  %v5827_v42 = vadd.f32 %v5783_v0, %v1967_v59  ;;  %v3580_v35 = vpop.f32.mrb[135].mxu0  ;;  %3824 = vmatmul.mubr.f32.gmra.mrb[126].mxu1 %v2444_v43 }
 0x283   :  { %2929 = vst [vmem:[#allocation2 + $0x50] sm:$0xff] %v2596_v9  ;;  %3826 = vmatprep.mubr.msk.f32.mxu1 %vm4252_vm0, %v4253_v28  ;;  %v4199_v54 = vpop.eup %4198 }
 0x284   :  { %4202 = vpow2.f32 %v2288_v3  ;;  %v2148_v27 = vmin.f32 %v5827_v42, 0.0  ;;  %v2600_v58 = vpop.f32.mrb[22].mxu1  ;;  %v3151_v41 = vadd.f32 -1.0, %v4199_v54  ;;  %vm2073_vm8 = vcmp.gt.f32.partialorder %v5827_v42, 0.0 }
 0x285   :  { %v1972_v61 = vpop.f32.mrb[136].mxu0  ;;  %v2601_v40 = vadd.f32 %v5729_v45, %v2600_v58  ;;  %v3669_v21 = vpop.f32.mrb[23].mxu1 }
 0x286   :  { %v2290_v51 = vmul.f32 1.442695, %v2148_v27  ;;  %v5834_v13 = vadd.f32 %v5783_v0, %v1972_v61  ;;  %v3583_v12 = vpop.f32.mrb[137].mxu0  ;;  %v2445_v62 = vsel %vm2070_vm5, %v5798_v7, %v3151_v41 }
 0x287   :  { %2930 = vst [vmem:[#allocation2 + $0x58] sm:$0xff] %v2601_v40  ;;  %v4201_v60 = vpop.eup %4200  ;;  %3827 = vmatmul.mubr.f32.gmra.mrb[128].mxu1 %v2445_v62 }
 0x288   :  { %4204 = vpow2.f32 %v2290_v51  ;;  %v2149_v57 = vmin.f32 %v5834_v13, 0.0  ;;  %v2605_v46 = vpop.f32.mrb[24].mxu1  ;;  %3829 = vmatprep.mubr.msk.f32.mxu1 %vm4252_vm0, %v4253_v28  ;;  %v3152_v14 = vadd.f32 -1.0, %v4201_v60  ;;  %vm2074_vm9 = vcmp.gt.f32.partialorder %v5834_v13, 0.0 }
 0x289   :  { %v1977_v2 = vpop.f32.mrb[138].mxu0  ;;  %v2606_v4 = vadd.f32 %v5729_v45, %v2605_v46  ;;  %v3672_v8 = vpop.f32.mrb[25].mxu1 }
 0x28a   :  { %v2292_v11 = vmul.f32 1.442695, %v2149_v57  ;;  %v5843_v52 = vadd.f32 %v5783_v0, %v1977_v2  ;;  %v3586_v50 = vpop.f32.mrb[139].mxu0  ;;  %v2446_v63 = vsel %vm2071_vm6, %v5807_v55, %v3152_v14 }
 0x28b   :  { %2931 = vst [vmem:[#allocation2 + $0x60] sm:$0xff] %v2606_v4  ;;  %3830 = vmatmul.mubr.f32.gmra.mrb[130].mxu1 %v2446_v63 }
 0x28c   :  { %4206 = vpow2.f32 %v2292_v11  ;;  %v2150_v7 = vmin.f32 %v5843_v52, 0.0  ;;  %v2610_v49 = vpop.f32.mrb[26].mxu1  ;;  %3832 = vmatprep.mubr.msk.f32.mxu1 %vm4252_vm0, %v4253_v28  ;;  %vm2075_vm10 = vcmp.gt.f32.partialorder %v5843_v52, 0.0 }
 0x28d   :  { %v2611_v22 = vadd.f32 %v5729_v45, %v2610_v49  ;;  %v3675_v25 = vpop.f32.mrb[27].mxu1 }
 0x28e   :  { %v4203_v37 = vpop.eup %4202  ;;  %v2294_v20 = vmul.f32 1.442695, %v2150_v7  ;;  %v1982_v10 = vpop.f32.mrb[140].mxu0 }
 0x28f   :  { %2932 = vst [vmem:[#allocation2 + $0x68] sm:$0xff] %v2611_v22  ;;  %v3153_v23 = vadd.f32 -1.0, %v4203_v37  ;;  %v5852_v31 = vadd.f32 %v5783_v0, %v1982_v10  ;;  %v3589_v53 = vpop.f32.mrb[141].mxu0 }
 0x290   :  { %4208 = vpow2.f32 %v2294_v20  ;;  %v2615_v38 = vpop.f32.mrb[28].mxu1 }
 0x291   :  { %v2447_v55 = vsel %vm2072_vm7, %v5818_v34, %v3153_v23  ;;  %v2616_v32 = vadd.f32 %v5729_v45, %v2615_v38  ;;  %v3678_v18 = vpop.f32.mrb[29].mxu1  ;;  %v2151_v15 = vmin.f32 %v5852_v31, 0.0  ;;  %vm2076_vm11 = vcmp.gt.f32.partialorder %v5852_v31, 0.0 }
 0x292   :  { %v4205_v26 = vpop.eup %4204  ;;  %3833 = vmatmul.mubr.f32.gmra.mrb[132].mxu1 %v2447_v55  ;;  %v1987_v6 = vpop.f32.mrb[142].mxu0 }
 0x293   :  { %2933 = vst [vmem:[#allocation2 + $0x70] sm:$0xff] %v2616_v32  ;;  %3835 = vmatprep.mubr.msk.f32.mxu1 %vm4252_vm0, %v4253_v28  ;;  %v3154_v47 = vadd.f32 -1.0, %v4205_v26  ;;  %v2296_v24 = vmul.f32 1.442695, %v2151_v15  ;;  %v5861_v30 = vadd.f32 %v5783_v0, %v1987_v6  ;;  %v3592_v19 = vpop.f32.mrb[143].mxu0 }
 0x294   :  { %v2620_v33 = vpop.f32.mrb[30].mxu1 }
 0x295   :  { %v2448_v56 = vsel %vm2073_vm8, %v5827_v42, %v3154_v47  ;;  %v2621_v29 = vadd.f32 %v5729_v45, %v2620_v33  ;;  %v3681_v36 = vpop.f32.mrb[31].mxu1  ;;  %4210 = vpow2.f32 %v2296_v24  ;;  %v2152_v17 = vmin.f32 %v5861_v30, 0.0 }
 0x296   :  { %v4207_v48 = vpop.eup %4206  ;;  %3836 = vmatmul.mubr.f32.gmra.mrb[134].mxu1 %v2448_v56  ;;  %v1992_v34 = vpop.f32.mrb[144].mxu0  ;;  %vm2077_vm12 = vcmp.gt.f32.partialorder %v5861_v30, 0.0 }
 0x297   :  { %2934 = vst [vmem:[#allocation2 + $0x78] sm:$0xff] %v2621_v29  ;;  %3838 = vmatprep.mubr.msk.f32.mxu1 %vm4252_vm0, %v4253_v28  ;;  %v3155_v16 = vadd.f32 -1.0, %v4207_v48  ;;  %v2298_v39 = vmul.f32 1.442695, %v2152_v17  ;;  %v5870_v1 = vadd.f32 %v5783_v0, %v1992_v34  ;;  %v3595_v44 = vpop.f32.mrb[145].mxu0 }
 0x298   :  { %v2625_v59 = vpop.f32.mrb[32].mxu1 }
 0x299   :  { %v2449_v9 = vsel %vm2074_vm9, %v5834_v13, %v3155_v16  ;;  %v2626_v5 = vadd.f32 %v5729_v45, %v2625_v59  ;;  %v3684_v43 = vpop.f32.mrb[33].mxu1  ;;  %4212 = vpow2.f32 %v2298_v39  ;;  %v2153_v42 = vmin.f32 %v5870_v1, 0.0 }
 0x29a   :  { %v4209_v3 = vpop.eup %4208  ;;  %3839 = vmatmul.mubr.f32.gmra.mrb[136].mxu1 %v2449_v9  ;;  %v1997_v35 = vpop.f32.mrb[146].mxu0  ;;  %vm2078_vm13 = vcmp.gt.f32.partialorder %v5870_v1, 0.0 }
 0x29b   :  { %2935 = vst [vmem:[#allocation2 + $0x80] sm:$0xff] %v2626_v5  ;;  %3841 = vmatprep.mubr.msk.f32.mxu1 %vm4252_vm0, %v4253_v28  ;;  %v3156_v54 = vadd.f32 -1.0, %v4209_v3  ;;  %v2300_v27 = vmul.f32 1.442695, %v2153_v42  ;;  %v1998_v58 = vadd.f32 %v5783_v0, %v1997_v35  ;;  %v3598_v61 = vpop.f32.mrb[147].mxu0 }
 0x29c   :  { %v2630_v40 = vpop.f32.mrb[34].mxu1 }
 0x29d   :  { %v2450_v21 = vsel %vm2075_vm10, %v5843_v52, %v3156_v54  ;;  %v2631_v41 = vadd.f32 %v5729_v45, %v2630_v40  ;;  %v3687_v51 = vpop.f32.mrb[35].mxu1  ;;  %4214 = vpow2.f32 %v2300_v27  ;;  %v2154_v13 = vmin.f32 %v1998_v58, 0.0 }
 0x29e   :  { %3842 = vmatmul.mubr.f32.gmra.mrb[138].mxu1 %v2450_v21  ;;  %v2002_v12 = vpop.f32.mrb[148].mxu0  ;;  %vm2079_vm14 = vcmp.gt.f32.partialorder %v1998_v58, 0.0 }
 0x29f   :  { %2936 = vst [vmem:[#allocation2 + $0x88] sm:$0xff] %v2631_v41  ;;  %3844 = vmatprep.mubr.msk.f32.mxu1 %vm4252_vm0, %v4253_v28  ;;  %v4211_v62 = vpop.eup %4210  ;;  %v2302_v60 = vmul.f32 1.442695, %v2154_v13  ;;  %v2003_v57 = vadd.f32 %v5783_v0, %v2002_v12  ;;  %v3601_v46 = vpop.f32.mrb[149].mxu0 }
 0x2a0   :  { %v2635_v2 = vpop.f32.mrb[36].mxu1  ;;  %v3157_v4 = vadd.f32 -1.0, %v4211_v62 }
 0x2a1   :  { %v2636_v8 = vadd.f32 %v5729_v45, %v2635_v2  ;;  %v3690_v14 = vpop.f32.mrb[37].mxu1  ;;  %4216 = vpow2.f32 %v2302_v60  ;;  %v2155_v11 = vmin.f32 %v2003_v57, 0.0  ;;  %vm2080_vm15 = vcmp.gt.f32.partialorder %v2003_v57, 0.0 }
 0x2a2   :  { %v2451_v52 = vsel %vm2076_vm11, %v5852_v31, %v3157_v4 }
 0x2a3   :  { %2937 = vst [vmem:[#allocation2 + $0x90] sm:$0xff] %v2636_v8  ;;  %v4213_v50 = vpop.eup %4212  ;;  %v2304_v63 = vmul.f32 1.442695, %v2155_v11  ;;  %3845 = vmatmul.mubr.f32.gmra.mrb[140].mxu1 %v2451_v52 }
 0x2a4   :  { %v2640_v7 = vpop.f32.mrb[38].mxu1  ;;  %3847 = vmatprep.mubr.msk.f32.mxu1 %vm4252_vm0, %v4253_v28  ;;  %v3158_v0 = vadd.f32 -1.0, %v4213_v50 }
 0x2a5   :  { %v2641_v49 = vadd.f32 %v5729_v45, %v2640_v7  ;;  %v3693_v22 = vpop.f32.mrb[39].mxu1  ;;  %4218 = vpow2.f32 %v2304_v63 }
 0x2a6   :  { %v2452_v25 = vsel %vm2077_vm12, %v5861_v30, %v3158_v0 }
 0x2a7   :  { %2938 = vst [vmem:[#allocation2 + $0x98] sm:$0xff] %v2641_v49  ;;  %v4215_v37 = vpop.eup %4214  ;;  %3848 = vmatmul.mubr.f32.gmra.mrb[142].mxu1 %v2452_v25 }
 0x2a8   :  { %v2645_v20 = vpop.f32.mrb[40].mxu1  ;;  %3850 = vmatprep.mubr.msk.f32.mxu1 %vm4252_vm0, %v4253_v28  ;;  %v3159_v10 = vadd.f32 -1.0, %v4215_v37 }
 0x2a9   :  { %v2646_v23 = vadd.f32 %v5729_v45, %v2645_v20  ;;  %v3696_v31 = vpop.f32.mrb[41].mxu1 }
 0x2aa   :  { %v2453_v53 = vsel %vm2078_vm13, %v5870_v1, %v3159_v10 }
 0x2ab   :  { %2939 = vst [vmem:[#allocation2 + $0xa0] sm:$0xff] %v2646_v23  ;;  %v4217_v38 = vpop.eup %4216  ;;  %3851 = vmatmul.mubr.f32.gmra.mrb[144].mxu1 %v2453_v53 }
 0x2ac   :  { %v2650_v55 = vpop.f32.mrb[42].mxu1  ;;  %3853 = vmatprep.mubr.msk.f32.mxu1 %vm4252_vm0, %v4253_v28  ;;  %v3160_v32 = vadd.f32 -1.0, %v4217_v38 }
 0x2ad   :  { %v2651_v18 = vadd.f32 %v5729_v45, %v2650_v55  ;;  %v3699_v26 = vpop.f32.mrb[43].mxu1 }
 0x2ae   :  { %v2454_v15 = vsel %vm2079_vm14, %v1998_v58, %v3160_v32 }
 0x2af   :  { %2940 = vst [vmem:[#allocation2 + $0xa8] sm:$0xff] %v2651_v18  ;;  %v4219_v6 = vpop.eup %4218  ;;  %3854 = vmatmul.mubr.f32.gmra.mrb[146].mxu1 %v2454_v15 }
 0x2b0   :  { %v2655_v47 = vpop.f32.mrb[44].mxu1  ;;  %3856 = vmatprep.mubr.msk.f32.mxu1 %vm4252_vm0, %v4253_v28  ;;  %v3161_v24 = vadd.f32 -1.0, %v4219_v6 }
 0x2b1   :  { %v2656_v30 = vadd.f32 %v5729_v45, %v2655_v47  ;;  %v3702_v19 = vpop.f32.mrb[45].mxu1 }
 0x2b2   :  { %v2455_v33 = vsel %vm2080_vm15, %v2003_v57, %v3161_v24 }
 0x2b3   :  { %2941 = vst [vmem:[#allocation2 + $0xb0] sm:$0xff] %v2656_v30  ;;  %3857 = vmatmul.mubr.f32.gmra.mrb[148].mxu1 %v2455_v33 }
 0x2b4   :  { %v2660_v56 = vpop.f32.mrb[46].mxu1 }
 0x2b5   :  { %v2661_v29 = vadd.f32 %v5729_v45, %v2660_v56  ;;  %v3705_v36 = vpop.f32.mrb[47].mxu1 }
 0x2b7   :  { %2942 = vst [vmem:[#allocation2 + $0xb8] sm:$0xff] %v2661_v29 }
 0x2b8   :  { %v2665_v48 = vpop.f32.mrb[48].mxu1 }
 0x2b9   :  { %v2666_v17 = vadd.f32 %v5729_v45, %v2665_v48  ;;  %v3708_v34 = vpop.f32.mrb[49].mxu1 }
 0x2bb   :  { %2943 = vst [vmem:[#allocation2 + $0xc0] sm:$0xff] %v2666_v17 }
 0x2bc   :  { %v2670_v16 = vpop.f32.mrb[50].mxu1 }
 0x2bd   :  { %v2671_v28 = vadd.f32 %v5729_v45, %v2670_v16  ;;  %v3711_v39 = vpop.f32.mrb[51].mxu1 }
 0x2bf   :  { %2944 = vst [vmem:[#allocation2 + $0xc8] sm:$0xff] %v2671_v28 }
 0x2c0   :  { %v2675_v1 = vpop.f32.mrb[52].mxu1 }
 0x2c1   :  { %v2676_v44 = vadd.f32 %v5729_v45, %v2675_v1  ;;  %v3714_v59 = vpop.f32.mrb[53].mxu1 }
 0x2c3   :  { %2945 = vst [vmem:[#allocation2 + $0xd0] sm:$0xff] %v2676_v44 }
 0x2c4   :  { %v2680_v9 = vpop.f32.mrb[54].mxu1 }
 0x2c5   :  { %v2681_v5 = vadd.f32 %v5729_v45, %v2680_v9  ;;  %v3717_v43 = vpop.f32.mrb[55].mxu1 }
 0x2c7   :  { %2946 = vst [vmem:[#allocation2 + $0xd8] sm:$0xff] %v2681_v5 }
 0x2c8   :  { %v2685_v3 = vpop.f32.mrb[56].mxu1 }
 0x2c9   :  { %v2686_v42 = vadd.f32 %v5729_v45, %v2685_v3  ;;  %v3720_v35 = vpop.f32.mrb[57].mxu1 }
 0x2cb   :  { %2947 = vst [vmem:[#allocation2 + $0xe0] sm:$0xff] %v2686_v42 }
 0x2cc   :  { %v2690_v54 = vpop.f32.mrb[58].mxu1 }
 0x2cd   :  { %v2691_v27 = vadd.f32 %v5729_v45, %v2690_v54  ;;  %v3723_v58 = vpop.f32.mrb[59].mxu1 }
 0x2cf   :  { %2948 = vst [vmem:[#allocation2 + $0xe8] sm:$0xff] %v2691_v27 }
 0x2d0   :  { %v2695_v61 = vpop.f32.mrb[60].mxu1 }
 0x2d1   :  { %v2696_v40 = vadd.f32 %v5729_v45, %v2695_v61  ;;  %v3726_v21 = vpop.f32.mrb[61].mxu1 }
 0x2d3   :  { %2949 = vst [vmem:[#allocation2 + $0xf0] sm:$0xff] %v2696_v40 }
 0x2d4   :  { %v2700_v41 = vpop.f32.mrb[62].mxu1 }
 0x2d5   :  { %v2701_v51 = vadd.f32 %v5729_v45, %v2700_v41  ;;  %v3729_v13 = vpop.f32.mrb[63].mxu1 }
 0x2d7   :  { %2950 = vst [vmem:[#allocation2 + $0xf8] sm:$0xff] %v2701_v51 }
 0x2d8   :  { %v2705_v12 = vpop.f32.mrb[64].mxu1 }
 0x2d9   :  { %v2706_v62 = vadd.f32 %v5729_v45, %v2705_v12  ;;  %v3732_v60 = vpop.f32.mrb[65].mxu1 }
 0x2db   :  { %2951 = vst [vmem:[#allocation2 + $0x100] sm:$0xff] %v2706_v62 }
 0x2dc   :  { %v2710_v57 = vpop.f32.mrb[66].mxu1 }
 0x2dd   :  { %v2711_v46 = vadd.f32 %v5729_v45, %v2710_v57  ;;  %v3735_v2 = vpop.f32.mrb[67].mxu1 }
 0x2df   :  { %2952 = vst [vmem:[#allocation2 + $0x108] sm:$0xff] %v2711_v46 }
 0x2e0   :  { %v2715_v4 = vpop.f32.mrb[68].mxu1 }
 0x2e1   :  { %v2716_v8 = vadd.f32 %v5729_v45, %v2715_v4  ;;  %v3738_v14 = vpop.f32.mrb[69].mxu1 }
 0x2e3   :  { %2953 = vst [vmem:[#allocation2 + $0x110] sm:$0xff] %v2716_v8 }
 0x2e4   :  { %v2720_v11 = vpop.f32.mrb[70].mxu1 }
 0x2e5   :  { %v2721_v52 = vadd.f32 %v5729_v45, %v2720_v11  ;;  %v3741_v50 = vpop.f32.mrb[71].mxu1 }
 0x2e7   :  { %2954 = vst [vmem:[#allocation2 + $0x118] sm:$0xff] %v2721_v52 }
 0x2e8   :  { %v2725_v63 = vpop.f32.mrb[72].mxu1 }
 0x2e9   :  { %v2726_v7 = vadd.f32 %v5729_v45, %v2725_v63  ;;  %v3744_v0 = vpop.f32.mrb[73].mxu1 }
 0x2eb   :  { %2955 = vst [vmem:[#allocation2 + $0x120] sm:$0xff] %v2726_v7 }
 0x2ec   :  { %v2730_v49 = vpop.f32.mrb[74].mxu1 }
 0x2ed   :  { %v2731_v22 = vadd.f32 %v5729_v45, %v2730_v49  ;;  %v3747_v25 = vpop.f32.mrb[75].mxu1 }
 0x2ef   :  { %2956 = vst [vmem:[#allocation2 + $0x128] sm:$0xff] %v2731_v22 }
 0x2f0   :  { %v2735_v37 = vpop.f32.mrb[76].mxu1 }
 0x2f1   :  { %v2736_v20 = vadd.f32 %v5729_v45, %v2735_v37  ;;  %v3750_v10 = vpop.f32.mrb[77].mxu1 }
 0x2f3   :  { %2957 = vst [vmem:[#allocation2 + $0x130] sm:$0xff] %v2736_v20 }
 0x2f4   :  { %v2740_v23 = vpop.f32.mrb[78].mxu1 }
 0x2f5   :  { %v2741_v31 = vadd.f32 %v5729_v45, %v2740_v23  ;;  %v3753_v53 = vpop.f32.mrb[79].mxu1 }
 0x2f7   :  { %2958 = vst [vmem:[#allocation2 + $0x138] sm:$0xff] %v2741_v31 }
 0x2f8   :  { %v2745_v38 = vpop.f32.mrb[80].mxu1 }
 0x2f9   :  { %v2746_v55 = vadd.f32 %v5729_v45, %v2745_v38  ;;  %v3756_v32 = vpop.f32.mrb[81].mxu1 }
 0x2fb   :  { %2959 = vst [vmem:[#allocation2 + $0x140] sm:$0xff] %v2746_v55 }
 0x2fc   :  { %v2750_v18 = vpop.f32.mrb[82].mxu1 }
 0x2fd   :  { %v2751_v26 = vadd.f32 %v5729_v45, %v2750_v18  ;;  %v3759_v15 = vpop.f32.mrb[83].mxu1 }
 0x2ff   :  { %2960 = vst [vmem:[#allocation2 + $0x148] sm:$0xff] %v2751_v26 }
 0x300   :  { %v2755_v6 = vpop.f32.mrb[84].mxu1 }
 0x301   :  { %v2756_v47 = vadd.f32 %v5729_v45, %v2755_v6  ;;  %v3762_v24 = vpop.f32.mrb[85].mxu1 }
 0x303   :  { %2961 = vst [vmem:[#allocation2 + $0x150] sm:$0xff] %v2756_v47 }
 0x304   :  { %v2760_v30 = vpop.f32.mrb[86].mxu1 }
 0x305   :  { %v2761_v19 = vadd.f32 %v5729_v45, %v2760_v30  ;;  %v3765_v33 = vpop.f32.mrb[87].mxu1 }
 0x307   :  { %2962 = vst [vmem:[#allocation2 + $0x158] sm:$0xff] %v2761_v19 }
 0x308   :  { %v2765_v56 = vpop.f32.mrb[88].mxu1 }
 0x309   :  { %v2766_v29 = vadd.f32 %v5729_v45, %v2765_v56  ;;  %v3768_v36 = vpop.f32.mrb[89].mxu1 }
 0x30b   :  { %2963 = vst [vmem:[#allocation2 + $0x160] sm:$0xff] %v2766_v29 }
 0x30c   :  { %v2770_v48 = vpop.f32.mrb[90].mxu1 }
 0x30d   :  { %v2771_v17 = vadd.f32 %v5729_v45, %v2770_v48  ;;  %v3771_v34 = vpop.f32.mrb[91].mxu1 }
 0x30f   :  { %2964 = vst [vmem:[#allocation2 + $0x168] sm:$0xff] %v2771_v17 }
 0x310   :  { %v2775_v16 = vpop.f32.mrb[92].mxu1 }
 0x311   :  { %v2776_v28 = vadd.f32 %v5729_v45, %v2775_v16  ;;  %v3774_v39 = vpop.f32.mrb[93].mxu1 }
 0x313   :  { %2965 = vst [vmem:[#allocation2 + $0x170] sm:$0xff] %v2776_v28 }
 0x314   :  { %v2780_v1 = vpop.f32.mrb[94].mxu1 }
 0x315   :  { %v2781_v44 = vadd.f32 %v5729_v45, %v2780_v1  ;;  %v3777_v59 = vpop.f32.mrb[95].mxu1 }
 0x317   :  { %2966 = vst [vmem:[#allocation2 + $0x178] sm:$0xff] %v2781_v44 }
 0x318   :  { %v2785_v9 = vpop.f32.mrb[96].mxu1 }
 0x319   :  { %v2786_v5 = vadd.f32 %v5729_v45, %v2785_v9  ;;  %v3780_v43 = vpop.f32.mrb[97].mxu1 }
 0x31b   :  { %2967 = vst [vmem:[#allocation2 + $0x180] sm:$0xff] %v2786_v5  ;;  %v4224_v5 = vld [vmem:[%s5971_s6] ss:$0 sm:$0xff]  ;;  %s2999_s6 = sshll.u32 %s4254_s8, 4  ;;  %s3000_s6 = int_to_ptr.vmem [resolvable:$true] %s2999_s6 }
 0x31c   :  { %v2790_v3 = vpop.f32.mrb[98].mxu1  ;;  %s4225_s3 = scalar_lea.vmem %s3000_s6, 9600  ;;  %p4230_p1 = scmp.lt.s32.totalorder %s3000_s6, %s3000_s6 }
 0x31d   :  { %v2791_v42 = vadd.f32 %v5729_v45, %v2790_v3  ;;  %v3783_v35 = vpop.f32.mrb[99].mxu1  ;;  %p4226_p0 = scmp.ne.s32.totalorder %s3000_s6, %s4225_s3  ;;  %p4231_p2 = scmp.lt.s32.totalorder %s4225_s3, %s4225_s3 }
 0x31f   :  { %2968 = vst [vmem:[#allocation2 + $0x188] sm:$0xff] %v2791_v42  ;;  %p4232_p3 = por %p4231_p2, %p4230_p1 }
 0x320   :  { %v2795_v54 = vpop.f32.mrb[100].mxu1 }
 0x321   :  { %v2796_v27 = vadd.f32 %v5729_v45, %v2795_v54  ;;  %v3786_v58 = vpop.f32.mrb[101].mxu1  ;;  %p4233_p4 = pnand %p4232_p3, %p4226_p0 }
 0x323   :  { %2969 = vst [vmem:[#allocation2 + $0x190] sm:$0xff] %v2796_v27 }
 0x324   :  { %v2800_v61 = vpop.f32.mrb[102].mxu1 }
 0x325   :  { %v2801_v40 = vadd.f32 %v5729_v45, %v2800_v61  ;;  %v3789_v21 = vpop.f32.mrb[103].mxu1 }
 0x327   :  { %2970 = vst [vmem:[#allocation2 + $0x198] sm:$0xff] %v2801_v40 }
 0x328   :  { %v2805_v41 = vpop.f32.mrb[104].mxu1 }
 0x329   :  { %v2806_v51 = vadd.f32 %v5729_v45, %v2805_v41  ;;  %v3792_v13 = vpop.f32.mrb[105].mxu1 }
 0x32b   :  { %2971 = vst [vmem:[#allocation2 + $0x1a0] sm:$0xff] %v2806_v51 }
 0x32c   :  { %v2810_v12 = vpop.f32.mrb[106].mxu1 }
 0x32d   :  { %v2811_v62 = vadd.f32 %v5729_v45, %v2810_v12  ;;  %v3795_v60 = vpop.f32.mrb[107].mxu1 }
 0x32f   :  { %2972 = vst [vmem:[#allocation2 + $0x1a8] sm:$0xff] %v2811_v62 }
 0x330   :  { %v2815_v57 = vpop.f32.mrb[108].mxu1 }
 0x331   :  { %v2816_v46 = vadd.f32 %v5729_v45, %v2815_v57  ;;  %v3798_v2 = vpop.f32.mrb[109].mxu1 }
 0x333   :  { %2973 = vst [vmem:[#allocation2 + $0x1b0] sm:$0xff] %v2816_v46 }
 0x334   :  { %v2820_v4 = vpop.f32.mrb[110].mxu1 }
 0x335   :  { %v2821_v8 = vadd.f32 %v5729_v45, %v2820_v4  ;;  %v3801_v14 = vpop.f32.mrb[111].mxu1 }
 0x337   :  { %2974 = vst [vmem:[#allocation2 + $0x1b8] sm:$0xff] %v2821_v8 }
 0x338   :  { %v2825_v11 = vpop.f32.mrb[112].mxu1 }
 0x339   :  { %v2826_v52 = vadd.f32 %v5729_v45, %v2825_v11  ;;  %v3804_v50 = vpop.f32.mrb[113].mxu1 }
 0x33b   :  { %2975 = vst [vmem:[#allocation2 + $0x1c0] sm:$0xff] %v2826_v52 }
 0x33c   :  { %v2830_v63 = vpop.f32.mrb[114].mxu1 }
 0x33d   :  { %v2831_v7 = vadd.f32 %v5729_v45, %v2830_v63  ;;  %v3807_v0 = vpop.f32.mrb[115].mxu1 }
 0x33f   :  { %2976 = vst [vmem:[#allocation2 + $0x1c8] sm:$0xff] %v2831_v7 }
 0x340   :  { %v2835_v49 = vpop.f32.mrb[116].mxu1 }
 0x341   :  { %v2836_v22 = vadd.f32 %v5729_v45, %v2835_v49  ;;  %v3810_v25 = vpop.f32.mrb[117].mxu1 }
 0x343   :  { %2977 = vst [vmem:[#allocation2 + $0x1d0] sm:$0xff] %v2836_v22 }
 0x344   :  { %v2840_v37 = vpop.f32.mrb[118].mxu1 }
 0x345   :  { %v2841_v20 = vadd.f32 %v5729_v45, %v2840_v37  ;;  %v3813_v10 = vpop.f32.mrb[119].mxu1 }
 0x347   :  { %2978 = vst [vmem:[#allocation2 + $0x1d8] sm:$0xff] %v2841_v20 }
 0x348   :  { %v2845_v23 = vpop.f32.mrb[120].mxu1 }
 0x349   :  { %v2846_v31 = vadd.f32 %v5729_v45, %v2845_v23  ;;  %v3816_v53 = vpop.f32.mrb[121].mxu1 }
 0x34b   :  { %2979 = vst [vmem:[#allocation2 + $0x1e0] sm:$0xff] %v2846_v31 }
 0x34c   :  { %v2850_v38 = vpop.f32.mrb[122].mxu1 }
 0x34d   :  { %v2851_v55 = vadd.f32 %v5729_v45, %v2850_v38  ;;  %v3819_v32 = vpop.f32.mrb[123].mxu1 }
 0x34f   :  { %2980 = vst [vmem:[#allocation2 + $0x1e8] sm:$0xff] %v2851_v55 }
 0x351   :  { %v2855_v18 = vpop.f32.mrb[124].mxu1 }
 0x352   :  { %v2856_v26 = vadd.f32 %v5729_v45, %v2855_v18  ;;  %v3822_v15 = vpop.f32.mrb[125].mxu1 }
 0x354   :  { %2981 = vst [vmem:[#allocation2 + $0x1f0] sm:$0xff] %v2856_v26 }
 0x355   :  { %v2860_v6 = vpop.f32.mrb[126].mxu1 }
 0x356   :  { %v2861_v47 = vadd.f32 %v5729_v45, %v2860_v6  ;;  %v3825_v24 = vpop.f32.mrb[127].mxu1 }
 0x358   :  { %2982 = vst [vmem:[#allocation2 + $0x1f8] sm:$0xff] %v2861_v47 }
 0x35a   :  { %v2865_v30 = vpop.f32.mrb[128].mxu1 }
 0x35b   :  { %v2866_v19 = vadd.f32 %v5729_v45, %v2865_v30  ;;  %v3828_v33 = vpop.f32.mrb[129].mxu1 }
 0x35d   :  { %2983 = vst [vmem:[#allocation2 + $0x200] sm:$0xff] %v2866_v19 }
 0x35e   :  { %v2870_v56 = vpop.f32.mrb[130].mxu1 }
 0x35f   :  { %v2871_v29 = vadd.f32 %v5729_v45, %v2870_v56  ;;  %v3831_v36 = vpop.f32.mrb[131].mxu1 }
 0x361   :  { %2984 = vst [vmem:[#allocation2 + $0x208] sm:$0xff] %v2871_v29 }
 0x365   :  { %v2875_v48 = vpop.f32.mrb[132].mxu1 }
 0x366   :  { %v2876_v17 = vadd.f32 %v5729_v45, %v2875_v48  ;;  %v3834_v34 = vpop.f32.mrb[133].mxu1 }
 0x368   :  { %2985 = vst [vmem:[#allocation2 + $0x210] sm:$0xff] %v2876_v17 }
 0x369   :  { %v2880_v16 = vpop.f32.mrb[134].mxu1 }
 0x36a   :  { %v2881_v28 = vadd.f32 %v5729_v45, %v2880_v16  ;;  %v3837_v39 = vpop.f32.mrb[135].mxu1 }
 0x36c   :  { %2986 = vst [vmem:[#allocation2 + $0x218] sm:$0xff] %v2881_v28 }
 0x36d   :  { %v2885_v1 = vpop.f32.mrb[136].mxu1 }
 0x36e   :  { %v2886_v44 = vadd.f32 %v5729_v45, %v2885_v1  ;;  %v3840_v59 = vpop.f32.mrb[137].mxu1 }
 0x370   :  { %2987 = vst [vmem:[#allocation2 + $0x220] sm:$0xff] %v2886_v44 }
 0x371   :  { %v2890_v9 = vpop.f32.mrb[138].mxu1 }
 0x372   :  { %v2891_v43 = vadd.f32 %v4224_v5, %v2890_v9  ;;  %v3843_v3 = vpop.f32.mrb[139].mxu1 }
 0x374   :  { %2988 = vst [vmem:[#allocation2 + $0x228] sm:$0xff] %v2891_v43 }
 0x376   :  { %v2895_v42 = vpop.f32.mrb[140].mxu1 }
 0x377   :  { %v2896_v35 = vadd.f32 %v4224_v5, %v2895_v42  ;;  %v3846_v54 = vpop.f32.mrb[141].mxu1 }
 0x379   :  { %2989 = vst [vmem:[#allocation2 + $0x230] sm:$0xff] %v2896_v35 }
 0x37a   :  { %v2900_v27 = vpop.f32.mrb[142].mxu1 }
 0x37b   :  { %v2901_v58 = vadd.f32 %v4224_v5, %v2900_v27  ;;  %v3849_v61 = vpop.f32.mrb[143].mxu1 }
 0x37d   :  { %2990 = vst [vmem:[#allocation2 + $0x238] sm:$0xff] %v2901_v58 }
 0x37e   :  { %v2905_v40 = vpop.f32.mrb[144].mxu1 }
 0x37f   :  { %v2906_v45 = vadd.f32 %v4224_v5, %v2905_v40  ;;  %v3852_v21 = vpop.f32.mrb[145].mxu1 }
 0x381   :  { %2991 = vst [vmem:[#allocation2 + $0x240] sm:$0xff] %v2906_v45 }
 0x382   :  { %v2910_v41 = vpop.f32.mrb[146].mxu1 }
 0x383   :  { %v2911_v51 = vadd.f32 %v4224_v5, %v2910_v41  ;;  %v3855_v13 = vpop.f32.mrb[147].mxu1 }
 0x385   :  { %2992 = vst [vmem:[#allocation2 + $0x248] sm:$0xff] %v2911_v51 }
 0x386   :  { %v2915_v12 = vpop.f32.mrb[148].mxu1 }
 0x387   :  { %v2916_v62 = vadd.f32 %v4224_v5, %v2915_v12  ;;  %v3858_v60 = vpop.f32.mrb[149].mxu1 }
 0x389   :  { %2993 = vst [vmem:[#allocation2 + $0x250] sm:$0xff] %v2916_v62 }
 0x38a   :  { %4236 = shalt.err (!%p4233_p4)
}
 0x38b   :  { %s4237_s11 = scalar_lea.hbm %s5972_s7, 9600 }
 0x38c   :  { %p4238_p5 = scmp.ne.s32.totalorder %s5972_s7, %s4237_s11  ;;  %p4241_p6 = scmp.lt.u32.totalorder %s4237_s11, %s5972_s7 }
 0x38e   :  { %p4243_p7 = pnand %p4241_p6, %p4238_p5 }
 0x390   :  { %4246 = shalt.err (!%p4243_p7)
}
 0x391   :  { %s4255_s16 = smov 128   ;;  %s4256_s17 = smov 8  }
 0x392   :  { %3005 = dma.vmem_to_hbm [thread:$0]  %s3000_s6, 9600, %s5972_s7, [#allocation3], %s4255_s16, %s4255_s16, %s4256_s17  }
 0x393   :  { %4247 = dma.done.wait [#allocation3], 9600  }
 0x394   :  { %4248 = vsyncadd [#allocation3], 4294957696 }
 0x395   :  { %3009 = vsyncpa [#allocation3], 1 }

</bundles_post_ra>
